<compile_context>
chip_gen: v5e
topology: v5e:2x2
jax: 0.10.0
libtpu: 0.0.40
codegen_flags: <defaults>
</compile_context>

<pallas_src>
import jax
import jax.numpy as jnp
import numpy as np
from jax.experimental import pallas as pl
from jax.experimental.pallas import tpu as pltpu

HP = jax.lax.Precision.HIGHEST  # only used by the pure-JAX reference


# ------------------------------ Pallas kernel -------------------------------

def _even_rows(n_out, n_in):
    # E[q, r] = 1 where r == 2*q  (left-multiply selects even rows)
    q = jax.lax.broadcasted_iota(jnp.int32, (n_out, n_in), 0)
    r = jax.lax.broadcasted_iota(jnp.int32, (n_out, n_in), 1)
    return (r == 2 * q).astype(jnp.float32)


def _even_cols(n_in, n_out):
    # E[r, q] = 1 where r == 2*q  (right-multiply selects even columns)
    r = jax.lax.broadcasted_iota(jnp.int32, (n_in, n_out), 0)
    q = jax.lax.broadcasted_iota(jnp.int32, (n_in, n_out), 1)
    return (r == 2 * q).astype(jnp.float32)


def _maxpool2x2_slab(s):
    # s: (R, C), rows are (image, h) blocks of even height, columns are
    # (channel, w) blocks of even width -> global even indices always pair
    # (2k, 2k+1) inside the same image / channel.
    R, C = s.shape
    rm = jnp.maximum(s[:-1, :], s[1:, :])                        # (R-1, C)
    h = jnp.dot(_even_rows(R // 2, R - 1), rm,
                preferred_element_type=jnp.float32)              # (R/2, C)
    cm = jnp.maximum(h[:, :-1], h[:, 1:])                        # (R/2, C-1)
    return jnp.dot(cm, _even_cols(C - 1, C // 2),
                   preferred_element_type=jnp.float32)           # (R/2, C/2)


def _lenet_kernel(x_ref, t1_ref, b1_ref, t2_ref, b2_ref,
                  wf1_ref, bf1_ref, wf2_ref, bf2_ref, wf3_ref, bf3_ref,
                  out_ref):
    BT = x_ref.shape[0]
    x = x_ref[...]                                               # (BT, 32, 32)

    # ---- conv1 (pad=2, 1->8 channels incl. 2 zero pads) + bias + ReLU ------
    # Row-slab X1[(b,i), kh*32+ji] = x[b, i+kh, ji]; T1[(kh,ji),(co,jo)]
    x1 = jnp.concatenate(
        [jnp.concatenate([x[b, kh:kh + 28, :] for kh in range(5)], axis=1)
         for b in range(BT)], axis=0)                            # (BT*28, 160)
    y1 = jnp.dot(x1, t1_ref[...], preferred_element_type=jnp.float32)
    y1 = jnp.maximum(y1 + b1_ref[...], 0.0)                      # (BT*28, 224)

    # ---- pool1: rows (b, i 0..27), cols (co 0..7, jo 0..27) ----------------
    h1 = _maxpool2x2_slab(y1)                                    # (BT*14, 112)

    # ---- conv2 (6->16, valid) + bias + ReLU --------------------------------
    # X2[(b,i), kh*84 + ci*14 + ji] = h1[ci, b, i+kh, ji]
    x2 = jnp.concatenate(
        [jnp.concatenate(
            [h1[b * 14 + kh: b * 14 + kh + 10, 0:84] for kh in range(5)],
            axis=1)
         for b in range(BT)], axis=0)                            # (BT*10, 420)
    y2 = jnp.dot(x2, t2_ref[...], preferred_element_type=jnp.float32)
    y2 = jnp.maximum(y2 + b2_ref[...], 0.0)                      # (BT*10, 160)

    # ---- pool2: rows (b, i 0..9), cols (co 0..15, jo 0..9) -----------------
    h2 = _maxpool2x2_slab(y2)                                    # (BT*5, 80)

    # ---- flatten: feat[b, i2*80 + co*5 + j2] (wf1 reordered to match) ------
    feat = jnp.concatenate(
        [jnp.concatenate([h2[b * 5 + i2: b * 5 + i2 + 1, :] for i2 in range(5)],
                         axis=1)
         for b in range(BT)], axis=0)                            # (BT, 400)

    # ---- FC head (all widths padded to 128 lanes) --------------------------
    z = jnp.maximum(jnp.dot(feat, wf1_ref[...],
                            preferred_element_type=jnp.float32) + bf1_ref[...],
                    0.0)                                         # (BT, 128)
    z = jnp.maximum(jnp.dot(z, wf2_ref[...],
                            preferred_element_type=jnp.float32) + bf2_ref[...],
                    0.0)                                         # (BT, 128)
    out_ref[...] = (jnp.dot(z, wf3_ref[...],
                            preferred_element_type=jnp.float32) + bf3_ref[...])


# ------------------------------- wrapper -------------------------------------

def _toeplitz(w_taps, w_in, w_out):
    # w_taps: (..., 5) -> T: (..., w_in, w_out) with
    # T[..., ji, jo] = w_taps[..., ji - jo] if 0 <= ji - jo < 5 else 0,
    # so  (x @ T)[jo] = sum_kw x[jo + kw] * w_taps[kw]   (cross-correlation).
    k = w_taps.shape[-1]
    d = jnp.arange(w_in)[:, None] - jnp.arange(w_out)[None, :]
    valid = (d >= 0) & (d < k)
    idx = jnp.clip(d, 0, k - 1)
    T = w_taps[..., idx]
    return jnp.where(valid, T, 0.0).astype(w_taps.dtype)


def _prepare_weights(params):
    (w1, b1, w2, b2, wf1, bf1, wf2, bf2, wf3, bf3) = params

    # conv1: pad Cout 6 -> 8; T1[(kh*32+ji), (co*28+jo)]
    w1p = jnp.concatenate([w1[:, 0], jnp.zeros((2, 5, 5), w1.dtype)], axis=0)
    T1 = _toeplitz(w1p, 32, 28)                                  # (8,5,32,28)
    T1 = jnp.transpose(T1, (1, 2, 0, 3)).reshape(5 * 32, 8 * 28)  # (160,224)
    b1r = jnp.repeat(jnp.concatenate([b1, jnp.zeros((2,), b1.dtype)]),
                     28)[None, :]                                # (1,224)

    # conv2: T2[(kh*84 + ci*14 + ji), (co*10+jo)]
    T2 = _toeplitz(w2, 14, 10)                                   # (16,6,5,14,10)
    T2 = jnp.transpose(T2, (2, 1, 3, 0, 4)).reshape(5 * 6 * 14, 16 * 10)
    b2r = jnp.repeat(b2, 10)[None, :]                            # (1,160)

    # fc1: columns of in-kernel `feat` are ordered (h, c, w); reorder wf1 rows
    # accordingly and pad the 120 outputs up to 128 lanes.
    wf1a = jnp.transpose(wf1.reshape(120, 16, 5, 5), (2, 1, 3, 0)).reshape(400, 120)
    wf1a = jnp.pad(wf1a, ((0, 0), (0, 8)))
    bf1r = jnp.pad(bf1, (0, 8))[None, :]                         # (1,128)

    wf2a = jnp.pad(wf2.T, ((0, 8), (0, 44)))                     # (128,128)
    bf2r = jnp.pad(bf2, (0, 44))[None, :]                        # (1,128)
    wf3a = jnp.pad(wf3.T, ((0, 44), (0, 118)))                   # (128,128)
    bf3r = jnp.pad(bf3, (0, 118))[None, :]                       # (1,128)

    return T1, b1r, T2, b2r, wf1a, bf1r, wf2a, bf2r, wf3a, bf3r


def lenet_forward(x, params, block_batch=8):
    """x: (N, 1, 28, 28) float32 -> logits (N, 10)."""
    N = x.shape[0]
    BT = block_batch
    n_pad = pl.cdiv(N, BT) * BT

    # pad=2 spatial padding for conv1; drop the singleton channel dim.
    xp = jnp.pad(x, ((0, n_pad - N), (0, 0), (2, 2), (2, 2)))
    xp = xp.reshape(n_pad, 32, 32).astype(jnp.float32)

    weights = _prepare_weights(params)

    out = pl.pallas_call(
        _lenet_kernel,
        out_shape=jax.ShapeDtypeStruct((n_pad, 128), jnp.float32),
        grid=(n_pad // BT,),
        in_specs=[
            pl.BlockSpec((BT, 32, 32), lambda n: (n, 0, 0)),   # images
            pl.BlockSpec((160, 224), lambda n: (0, 0)),        # T1
            pl.BlockSpec((1, 224), lambda n: (0, 0)),          # b1 row
            pl.BlockSpec((420, 160), lambda n: (0, 0)),        # T2
            pl.BlockSpec((1, 160), lambda n: (0, 0)),          # b2 row
            pl.BlockSpec((400, 128), lambda n: (0, 0)),        # fc1 W
            pl.BlockSpec((1, 128), lambda n: (0, 0)),          # fc1 b
            pl.BlockSpec((128, 128), lambda n: (0, 0)),        # fc2 W
            pl.BlockSpec((1, 128), lambda n: (0, 0)),          # fc2 b
            pl.BlockSpec((128, 128), lambda n: (0, 0)),        # fc3 W
            pl.BlockSpec((1, 128), lambda n: (0, 0)),          # fc3 b
        ],
        out_specs=pl.BlockSpec((BT, 128), lambda n: (n, 0)),
        compiler_params=pltpu.CompilerParams(
            dimension_semantics=("parallel",)),
    )(xp, *weights)

    return out[:N, :10]


# -------------------------- params & reference -------------------------------

def init_params(key):
    ks = jax.random.split(key, 10)

    def rnd(k, shape, fan_in):
        return (jax.random.normal(k, shape, jnp.float32)
                / np.sqrt(fan_in)).astype(jnp.float32)

    w1 = rnd(ks[0], (6, 1, 5, 5), 25);     b1 = rnd(ks[1], (6,), 25)
    w2 = rnd(ks[2], (16, 6, 5, 5), 150);   b2 = rnd(ks[3], (16,), 150)
    wf1 = rnd(ks[4], (120, 400), 400);     bf1 = rnd(ks[5], (120,), 400)
    wf2 = rnd(ks[6], (84, 120), 120);      bf2 = rnd(ks[7], (84,), 120)
    wf3 = rnd(ks[8], (10, 84), 84);        bf3 = rnd(ks[9], (10,), 84)
    return (w1, b1, w2, b2, wf1, bf1, wf2, bf2, wf3, bf3)


def lenet_reference(x, params):
    (w1, b1, w2, b2, wf1, bf1, wf2, bf2, wf3, bf3) = params
    dn = ('NCHW', 'OIHW', 'NCHW')
    y = jax.lax.conv_general_dilated(x, w1, (1, 1), ((2, 2), (2, 2)),
                                     dimension_numbers=dn, precision=HP)
    y = jax.nn.relu(y + b1[None, :, None, None])
    y = jax.lax.reduce_window(y, -jnp.inf, jax.lax.max,
                              (1, 1, 2, 2), (1, 1, 2, 2), 'VALID')
    y = jax.lax.conv_general_dilated(y, w2, (1, 1), 'VALID',
                                     dimension_numbers=dn, precision=HP)
    y = jax.nn.relu(y + b2[None, :, None, None])
    y = jax.lax.reduce_window(y, -jnp.inf, jax.lax.max,
                              (1, 1, 2, 2), (1, 1, 2, 2), 'VALID')
    y = y.reshape(y.shape[0], -1)
    y = jax.nn.relu(jnp.dot(y, wf1.T, precision=HP) + bf1)
    y = jax.nn.relu(jnp.dot(y, wf2.T, precision=HP) + bf2)
    return jnp.dot(y, wf3.T, precision=HP) + bf3


if __name__ == "__main__":
    key = jax.random.PRNGKey(0)
    kx, kp = jax.random.split(key)
    # 16 MNIST-sized images -> 2 batch-tile grid steps of 8 images each.
    x = jax.random.normal(kx, (16, 1, 28, 28), jnp.float32)
    params = init_params(kp)

    out = jax.block_until_ready(lenet_forward(x, params))
    ref = jax.block_until_ready(lenet_reference(x, params))

    assert out.shape == (16, 10), out.shape
    np.testing.assert_allclose(np.asarray(out), np.asarray(ref),
                               rtol=3e-2, atol=3e-2)
    print("KERNEL_OK")
</pallas_src>

<mosaic_0001>
module attributes {stable_mosaic.version = 11 : i64} {
  func.func @_lenet_kernel(%arg0: i32, %arg1: memref<8x32x32xf32, #tpu.memory_space<vmem>>, %arg2: memref<160x224xf32, #tpu.memory_space<vmem>>, %arg3: memref<1x224xf32, #tpu.memory_space<vmem>>, %arg4: memref<420x160xf32, #tpu.memory_space<vmem>>, %arg5: memref<1x160xf32, #tpu.memory_space<vmem>>, %arg6: memref<400x128xf32, #tpu.memory_space<vmem>>, %arg7: memref<1x128xf32, #tpu.memory_space<vmem>>, %arg8: memref<128x128xf32, #tpu.memory_space<vmem>>, %arg9: memref<1x128xf32, #tpu.memory_space<vmem>>, %arg10: memref<128x128xf32, #tpu.memory_space<vmem>>, %arg11: memref<1x128xf32, #tpu.memory_space<vmem>>, %arg12: memref<8x128xf32, #tpu.memory_space<vmem>>) attributes {dimension_semantics = [#tpu.dimension_semantics<parallel>], iteration_bounds = array<i64: 2>, scalar_prefetch = 0 : i64, scratch_operands = 0 : i64, tpu.core_type = #tpu.core_type<tc>, window_params = [{transform_indices = @transform_0, window_bounds = array<i64: 8, 32, 32>}, {pipeline_mode = #tpu.pipeline_mode<synchronous>, transform_indices = @transform_1, window_bounds = array<i64: 160, 224>}, {pipeline_mode = #tpu.pipeline_mode<synchronous>, transform_indices = @transform_2, window_bounds = array<i64: 1, 224>}, {pipeline_mode = #tpu.pipeline_mode<synchronous>, transform_indices = @transform_3, window_bounds = array<i64: 420, 160>}, {pipeline_mode = #tpu.pipeline_mode<synchronous>, transform_indices = @transform_4, window_bounds = array<i64: 1, 160>}, {pipeline_mode = #tpu.pipeline_mode<synchronous>, transform_indices = @transform_5, window_bounds = array<i64: 400, 128>}, {pipeline_mode = #tpu.pipeline_mode<synchronous>, transform_indices = @transform_6, window_bounds = array<i64: 1, 128>}, {pipeline_mode = #tpu.pipeline_mode<synchronous>, transform_indices = @transform_7, window_bounds = array<i64: 128, 128>}, {pipeline_mode = #tpu.pipeline_mode<synchronous>, transform_indices = @transform_8, window_bounds = array<i64: 1, 128>}, {pipeline_mode = #tpu.pipeline_mode<synchronous>, transform_indices = @transform_9, window_bounds = array<i64: 128, 128>}, {pipeline_mode = #tpu.pipeline_mode<synchronous>, transform_indices = @transform_10, window_bounds = array<i64: 1, 128>}, {transform_indices = @transform_11, window_bounds = array<i64: 8, 128>}]} {
    %c0 = arith.constant 0 : index
    %c0_0 = arith.constant 0 : index
    %c0_1 = arith.constant 0 : index
    %0 = vector.load %arg1[%c0, %c0_0, %c0_1] : memref<8x32x32xf32, #tpu.memory_space<vmem>>, vector<8x32x32xf32>
    %1 = vector.extract_strided_slice %0 {offsets = [0, 0, 0], sizes = [1, 28, 32], strides = [1, 1, 1]} : vector<8x32x32xf32> to vector<1x28x32xf32>
    %2 = vector.shape_cast %1 : vector<1x28x32xf32> to vector<28x32xf32>
    %3 = vector.extract_strided_slice %0 {offsets = [0, 1, 0], sizes = [1, 28, 32], strides = [1, 1, 1]} : vector<8x32x32xf32> to vector<1x28x32xf32>
    %4 = vector.shape_cast %3 : vector<1x28x32xf32> to vector<28x32xf32>
    %5 = vector.extract_strided_slice %0 {offsets = [0, 2, 0], sizes = [1, 28, 32], strides = [1, 1, 1]} : vector<8x32x32xf32> to vector<1x28x32xf32>
    %6 = vector.shape_cast %5 : vector<1x28x32xf32> to vector<28x32xf32>
    %7 = vector.extract_strided_slice %0 {offsets = [0, 3, 0], sizes = [1, 28, 32], strides = [1, 1, 1]} : vector<8x32x32xf32> to vector<1x28x32xf32>
    %8 = vector.shape_cast %7 : vector<1x28x32xf32> to vector<28x32xf32>
    %9 = vector.extract_strided_slice %0 {offsets = [0, 4, 0], sizes = [1, 28, 32], strides = [1, 1, 1]} : vector<8x32x32xf32> to vector<1x28x32xf32>
    %10 = vector.shape_cast %9 : vector<1x28x32xf32> to vector<28x32xf32>
    %11 = tpu.concatenate %2, %4, %6, %8, %10 in 1 : vector<28x32xf32>, vector<28x32xf32>, vector<28x32xf32>, vector<28x32xf32>, vector<28x32xf32> -> vector<28x160xf32>
    %12 = vector.extract_strided_slice %0 {offsets = [1, 0, 0], sizes = [1, 28, 32], strides = [1, 1, 1]} : vector<8x32x32xf32> to vector<1x28x32xf32>
    %13 = vector.shape_cast %12 : vector<1x28x32xf32> to vector<28x32xf32>
    %14 = vector.extract_strided_slice %0 {offsets = [1, 1, 0], sizes = [1, 28, 32], strides = [1, 1, 1]} : vector<8x32x32xf32> to vector<1x28x32xf32>
    %15 = vector.shape_cast %14 : vector<1x28x32xf32> to vector<28x32xf32>
    %16 = vector.extract_strided_slice %0 {offsets = [1, 2, 0], sizes = [1, 28, 32], strides = [1, 1, 1]} : vector<8x32x32xf32> to vector<1x28x32xf32>
    %17 = vector.shape_cast %16 : vector<1x28x32xf32> to vector<28x32xf32>
    %18 = vector.extract_strided_slice %0 {offsets = [1, 3, 0], sizes = [1, 28, 32], strides = [1, 1, 1]} : vector<8x32x32xf32> to vector<1x28x32xf32>
    %19 = vector.shape_cast %18 : vector<1x28x32xf32> to vector<28x32xf32>
    %20 = vector.extract_strided_slice %0 {offsets = [1, 4, 0], sizes = [1, 28, 32], strides = [1, 1, 1]} : vector<8x32x32xf32> to vector<1x28x32xf32>
    %21 = vector.shape_cast %20 : vector<1x28x32xf32> to vector<28x32xf32>
    %22 = tpu.concatenate %13, %15, %17, %19, %21 in 1 : vector<28x32xf32>, vector<28x32xf32>, vector<28x32xf32>, vector<28x32xf32>, vector<28x32xf32> -> vector<28x160xf32>
    %23 = vector.extract_strided_slice %0 {offsets = [2, 0, 0], sizes = [1, 28, 32], strides = [1, 1, 1]} : vector<8x32x32xf32> to vector<1x28x32xf32>
    %24 = vector.shape_cast %23 : vector<1x28x32xf32> to vector<28x32xf32>
    %25 = vector.extract_strided_slice %0 {offsets = [2, 1, 0], sizes = [1, 28, 32], strides = [1, 1, 1]} : vector<8x32x32xf32> to vector<1x28x32xf32>
    %26 = vector.shape_cast %25 : vector<1x28x32xf32> to vector<28x32xf32>
    %27 = vector.extract_strided_slice %0 {offsets = [2, 2, 0], sizes = [1, 28, 32], strides = [1, 1, 1]} : vector<8x32x32xf32> to vector<1x28x32xf32>
    %28 = vector.shape_cast %27 : vector<1x28x32xf32> to vector<28x32xf32>
    %29 = vector.extract_strided_slice %0 {offsets = [2, 3, 0], sizes = [1, 28, 32], strides = [1, 1, 1]} : vector<8x32x32xf32> to vector<1x28x32xf32>
    %30 = vector.shape_cast %29 : vector<1x28x32xf32> to vector<28x32xf32>
    %31 = vector.extract_strided_slice %0 {offsets = [2, 4, 0], sizes = [1, 28, 32], strides = [1, 1, 1]} : vector<8x32x32xf32> to vector<1x28x32xf32>
    %32 = vector.shape_cast %31 : vector<1x28x32xf32> to vector<28x32xf32>
    %33 = tpu.concatenate %24, %26, %28, %30, %32 in 1 : vector<28x32xf32>, vector<28x32xf32>, vector<28x32xf32>, vector<28x32xf32>, vector<28x32xf32> -> vector<28x160xf32>
    %34 = vector.extract_strided_slice %0 {offsets = [3, 0, 0], sizes = [1, 28, 32], strides = [1, 1, 1]} : vector<8x32x32xf32> to vector<1x28x32xf32>
    %35 = vector.shape_cast %34 : vector<1x28x32xf32> to vector<28x32xf32>
    %36 = vector.extract_strided_slice %0 {offsets = [3, 1, 0], sizes = [1, 28, 32], strides = [1, 1, 1]} : vector<8x32x32xf32> to vector<1x28x32xf32>
    %37 = vector.shape_cast %36 : vector<1x28x32xf32> to vector<28x32xf32>
    %38 = vector.extract_strided_slice %0 {offsets = [3, 2, 0], sizes = [1, 28, 32], strides = [1, 1, 1]} : vector<8x32x32xf32> to vector<1x28x32xf32>
    %39 = vector.shape_cast %38 : vector<1x28x32xf32> to vector<28x32xf32>
    %40 = vector.extract_strided_slice %0 {offsets = [3, 3, 0], sizes = [1, 28, 32], strides = [1, 1, 1]} : vector<8x32x32xf32> to vector<1x28x32xf32>
    %41 = vector.shape_cast %40 : vector<1x28x32xf32> to vector<28x32xf32>
    %42 = vector.extract_strided_slice %0 {offsets = [3, 4, 0], sizes = [1, 28, 32], strides = [1, 1, 1]} : vector<8x32x32xf32> to vector<1x28x32xf32>
    %43 = vector.shape_cast %42 : vector<1x28x32xf32> to vector<28x32xf32>
    %44 = tpu.concatenate %35, %37, %39, %41, %43 in 1 : vector<28x32xf32>, vector<28x32xf32>, vector<28x32xf32>, vector<28x32xf32>, vector<28x32xf32> -> vector<28x160xf32>
    %45 = vector.extract_strided_slice %0 {offsets = [4, 0, 0], sizes = [1, 28, 32], strides = [1, 1, 1]} : vector<8x32x32xf32> to vector<1x28x32xf32>
    %46 = vector.shape_cast %45 : vector<1x28x32xf32> to vector<28x32xf32>
    %47 = vector.extract_strided_slice %0 {offsets = [4, 1, 0], sizes = [1, 28, 32], strides = [1, 1, 1]} : vector<8x32x32xf32> to vector<1x28x32xf32>
    %48 = vector.shape_cast %47 : vector<1x28x32xf32> to vector<28x32xf32>
    %49 = vector.extract_strided_slice %0 {offsets = [4, 2, 0], sizes = [1, 28, 32], strides = [1, 1, 1]} : vector<8x32x32xf32> to vector<1x28x32xf32>
    %50 = vector.shape_cast %49 : vector<1x28x32xf32> to vector<28x32xf32>
    %51 = vector.extract_strided_slice %0 {offsets = [4, 3, 0], sizes = [1, 28, 32], strides = [1, 1, 1]} : vector<8x32x32xf32> to vector<1x28x32xf32>
    %52 = vector.shape_cast %51 : vector<1x28x32xf32> to vector<28x32xf32>
    %53 = vector.extract_strided_slice %0 {offsets = [4, 4, 0], sizes = [1, 28, 32], strides = [1, 1, 1]} : vector<8x32x32xf32> to vector<1x28x32xf32>
    %54 = vector.shape_cast %53 : vector<1x28x32xf32> to vector<28x32xf32>
    %55 = tpu.concatenate %46, %48, %50, %52, %54 in 1 : vector<28x32xf32>, vector<28x32xf32>, vector<28x32xf32>, vector<28x32xf32>, vector<28x32xf32> -> vector<28x160xf32>
    %56 = vector.extract_strided_slice %0 {offsets = [5, 0, 0], sizes = [1, 28, 32], strides = [1, 1, 1]} : vector<8x32x32xf32> to vector<1x28x32xf32>
    %57 = vector.shape_cast %56 : vector<1x28x32xf32> to vector<28x32xf32>
    %58 = vector.extract_strided_slice %0 {offsets = [5, 1, 0], sizes = [1, 28, 32], strides = [1, 1, 1]} : vector<8x32x32xf32> to vector<1x28x32xf32>
    %59 = vector.shape_cast %58 : vector<1x28x32xf32> to vector<28x32xf32>
    %60 = vector.extract_strided_slice %0 {offsets = [5, 2, 0], sizes = [1, 28, 32], strides = [1, 1, 1]} : vector<8x32x32xf32> to vector<1x28x32xf32>
    %61 = vector.shape_cast %60 : vector<1x28x32xf32> to vector<28x32xf32>
    %62 = vector.extract_strided_slice %0 {offsets = [5, 3, 0], sizes = [1, 28, 32], strides = [1, 1, 1]} : vector<8x32x32xf32> to vector<1x28x32xf32>
    %63 = vector.shape_cast %62 : vector<1x28x32xf32> to vector<28x32xf32>
    %64 = vector.extract_strided_slice %0 {offsets = [5, 4, 0], sizes = [1, 28, 32], strides = [1, 1, 1]} : vector<8x32x32xf32> to vector<1x28x32xf32>
    %65 = vector.shape_cast %64 : vector<1x28x32xf32> to vector<28x32xf32>
    %66 = tpu.concatenate %57, %59, %61, %63, %65 in 1 : vector<28x32xf32>, vector<28x32xf32>, vector<28x32xf32>, vector<28x32xf32>, vector<28x32xf32> -> vector<28x160xf32>
    %67 = vector.extract_strided_slice %0 {offsets = [6, 0, 0], sizes = [1, 28, 32], strides = [1, 1, 1]} : vector<8x32x32xf32> to vector<1x28x32xf32>
    %68 = vector.shape_cast %67 : vector<1x28x32xf32> to vector<28x32xf32>
    %69 = vector.extract_strided_slice %0 {offsets = [6, 1, 0], sizes = [1, 28, 32], strides = [1, 1, 1]} : vector<8x32x32xf32> to vector<1x28x32xf32>
    %70 = vector.shape_cast %69 : vector<1x28x32xf32> to vector<28x32xf32>
    %71 = vector.extract_strided_slice %0 {offsets = [6, 2, 0], sizes = [1, 28, 32], strides = [1, 1, 1]} : vector<8x32x32xf32> to vector<1x28x32xf32>
    %72 = vector.shape_cast %71 : vector<1x28x32xf32> to vector<28x32xf32>
    %73 = vector.extract_strided_slice %0 {offsets = [6, 3, 0], sizes = [1, 28, 32], strides = [1, 1, 1]} : vector<8x32x32xf32> to vector<1x28x32xf32>
    %74 = vector.shape_cast %73 : vector<1x28x32xf32> to vector<28x32xf32>
    %75 = vector.extract_strided_slice %0 {offsets = [6, 4, 0], sizes = [1, 28, 32], strides = [1, 1, 1]} : vector<8x32x32xf32> to vector<1x28x32xf32>
    %76 = vector.shape_cast %75 : vector<1x28x32xf32> to vector<28x32xf32>
    %77 = tpu.concatenate %68, %70, %72, %74, %76 in 1 : vector<28x32xf32>, vector<28x32xf32>, vector<28x32xf32>, vector<28x32xf32>, vector<28x32xf32> -> vector<28x160xf32>
    %78 = vector.extract_strided_slice %0 {offsets = [7, 0, 0], sizes = [1, 28, 32], strides = [1, 1, 1]} : vector<8x32x32xf32> to vector<1x28x32xf32>
    %79 = vector.shape_cast %78 : vector<1x28x32xf32> to vector<28x32xf32>
    %80 = vector.extract_strided_slice %0 {offsets = [7, 1, 0], sizes = [1, 28, 32], strides = [1, 1, 1]} : vector<8x32x32xf32> to vector<1x28x32xf32>
    %81 = vector.shape_cast %80 : vector<1x28x32xf32> to vector<28x32xf32>
    %82 = vector.extract_strided_slice %0 {offsets = [7, 2, 0], sizes = [1, 28, 32], strides = [1, 1, 1]} : vector<8x32x32xf32> to vector<1x28x32xf32>
    %83 = vector.shape_cast %82 : vector<1x28x32xf32> to vector<28x32xf32>
    %84 = vector.extract_strided_slice %0 {offsets = [7, 3, 0], sizes = [1, 28, 32], strides = [1, 1, 1]} : vector<8x32x32xf32> to vector<1x28x32xf32>
    %85 = vector.shape_cast %84 : vector<1x28x32xf32> to vector<28x32xf32>
    %86 = vector.extract_strided_slice %0 {offsets = [7, 4, 0], sizes = [1, 28, 32], strides = [1, 1, 1]} : vector<8x32x32xf32> to vector<1x28x32xf32>
    %87 = vector.shape_cast %86 : vector<1x28x32xf32> to vector<28x32xf32>
    %88 = tpu.concatenate %79, %81, %83, %85, %87 in 1 : vector<28x32xf32>, vector<28x32xf32>, vector<28x32xf32>, vector<28x32xf32>, vector<28x32xf32> -> vector<28x160xf32>
    %89 = tpu.concatenate %11, %22, %33, %44, %55, %66, %77, %88 in 0 : vector<28x160xf32>, vector<28x160xf32>, vector<28x160xf32>, vector<28x160xf32>, vector<28x160xf32>, vector<28x160xf32>, vector<28x160xf32>, vector<28x160xf32> -> vector<224x160xf32>
    %c0_2 = arith.constant 0 : index
    %c0_3 = arith.constant 0 : index
    %90 = vector.load %arg2[%c0_2, %c0_3] : memref<160x224xf32, #tpu.memory_space<vmem>>, vector<160x224xf32>
    %cst = arith.constant dense<0.000000e+00> : vector<224x224xf32>
    %91 = tpu.matmul %89, %90, %cst {dimension_numbers = #tpu.dot_dimension_numbers<[1], [0], [0], [1], [0, 0, 1, 1], [], []>} : vector<224x160xf32>, vector<160x224xf32>, vector<224x224xf32> -> vector<224x224xf32>
    %c0_4 = arith.constant 0 : index
    %c0_5 = arith.constant 0 : index
    %92 = vector.load %arg3[%c0_4, %c0_5] : memref<1x224xf32, #tpu.memory_space<vmem>>, vector<1x224xf32>
    %93 = vector.broadcast %92 : vector<1x224xf32> to vector<224x224xf32>
    %94 = arith.addf %91, %93 : vector<224x224xf32>
    %cst_6 = arith.constant 0.000000e+00 : f32
    %95 = vector.broadcast %cst_6 : f32 to vector<224x224xf32>
    %96 = arith.maximumf %94, %95 : vector<224x224xf32>
    %97 = vector.extract_strided_slice %96 {offsets = [0, 0], sizes = [223, 224], strides = [1, 1]} : vector<224x224xf32> to vector<223x224xf32>
    %98 = vector.extract_strided_slice %96 {offsets = [1, 0], sizes = [223, 224], strides = [1, 1]} : vector<224x224xf32> to vector<223x224xf32>
    %99 = arith.maximumf %97, %98 : vector<223x224xf32>
    %100 = tpu.iota {dimensions = array<i32: 0>} : vector<112x223xi32>
    %101 = tpu.iota {dimensions = array<i32: 1>} : vector<112x223xi32>
    %c2_i32 = arith.constant 2 : i32
    %102 = vector.broadcast %c2_i32 : i32 to vector<112x223xi32>
    %103 = arith.muli %102, %100 : vector<112x223xi32>
    %104 = arith.cmpi eq, %101, %103 : vector<112x223xi32>
    %105 = arith.extui %104 : vector<112x223xi1> to vector<112x223xi32>
    %106 = arith.sitofp %105 : vector<112x223xi32> to vector<112x223xf32>
    %cst_7 = arith.constant dense<0.000000e+00> : vector<112x224xf32>
    %107 = tpu.matmul %106, %99, %cst_7 {dimension_numbers = #tpu.dot_dimension_numbers<[1], [0], [0], [1], [0, 0, 1, 1], [], []>} : vector<112x223xf32>, vector<223x224xf32>, vector<112x224xf32> -> vector<112x224xf32>
    %108 = vector.extract_strided_slice %107 {offsets = [0, 0], sizes = [112, 223], strides = [1, 1]} : vector<112x224xf32> to vector<112x223xf32>
    %109 = vector.extract_strided_slice %107 {offsets = [0, 1], sizes = [112, 223], strides = [1, 1]} : vector<112x224xf32> to vector<112x223xf32>
    %110 = arith.maximumf %108, %109 : vector<112x223xf32>
    %111 = tpu.iota {dimensions = array<i32: 0>} : vector<223x112xi32>
    %112 = tpu.iota {dimensions = array<i32: 1>} : vector<223x112xi32>
    %c2_i32_8 = arith.constant 2 : i32
    %113 = vector.broadcast %c2_i32_8 : i32 to vector<223x112xi32>
    %114 = arith.muli %113, %112 : vector<223x112xi32>
    %115 = arith.cmpi eq, %111, %114 : vector<223x112xi32>
    %116 = arith.extui %115 : vector<223x112xi1> to vector<223x112xi32>
    %117 = arith.sitofp %116 : vector<223x112xi32> to vector<223x112xf32>
    %cst_9 = arith.constant dense<0.000000e+00> : vector<112x112xf32>
    %118 = tpu.matmul %110, %117, %cst_9 {dimension_numbers = #tpu.dot_dimension_numbers<[1], [0], [0], [1], [0, 0, 1, 1], [], []>} : vector<112x223xf32>, vector<223x112xf32>, vector<112x112xf32> -> vector<112x112xf32>
    %119 = vector.extract_strided_slice %118 {offsets = [0, 0], sizes = [10, 84], strides = [1, 1]} : vector<112x112xf32> to vector<10x84xf32>
    %120 = vector.extract_strided_slice %118 {offsets = [1, 0], sizes = [10, 84], strides = [1, 1]} : vector<112x112xf32> to vector<10x84xf32>
    %121 = vector.extract_strided_slice %118 {offsets = [2, 0], sizes = [10, 84], strides = [1, 1]} : vector<112x112xf32> to vector<10x84xf32>
    %122 = vector.extract_strided_slice %118 {offsets = [3, 0], sizes = [10, 84], strides = [1, 1]} : vector<112x112xf32> to vector<10x84xf32>
    %123 = vector.extract_strided_slice %118 {offsets = [4, 0], sizes = [10, 84], strides = [1, 1]} : vector<112x112xf32> to vector<10x84xf32>
    %124 = tpu.concatenate %119, %120, %121, %122, %123 in 1 : vector<10x84xf32>, vector<10x84xf32>, vector<10x84xf32>, vector<10x84xf32>, vector<10x84xf32> -> vector<10x420xf32>
    %125 = vector.extract_strided_slice %118 {offsets = [14, 0], sizes = [10, 84], strides = [1, 1]} : vector<112x112xf32> to vector<10x84xf32>
    %126 = vector.extract_strided_slice %118 {offsets = [15, 0], sizes = [10, 84], strides = [1, 1]} : vector<112x112xf32> to vector<10x84xf32>
    %127 = vector.extract_strided_slice %118 {offsets = [16, 0], sizes = [10, 84], strides = [1, 1]} : vector<112x112xf32> to vector<10x84xf32>
    %128 = vector.extract_strided_slice %118 {offsets = [17, 0], sizes = [10, 84], strides = [1, 1]} : vector<112x112xf32> to vector<10x84xf32>
    %129 = vector.extract_strided_slice %118 {offsets = [18, 0], sizes = [10, 84], strides = [1, 1]} : vector<112x112xf32> to vector<10x84xf32>
    %130 = tpu.concatenate %125, %126, %127, %128, %129 in 1 : vector<10x84xf32>, vector<10x84xf32>, vector<10x84xf32>, vector<10x84xf32>, vector<10x84xf32> -> vector<10x420xf32>
    %131 = vector.extract_strided_slice %118 {offsets = [28, 0], sizes = [10, 84], strides = [1, 1]} : vector<112x112xf32> to vector<10x84xf32>
    %132 = vector.extract_strided_slice %118 {offsets = [29, 0], sizes = [10, 84], strides = [1, 1]} : vector<112x112xf32> to vector<10x84xf32>
    %133 = vector.extract_strided_slice %118 {offsets = [30, 0], sizes = [10, 84], strides = [1, 1]} : vector<112x112xf32> to vector<10x84xf32>
    %134 = vector.extract_strided_slice %118 {offsets = [31, 0], sizes = [10, 84], strides = [1, 1]} : vector<112x112xf32> to vector<10x84xf32>
    %135 = vector.extract_strided_slice %118 {offsets = [32, 0], sizes = [10, 84], strides = [1, 1]} : vector<112x112xf32> to vector<10x84xf32>
    %136 = tpu.concatenate %131, %132, %133, %134, %135 in 1 : vector<10x84xf32>, vector<10x84xf32>, vector<10x84xf32>, vector<10x84xf32>, vector<10x84xf32> -> vector<10x420xf32>
    %137 = vector.extract_strided_slice %118 {offsets = [42, 0], sizes = [10, 84], strides = [1, 1]} : vector<112x112xf32> to vector<10x84xf32>
    %138 = vector.extract_strided_slice %118 {offsets = [43, 0], sizes = [10, 84], strides = [1, 1]} : vector<112x112xf32> to vector<10x84xf32>
    %139 = vector.extract_strided_slice %118 {offsets = [44, 0], sizes = [10, 84], strides = [1, 1]} : vector<112x112xf32> to vector<10x84xf32>
    %140 = vector.extract_strided_slice %118 {offsets = [45, 0], sizes = [10, 84], strides = [1, 1]} : vector<112x112xf32> to vector<10x84xf32>
    %141 = vector.extract_strided_slice %118 {offsets = [46, 0], sizes = [10, 84], strides = [1, 1]} : vector<112x112xf32> to vector<10x84xf32>
    %142 = tpu.concatenate %137, %138, %139, %140, %141 in 1 : vector<10x84xf32>, vector<10x84xf32>, vector<10x84xf32>, vector<10x84xf32>, vector<10x84xf32> -> vector<10x420xf32>
    %143 = vector.extract_strided_slice %118 {offsets = [56, 0], sizes = [10, 84], strides = [1, 1]} : vector<112x112xf32> to vector<10x84xf32>
    %144 = vector.extract_strided_slice %118 {offsets = [57, 0], sizes = [10, 84], strides = [1, 1]} : vector<112x112xf32> to vector<10x84xf32>
    %145 = vector.extract_strided_slice %118 {offsets = [58, 0], sizes = [10, 84], strides = [1, 1]} : vector<112x112xf32> to vector<10x84xf32>
    %146 = vector.extract_strided_slice %118 {offsets = [59, 0], sizes = [10, 84], strides = [1, 1]} : vector<112x112xf32> to vector<10x84xf32>
    %147 = vector.extract_strided_slice %118 {offsets = [60, 0], sizes = [10, 84], strides = [1, 1]} : vector<112x112xf32> to vector<10x84xf32>
    %148 = tpu.concatenate %143, %144, %145, %146, %147 in 1 : vector<10x84xf32>, vector<10x84xf32>, vector<10x84xf32>, vector<10x84xf32>, vector<10x84xf32> -> vector<10x420xf32>
    %149 = vector.extract_strided_slice %118 {offsets = [70, 0], sizes = [10, 84], strides = [1, 1]} : vector<112x112xf32> to vector<10x84xf32>
    %150 = vector.extract_strided_slice %118 {offsets = [71, 0], sizes = [10, 84], strides = [1, 1]} : vector<112x112xf32> to vector<10x84xf32>
    %151 = vector.extract_strided_slice %118 {offsets = [72, 0], sizes = [10, 84], strides = [1, 1]} : vector<112x112xf32> to vector<10x84xf32>
    %152 = vector.extract_strided_slice %118 {offsets = [73, 0], sizes = [10, 84], strides = [1, 1]} : vector<112x112xf32> to vector<10x84xf32>
    %153 = vector.extract_strided_slice %118 {offsets = [74, 0], sizes = [10, 84], strides = [1, 1]} : vector<112x112xf32> to vector<10x84xf32>
    %154 = tpu.concatenate %149, %150, %151, %152, %153 in 1 : vector<10x84xf32>, vector<10x84xf32>, vector<10x84xf32>, vector<10x84xf32>, vector<10x84xf32> -> vector<10x420xf32>
    %155 = vector.extract_strided_slice %118 {offsets = [84, 0], sizes = [10, 84], strides = [1, 1]} : vector<112x112xf32> to vector<10x84xf32>
    %156 = vector.extract_strided_slice %118 {offsets = [85, 0], sizes = [10, 84], strides = [1, 1]} : vector<112x112xf32> to vector<10x84xf32>
    %157 = vector.extract_strided_slice %118 {offsets = [86, 0], sizes = [10, 84], strides = [1, 1]} : vector<112x112xf32> to vector<10x84xf32>
    %158 = vector.extract_strided_slice %118 {offsets = [87, 0], sizes = [10, 84], strides = [1, 1]} : vector<112x112xf32> to vector<10x84xf32>
    %159 = vector.extract_strided_slice %118 {offsets = [88, 0], sizes = [10, 84], strides = [1, 1]} : vector<112x112xf32> to vector<10x84xf32>
    %160 = tpu.concatenate %155, %156, %157, %158, %159 in 1 : vector<10x84xf32>, vector<10x84xf32>, vector<10x84xf32>, vector<10x84xf32>, vector<10x84xf32> -> vector<10x420xf32>
    %161 = vector.extract_strided_slice %118 {offsets = [98, 0], sizes = [10, 84], strides = [1, 1]} : vector<112x112xf32> to vector<10x84xf32>
    %162 = vector.extract_strided_slice %118 {offsets = [99, 0], sizes = [10, 84], strides = [1, 1]} : vector<112x112xf32> to vector<10x84xf32>
    %163 = vector.extract_strided_slice %118 {offsets = [100, 0], sizes = [10, 84], strides = [1, 1]} : vector<112x112xf32> to vector<10x84xf32>
    %164 = vector.extract_strided_slice %118 {offsets = [101, 0], sizes = [10, 84], strides = [1, 1]} : vector<112x112xf32> to vector<10x84xf32>
    %165 = vector.extract_strided_slice %118 {offsets = [102, 0], sizes = [10, 84], strides = [1, 1]} : vector<112x112xf32> to vector<10x84xf32>
    %166 = tpu.concatenate %161, %162, %163, %164, %165 in 1 : vector<10x84xf32>, vector<10x84xf32>, vector<10x84xf32>, vector<10x84xf32>, vector<10x84xf32> -> vector<10x420xf32>
    %167 = tpu.concatenate %124, %130, %136, %142, %148, %154, %160, %166 in 0 : vector<10x420xf32>, vector<10x420xf32>, vector<10x420xf32>, vector<10x420xf32>, vector<10x420xf32>, vector<10x420xf32>, vector<10x420xf32>, vector<10x420xf32> -> vector<80x420xf32>
    %c0_10 = arith.constant 0 : index
    %c0_11 = arith.constant 0 : index
    %168 = vector.load %arg4[%c0_10, %c0_11] : memref<420x160xf32, #tpu.memory_space<vmem>>, vector<420x160xf32>
    %cst_12 = arith.constant dense<0.000000e+00> : vector<80x160xf32>
    %169 = tpu.matmul %167, %168, %cst_12 {dimension_numbers = #tpu.dot_dimension_numbers<[1], [0], [0], [1], [0, 0, 1, 1], [], []>} : vector<80x420xf32>, vector<420x160xf32>, vector<80x160xf32> -> vector<80x160xf32>
    %c0_13 = arith.constant 0 : index
    %c0_14 = arith.constant 0 : index
    %170 = vector.load %arg5[%c0_13, %c0_14] : memref<1x160xf32, #tpu.memory_space<vmem>>, vector<1x160xf32>
    %171 = vector.broadcast %170 : vector<1x160xf32> to vector<80x160xf32>
    %172 = arith.addf %169, %171 : vector<80x160xf32>
    %cst_15 = arith.constant 0.000000e+00 : f32
    %173 = vector.broadcast %cst_15 : f32 to vector<80x160xf32>
    %174 = arith.maximumf %172, %173 : vector<80x160xf32>
    %175 = vector.extract_strided_slice %174 {offsets = [0, 0], sizes = [79, 160], strides = [1, 1]} : vector<80x160xf32> to vector<79x160xf32>
    %176 = vector.extract_strided_slice %174 {offsets = [1, 0], sizes = [79, 160], strides = [1, 1]} : vector<80x160xf32> to vector<79x160xf32>
    %177 = arith.maximumf %175, %176 : vector<79x160xf32>
    %178 = tpu.iota {dimensions = array<i32: 0>} : vector<40x79xi32>
    %179 = tpu.iota {dimensions = array<i32: 1>} : vector<40x79xi32>
    %c2_i32_16 = arith.constant 2 : i32
    %180 = vector.broadcast %c2_i32_16 : i32 to vector<40x79xi32>
    %181 = arith.muli %180, %178 : vector<40x79xi32>
    %182 = arith.cmpi eq, %179, %181 : vector<40x79xi32>
    %183 = arith.extui %182 : vector<40x79xi1> to vector<40x79xi32>
    %184 = arith.sitofp %183 : vector<40x79xi32> to vector<40x79xf32>
    %cst_17 = arith.constant dense<0.000000e+00> : vector<40x160xf32>
    %185 = tpu.matmul %184, %177, %cst_17 {dimension_numbers = #tpu.dot_dimension_numbers<[1], [0], [0], [1], [0, 0, 1, 1], [], []>} : vector<40x79xf32>, vector<79x160xf32>, vector<40x160xf32> -> vector<40x160xf32>
    %186 = vector.extract_strided_slice %185 {offsets = [0, 0], sizes = [40, 159], strides = [1, 1]} : vector<40x160xf32> to vector<40x159xf32>
    %187 = vector.extract_strided_slice %185 {offsets = [0, 1], sizes = [40, 159], strides = [1, 1]} : vector<40x160xf32> to vector<40x159xf32>
    %188 = arith.maximumf %186, %187 : vector<40x159xf32>
    %189 = tpu.iota {dimensions = array<i32: 0>} : vector<159x80xi32>
    %190 = tpu.iota {dimensions = array<i32: 1>} : vector<159x80xi32>
    %c2_i32_18 = arith.constant 2 : i32
    %191 = vector.broadcast %c2_i32_18 : i32 to vector<159x80xi32>
    %192 = arith.muli %191, %190 : vector<159x80xi32>
    %193 = arith.cmpi eq, %189, %192 : vector<159x80xi32>
    %194 = arith.extui %193 : vector<159x80xi1> to vector<159x80xi32>
    %195 = arith.sitofp %194 : vector<159x80xi32> to vector<159x80xf32>
    %cst_19 = arith.constant dense<0.000000e+00> : vector<40x80xf32>
    %196 = tpu.matmul %188, %195, %cst_19 {dimension_numbers = #tpu.dot_dimension_numbers<[1], [0], [0], [1], [0, 0, 1, 1], [], []>} : vector<40x159xf32>, vector<159x80xf32>, vector<40x80xf32> -> vector<40x80xf32>
    %197 = vector.extract_strided_slice %196 {offsets = [0, 0], sizes = [1, 80], strides = [1, 1]} : vector<40x80xf32> to vector<1x80xf32>
    %198 = vector.extract_strided_slice %196 {offsets = [1, 0], sizes = [1, 80], strides = [1, 1]} : vector<40x80xf32> to vector<1x80xf32>
    %199 = vector.extract_strided_slice %196 {offsets = [2, 0], sizes = [1, 80], strides = [1, 1]} : vector<40x80xf32> to vector<1x80xf32>
    %200 = vector.extract_strided_slice %196 {offsets = [3, 0], sizes = [1, 80], strides = [1, 1]} : vector<40x80xf32> to vector<1x80xf32>
    %201 = vector.extract_strided_slice %196 {offsets = [4, 0], sizes = [1, 80], strides = [1, 1]} : vector<40x80xf32> to vector<1x80xf32>
    %202 = tpu.concatenate %197, %198, %199, %200, %201 in 1 : vector<1x80xf32>, vector<1x80xf32>, vector<1x80xf32>, vector<1x80xf32>, vector<1x80xf32> -> vector<1x400xf32>
    %203 = vector.extract_strided_slice %196 {offsets = [5, 0], sizes = [1, 80], strides = [1, 1]} : vector<40x80xf32> to vector<1x80xf32>
    %204 = vector.extract_strided_slice %196 {offsets = [6, 0], sizes = [1, 80], strides = [1, 1]} : vector<40x80xf32> to vector<1x80xf32>
    %205 = vector.extract_strided_slice %196 {offsets = [7, 0], sizes = [1, 80], strides = [1, 1]} : vector<40x80xf32> to vector<1x80xf32>
    %206 = vector.extract_strided_slice %196 {offsets = [8, 0], sizes = [1, 80], strides = [1, 1]} : vector<40x80xf32> to vector<1x80xf32>
    %207 = vector.extract_strided_slice %196 {offsets = [9, 0], sizes = [1, 80], strides = [1, 1]} : vector<40x80xf32> to vector<1x80xf32>
    %208 = tpu.concatenate %203, %204, %205, %206, %207 in 1 : vector<1x80xf32>, vector<1x80xf32>, vector<1x80xf32>, vector<1x80xf32>, vector<1x80xf32> -> vector<1x400xf32>
    %209 = vector.extract_strided_slice %196 {offsets = [10, 0], sizes = [1, 80], strides = [1, 1]} : vector<40x80xf32> to vector<1x80xf32>
    %210 = vector.extract_strided_slice %196 {offsets = [11, 0], sizes = [1, 80], strides = [1, 1]} : vector<40x80xf32> to vector<1x80xf32>
    %211 = vector.extract_strided_slice %196 {offsets = [12, 0], sizes = [1, 80], strides = [1, 1]} : vector<40x80xf32> to vector<1x80xf32>
    %212 = vector.extract_strided_slice %196 {offsets = [13, 0], sizes = [1, 80], strides = [1, 1]} : vector<40x80xf32> to vector<1x80xf32>
    %213 = vector.extract_strided_slice %196 {offsets = [14, 0], sizes = [1, 80], strides = [1, 1]} : vector<40x80xf32> to vector<1x80xf32>
    %214 = tpu.concatenate %209, %210, %211, %212, %213 in 1 : vector<1x80xf32>, vector<1x80xf32>, vector<1x80xf32>, vector<1x80xf32>, vector<1x80xf32> -> vector<1x400xf32>
    %215 = vector.extract_strided_slice %196 {offsets = [15, 0], sizes = [1, 80], strides = [1, 1]} : vector<40x80xf32> to vector<1x80xf32>
    %216 = vector.extract_strided_slice %196 {offsets = [16, 0], sizes = [1, 80], strides = [1, 1]} : vector<40x80xf32> to vector<1x80xf32>
    %217 = vector.extract_strided_slice %196 {offsets = [17, 0], sizes = [1, 80], strides = [1, 1]} : vector<40x80xf32> to vector<1x80xf32>
    %218 = vector.extract_strided_slice %196 {offsets = [18, 0], sizes = [1, 80], strides = [1, 1]} : vector<40x80xf32> to vector<1x80xf32>
    %219 = vector.extract_strided_slice %196 {offsets = [19, 0], sizes = [1, 80], strides = [1, 1]} : vector<40x80xf32> to vector<1x80xf32>
    %220 = tpu.concatenate %215, %216, %217, %218, %219 in 1 : vector<1x80xf32>, vector<1x80xf32>, vector<1x80xf32>, vector<1x80xf32>, vector<1x80xf32> -> vector<1x400xf32>
    %221 = vector.extract_strided_slice %196 {offsets = [20, 0], sizes = [1, 80], strides = [1, 1]} : vector<40x80xf32> to vector<1x80xf32>
    %222 = vector.extract_strided_slice %196 {offsets = [21, 0], sizes = [1, 80], strides = [1, 1]} : vector<40x80xf32> to vector<1x80xf32>
    %223 = vector.extract_strided_slice %196 {offsets = [22, 0], sizes = [1, 80], strides = [1, 1]} : vector<40x80xf32> to vector<1x80xf32>
    %224 = vector.extract_strided_slice %196 {offsets = [23, 0], sizes = [1, 80], strides = [1, 1]} : vector<40x80xf32> to vector<1x80xf32>
    %225 = vector.extract_strided_slice %196 {offsets = [24, 0], sizes = [1, 80], strides = [1, 1]} : vector<40x80xf32> to vector<1x80xf32>
    %226 = tpu.concatenate %221, %222, %223, %224, %225 in 1 : vector<1x80xf32>, vector<1x80xf32>, vector<1x80xf32>, vector<1x80xf32>, vector<1x80xf32> -> vector<1x400xf32>
    %227 = vector.extract_strided_slice %196 {offsets = [25, 0], sizes = [1, 80], strides = [1, 1]} : vector<40x80xf32> to vector<1x80xf32>
    %228 = vector.extract_strided_slice %196 {offsets = [26, 0], sizes = [1, 80], strides = [1, 1]} : vector<40x80xf32> to vector<1x80xf32>
    %229 = vector.extract_strided_slice %196 {offsets = [27, 0], sizes = [1, 80], strides = [1, 1]} : vector<40x80xf32> to vector<1x80xf32>
    %230 = vector.extract_strided_slice %196 {offsets = [28, 0], sizes = [1, 80], strides = [1, 1]} : vector<40x80xf32> to vector<1x80xf32>
    %231 = vector.extract_strided_slice %196 {offsets = [29, 0], sizes = [1, 80], strides = [1, 1]} : vector<40x80xf32> to vector<1x80xf32>
    %232 = tpu.concatenate %227, %228, %229, %230, %231 in 1 : vector<1x80xf32>, vector<1x80xf32>, vector<1x80xf32>, vector<1x80xf32>, vector<1x80xf32> -> vector<1x400xf32>
    %233 = vector.extract_strided_slice %196 {offsets = [30, 0], sizes = [1, 80], strides = [1, 1]} : vector<40x80xf32> to vector<1x80xf32>
    %234 = vector.extract_strided_slice %196 {offsets = [31, 0], sizes = [1, 80], strides = [1, 1]} : vector<40x80xf32> to vector<1x80xf32>
    %235 = vector.extract_strided_slice %196 {offsets = [32, 0], sizes = [1, 80], strides = [1, 1]} : vector<40x80xf32> to vector<1x80xf32>
    %236 = vector.extract_strided_slice %196 {offsets = [33, 0], sizes = [1, 80], strides = [1, 1]} : vector<40x80xf32> to vector<1x80xf32>
    %237 = vector.extract_strided_slice %196 {offsets = [34, 0], sizes = [1, 80], strides = [1, 1]} : vector<40x80xf32> to vector<1x80xf32>
    %238 = tpu.concatenate %233, %234, %235, %236, %237 in 1 : vector<1x80xf32>, vector<1x80xf32>, vector<1x80xf32>, vector<1x80xf32>, vector<1x80xf32> -> vector<1x400xf32>
    %239 = vector.extract_strided_slice %196 {offsets = [35, 0], sizes = [1, 80], strides = [1, 1]} : vector<40x80xf32> to vector<1x80xf32>
    %240 = vector.extract_strided_slice %196 {offsets = [36, 0], sizes = [1, 80], strides = [1, 1]} : vector<40x80xf32> to vector<1x80xf32>
    %241 = vector.extract_strided_slice %196 {offsets = [37, 0], sizes = [1, 80], strides = [1, 1]} : vector<40x80xf32> to vector<1x80xf32>
    %242 = vector.extract_strided_slice %196 {offsets = [38, 0], sizes = [1, 80], strides = [1, 1]} : vector<40x80xf32> to vector<1x80xf32>
    %243 = vector.extract_strided_slice %196 {offsets = [39, 0], sizes = [1, 80], strides = [1, 1]} : vector<40x80xf32> to vector<1x80xf32>
    %244 = tpu.concatenate %239, %240, %241, %242, %243 in 1 : vector<1x80xf32>, vector<1x80xf32>, vector<1x80xf32>, vector<1x80xf32>, vector<1x80xf32> -> vector<1x400xf32>
    %245 = tpu.concatenate %202, %208, %214, %220, %226, %232, %238, %244 in 0 : vector<1x400xf32>, vector<1x400xf32>, vector<1x400xf32>, vector<1x400xf32>, vector<1x400xf32>, vector<1x400xf32>, vector<1x400xf32>, vector<1x400xf32> -> vector<8x400xf32>
    %c0_20 = arith.constant 0 : index
    %c0_21 = arith.constant 0 : index
    %246 = vector.load %arg6[%c0_20, %c0_21] : memref<400x128xf32, #tpu.memory_space<vmem>>, vector<400x128xf32>
    %cst_22 = arith.constant dense<0.000000e+00> : vector<8x128xf32>
    %247 = tpu.matmul %245, %246, %cst_22 {dimension_numbers = #tpu.dot_dimension_numbers<[1], [0], [0], [1], [0, 0, 1, 1], [], []>} : vector<8x400xf32>, vector<400x128xf32>, vector<8x128xf32> -> vector<8x128xf32>
    %c0_23 = arith.constant 0 : index
    %c0_24 = arith.constant 0 : index
    %248 = vector.load %arg7[%c0_23, %c0_24] : memref<1x128xf32, #tpu.memory_space<vmem>>, vector<1x128xf32>
    %249 = vector.broadcast %248 : vector<1x128xf32> to vector<8x128xf32>
    %250 = arith.addf %247, %249 : vector<8x128xf32>
    %cst_25 = arith.constant 0.000000e+00 : f32
    %251 = vector.broadcast %cst_25 : f32 to vector<8x128xf32>
    %252 = arith.maximumf %250, %251 : vector<8x128xf32>
    %c0_26 = arith.constant 0 : index
    %c0_27 = arith.constant 0 : index
    %253 = vector.load %arg8[%c0_26, %c0_27] : memref<128x128xf32, #tpu.memory_space<vmem>>, vector<128x128xf32>
    %cst_28 = arith.constant dense<0.000000e+00> : vector<8x128xf32>
    %254 = tpu.matmul %252, %253, %cst_28 {dimension_numbers = #tpu.dot_dimension_numbers<[1], [0], [0], [1], [0, 0, 1, 1], [], []>} : vector<8x128xf32>, vector<128x128xf32>, vector<8x128xf32> -> vector<8x128xf32>
    %c0_29 = arith.constant 0 : index
    %c0_30 = arith.constant 0 : index
    %255 = vector.load %arg9[%c0_29, %c0_30] : memref<1x128xf32, #tpu.memory_space<vmem>>, vector<1x128xf32>
    %256 = vector.broadcast %255 : vector<1x128xf32> to vector<8x128xf32>
    %257 = arith.addf %254, %256 : vector<8x128xf32>
    %cst_31 = arith.constant 0.000000e+00 : f32
    %258 = vector.broadcast %cst_31 : f32 to vector<8x128xf32>
    %259 = arith.maximumf %257, %258 : vector<8x128xf32>
    %c0_32 = arith.constant 0 : index
    %c0_33 = arith.constant 0 : index
    %260 = vector.load %arg10[%c0_32, %c0_33] : memref<128x128xf32, #tpu.memory_space<vmem>>, vector<128x128xf32>
    %cst_34 = arith.constant dense<0.000000e+00> : vector<8x128xf32>
    %261 = tpu.matmul %259, %260, %cst_34 {dimension_numbers = #tpu.dot_dimension_numbers<[1], [0], [0], [1], [0, 0, 1, 1], [], []>} : vector<8x128xf32>, vector<128x128xf32>, vector<8x128xf32> -> vector<8x128xf32>
    %c0_35 = arith.constant 0 : index
    %c0_36 = arith.constant 0 : index
    %262 = vector.load %arg11[%c0_35, %c0_36] : memref<1x128xf32, #tpu.memory_space<vmem>>, vector<1x128xf32>
    %263 = vector.broadcast %262 : vector<1x128xf32> to vector<8x128xf32>
    %264 = arith.addf %261, %263 : vector<8x128xf32>
    %c0_37 = arith.constant 0 : index
    %c0_38 = arith.constant 0 : index
    %265 = vector.load %arg12[%c0_37, %c0_38] : memref<8x128xf32, #tpu.memory_space<vmem>>, vector<8x128xf32>
    tpu.vector_store %arg12[%c0_37, %c0_38], %264 {strides = array<i32>} : memref<8x128xf32, #tpu.memory_space<vmem>>, vector<8x128xf32>,
    return
  }
  func.func @transform_0(%arg0: i32) -> (i32, i32, i32) {
    %c0_i32 = arith.constant 0 : i32
    %c0_i32_0 = arith.constant 0 : i32
    %c0_i32_1 = arith.constant 0 : i32
    return %arg0, %c0_i32, %c0_i32_0 : i32, i32, i32
  }
  func.func @transform_1(%arg0: i32) -> (i32, i32) {
    %c0_i32 = arith.constant 0 : i32
    %c0_i32_0 = arith.constant 0 : i32
    %c0_i32_1 = arith.constant 0 : i32
    return %c0_i32, %c0_i32_0 : i32, i32
  }
  func.func @transform_2(%arg0: i32) -> (i32, i32) {
    %c0_i32 = arith.constant 0 : i32
    %c0_i32_0 = arith.constant 0 : i32
    %c0_i32_1 = arith.constant 0 : i32
    return %c0_i32, %c0_i32_0 : i32, i32
  }
  func.func @transform_3(%arg0: i32) -> (i32, i32) {
    %c0_i32 = arith.constant 0 : i32
    %c0_i32_0 = arith.constant 0 : i32
    %c0_i32_1 = arith.constant 0 : i32
    return %c0_i32, %c0_i32_0 : i32, i32
  }
  func.func @transform_4(%arg0: i32) -> (i32, i32) {
    %c0_i32 = arith.constant 0 : i32
    %c0_i32_0 = arith.constant 0 : i32
    %c0_i32_1 = arith.constant 0 : i32
    return %c0_i32, %c0_i32_0 : i32, i32
  }
  func.func @transform_5(%arg0: i32) -> (i32, i32) {
    %c0_i32 = arith.constant 0 : i32
    %c0_i32_0 = arith.constant 0 : i32
    %c0_i32_1 = arith.constant 0 : i32
    return %c0_i32, %c0_i32_0 : i32, i32
  }
  func.func @transform_6(%arg0: i32) -> (i32, i32) {
    %c0_i32 = arith.constant 0 : i32
    %c0_i32_0 = arith.constant 0 : i32
    %c0_i32_1 = arith.constant 0 : i32
    return %c0_i32, %c0_i32_0 : i32, i32
  }
  func.func @transform_7(%arg0: i32) -> (i32, i32) {
    %c0_i32 = arith.constant 0 : i32
    %c0_i32_0 = arith.constant 0 : i32
    %c0_i32_1 = arith.constant 0 : i32
    return %c0_i32, %c0_i32_0 : i32, i32
  }
  func.func @transform_8(%arg0: i32) -> (i32, i32) {
    %c0_i32 = arith.constant 0 : i32
    %c0_i32_0 = arith.constant 0 : i32
    %c0_i32_1 = arith.constant 0 : i32
    return %c0_i32, %c0_i32_0 : i32, i32
  }
  func.func @transform_9(%arg0: i32) -> (i32, i32) {
    %c0_i32 = arith.constant 0 : i32
    %c0_i32_0 = arith.constant 0 : i32
    %c0_i32_1 = arith.constant 0 : i32
    return %c0_i32, %c0_i32_0 : i32, i32
  }
  func.func @transform_10(%arg0: i32) -> (i32, i32) {
    %c0_i32 = arith.constant 0 : i32
    %c0_i32_0 = arith.constant 0 : i32
    %c0_i32_1 = arith.constant 0 : i32
    return %c0_i32, %c0_i32_0 : i32, i32
  }
  func.func @transform_11(%arg0: i32) -> (i32, i32) {
    %c0_i32 = arith.constant 0 : i32
    %c0_i32_0 = arith.constant 0 : i32
    return %arg0, %c0_i32 : i32, i32
  }
}

</mosaic_0001>

<bundles_post_ra>
// kernel: tpu_custom_call.1
= control target key start
LH: loop header
LB: loop body
LE: loop exit
PB: predicated region body
PF: predicated region fallthrough
CT: control target
= control target key end

     0   :  { %s9368_s0 = inlined_call_operand.vmem [shape: f32[16,32,32], index: 0, kind: input, shape index: {}]   ;;  %s9369_s1 = inlined_call_operand.vmem [shape: f32[160,224], index: 1, kind: input, shape index: {}]   ;;  %s9370_s2 = inlined_call_operand.hbm [shape: f32[1,224], index: 2, kind: input, shape index: {}]   ;;  %s9371_s3 = inlined_call_operand.vmem [shape: f32[420,160], index: 3, kind: input, shape index: {}]   ;;  %s9372_s4 = inlined_call_operand.hbm [shape: f32[1,160], index: 4, kind: input, shape index: {}]   ;;  %s9373_s5 = inlined_call_operand.vmem [shape: f32[400,128], index: 5, kind: input, shape index: {}]   ;;  %s9374_s6 = inlined_call_operand.hbm [shape: f32[1,128], index: 6, kind: input, shape index: {}]   ;;  %s9375_s7 = inlined_call_operand.vmem [shape: f32[128,128], index: 7, kind: input, shape index: {}]   ;;  %s9376_s8 = inlined_call_operand.hbm [shape: f32[1,128], index: 8, kind: input, shape index: {}]   ;;  %s9377_s9 = inlined_call_operand.vmem [shape: f32[128,128], index: 9, kind: input, shape index: {}]   ;;  %s9378_s10 = inlined_call_operand.hbm [shape: f32[1,128], index: 10, kind: input, shape index: {}]   ;;  %s9379_s11 = inlined_call_operand.hbm [shape: f32[16,128], index: 11, kind: output, shape index: {}]  }
   0x1   :  { %9428 = sst [smem:[#allocation27_spill]] %s9370_s2 }
   0x2   :  { %9429 = sst [smem:[#allocation28_spill]] %s9372_s4 }
   0x3   :  { %9430 = sst [smem:[#allocation29_spill]] %s9376_s8 }
   0x4   :  { %16 = vsyncpa [#allocation3], 0 }
   0x5   :  { %17 = vsyncpa [#allocation6], 0 }
   0x6   :  { %18 = vsyncpa [#allocation9], 0 }
   0x7   :  { %19 = vsyncpa [#allocation4], 0 }
   0x8   :  { %21 = vsyncpa [#allocation4 + $0x1], 0  ;;  %s5856_s17 = smov 0   ;;  %s5858_s18 = smov 0  }
   0x9   :  { %s5860_s19 = smov 0   ;;  %s5862_s20 = smov 0  }
   0xa LB: > { %9431 = sst [smem:[#allocation16_spill]] %s5774_s19  ;;  %s5877_s21 = sadd.s32 4294967295, %s5778_s20   ;;  %s5778_s20 = sphi %s5862_s20, %s9539_s20   ;;  %s5774_s19 = sphi %s5860_s19, %s9541_s19   ;;  %s5770_s18 = sphi %s5858_s18, %s9543_s18   ;;  %s5766_s17 = sphi %s5856_s17, %s9542_s17  }
   0xb   : > { %s4795_s22 = sadd.s32 4294967294, %s5778_s20   ;;  %s5881_s23 = sadd.s32 1, %s5778_s20  }
   0xc   : > { %9432 = sst [smem:[#allocation17_spill]] %s5881_s23  ;;  %s270_s24 = sadd.s32 1, %s5774_s19 }
   0xd   : > { %s267_s25 = ssub.s32 %s5778_s20, %s5881_s23  ;;  %p280_p0 = scmp.ne.s32.totalorder %s5774_s19, %s5770_s18 }
   0xe   : > { %p268_p1 = scmp.eq.s32.totalorder %s267_s25, 0  ;;  %p281_p2 = scmp.eq.s32.totalorder %s5877_s21, 1 }
   0xf   : > { %p286_p3 = scmp.ne.s32.totalorder %s5770_s18, %s5766_s17  ;;  %p287_p4 = scmp.eq.s32.totalorder %s4795_s22, 1 }
  0x10   : > { %s5892_s26 = scalar_select %p268_p1, %s5774_s19, %s270_s24  }
  0x11   : > { %p5894_p5 = por %p281_p2, %p280_p0  ;;  %p5898_p6 = por %p287_p4, %p286_p3 }
  0x12   : > { %9433 = sst [smem:[#allocation18_spill]] %s5892_s26  ;;  %p4796_p7 = scmp.ge.s32.totalorder %s5778_s20, 1 }
  0x13   : > { %p294_p8 = scmp.lt.s32.totalorder %s5778_s20, 3  ;;  %p5132_p9 = scmp.eq.s32.totalorder %s5877_s21, 0 }
  0x14   : > { %s9437_s4 = sld [smem:[#allocation28_spill]]  ;;  %s5780_s14 = smov [#allocation5]  }
  0x15   : > { %p5905_p10 = pnand %p4796_p7, %p294_p8  ;;  %s326_s15 = sshll.u32 %s5780_s14, 4  ;;  %s327_s15 = int_to_ptr.vmem [resolvable:$true] %s326_s15 }
  0x16   : > { %s9438_s8 = sld [smem:[#allocation29_spill]]  ;;  %s5781_s26 = smov [#allocation8]  }
  0x17   : > { %p5112_p11 = pneg %p5905_p10  ;;  %s9440_s2 = sld [smem:[#allocation27_spill]] }
  0x18   : > { %s356_s14 = sshll.u32 %s5781_s26, 4  ;;  %s5782_s19 = smov [#allocation2]   ;;  %s357_s14 = int_to_ptr.vmem [resolvable:$true] %s356_s14 }
  0x19   : > { %p5919_p12 = pnand %p5132_p9, %p5112_p11  ;;  %s311_s23 = sshll.u32 %s5782_s19, 4  ;;  %s312_s23 = int_to_ptr.vmem [resolvable:$true] %s311_s23 }
  0x1a   : > { %s324_s13 = sshll.u32 %s9437_s4, 4  ;;  %s5783_s30 = smov [#allocation7]   ;;  %s325_s13 = int_to_ptr.hbm [resolvable:$true] %s324_s13 }
  0x1b   : > { %5118 = dma.hbm_to_vmem [thread:$0]  (!%p5919_p12), %s325_s13, 32, %s327_s15, [#allocation6]  }
  0x1c   : > { %s354_s24 = sshll.u32 %s9438_s8, 4  ;;  %s339_s8 = sshll.u32 %s9374_s6, 4  ;;  %s355_s24 = int_to_ptr.hbm [resolvable:$true] %s354_s24  ;;  %s340_s8 = int_to_ptr.hbm [resolvable:$true] %s339_s8 }
  0x1d   : > { %s309_s4 = sshll.u32 %s9440_s2, 4  ;;  %s341_s12 = sshll.u32 %s5783_s30, 4  ;;  %s310_s4 = int_to_ptr.hbm [resolvable:$true] %s309_s4  ;;  %s342_s12 = int_to_ptr.vmem [resolvable:$true] %s341_s12 }
  0x1e   : > { %5124 = dma.hbm_to_vmem [thread:$0]  (!%p5919_p12), %s355_s24, 16, %s357_s14, [#allocation9]  }
  0x1f   : > { %5115 = dma.hbm_to_vmem [thread:$0]  (!%p5919_p12), %s310_s4, 32, %s312_s23, [#allocation3]  }
  0x20   : > { %s369_s13 = sshll.u32 %s9378_s10, 4  ;;  %s5784_s15 = smov [#allocation10]   ;;  %s370_s13 = int_to_ptr.hbm [resolvable:$true] %s369_s13 }
  0x21   : > { %5121 = dma.hbm_to_vmem [thread:$0]  (!%p5919_p12), %s340_s8, 16, %s342_s12, [#allocation6]  }
  0x22   : > { %s371_s24 = sshll.u32 %s5784_s15, 4  ;;  %394 = sbr.rel (%p5905_p10) target bundleno = 2473 (0x9a9), region = 64  ;;  %s372_s24 = int_to_ptr.vmem [resolvable:$true] %s371_s24 }
  0x23   : > { %5127 = dma.hbm_to_vmem [thread:$0]  (!%p5919_p12), %s370_s13, 16, %s372_s24, [#allocation9]  }
  0x27   : > { %5749 = dma.done.wait (%p5132_p9), [#allocation3], 32  }
  0x28   : > { %5751 = vsyncadd (%p5132_p9), [#allocation3], 4294967264 }
  0x29   : > { %5753 = dma.done.wait (%p5132_p9), [#allocation6], 48  }
  0x2a   : > { %5755 = vsyncadd (%p5132_p9), [#allocation6], 4294967248 }
  0x2b   : > { %5757 = dma.done.wait (%p5132_p9), [#allocation9], 32  }
  0x2c   : > { %5759 = vsyncadd (%p5132_p9), [#allocation9], 4294967264  ;;  %s5957_s2 = sshll.u32 %s5877_s21, 3  ;;  %vm499_vm0 = vcmask 1046528   ;;  %vm9412_vm1 = vcmask 1044480   ;;  %vm9426_vm2 = vcmask 1045504  }
  0x2d   : > { %p457_p13 = scmp.lt.s32.totalorder %s5957_s2, 15  ;;  %s5785_s21 = smov 32   ;;  %vm9427_vm3 = vcmask 1043456   ;;  %vm9391_vm4 = vcmask 261120   ;;  %vm9390_vm5 = vcmask 523264   ;;  %vm578_vm6 = vcmask 785408  }
  0x2e   : > { %s5786_s25 = smov 96   ;;  %s5787_s14 = smov 64   ;;  %vm2206_vm11 = vcmask 777216  }
  0x2f   : > { %s458_s4 = scalar_select %p457_p13, %s5957_s2, 15 }
  0x30   : > { %s453_s19 = sand.u32 1, %s5770_s18   ;;  %s4681_s16 = scalar_lea.hbm %s9379_s11, %s5957_s2 }
  0x31   : > { %s5089_s8 = sshll.u32 %s458_s4, 5  ;;  %s5792_s4 = smov 124  }
  0x32   : > { %s5964_s29 = scalar_lea.vmem %s9368_s0, %s5089_s8  ;;  %s5793_s8 = smov 84  }
  0x33   : > { %v5967_v0 = vld [vmem:[%s5964_s29] sm:$0xff]  ;;  %v5970_v1 = vld [vmem:[%s5964_s29 + $0x8] sm:$0xff]  ;;  %v5973_v2 = vld [vmem:[%s5964_s29 + $0x10] sm:$0xff]  ;;  %s4809_s23 = sshll.u32 %s453_s19, 3  ;;  %s4685_s12 = sshll.u32 %s4681_s16, 4  ;;  %s4686_s12 = int_to_ptr.hbm [resolvable:$true] %s4685_s12 }
  0x34   : > { %v500_v3 = vrot.slane %v5967_v0, 1  ;;  %v501_v4 = vrot.slane %v5970_v1, 1  ;;  %v503_v5 = vrot.slane %v5973_v2, 1  ;;  %v540_v6 = vrot.slane %v5967_v0, 3  ;;  %v5980_v7 = vld [vmem:[%s5964_s29 + $0x18] sm:$0xff]  ;;  %v5986_v11 = vld [vmem:[%s5964_s29 + $0x20] sm:$0xff] }
  0x35   : > { %v541_v8 = vrot.slane %v5970_v1, 3  ;;  %v543_v9 = vrot.slane %v5973_v2, 3  ;;  %v520_v10 = vrot.slane %v5967_v0, 2  ;;  %v521_v14 = vrot.slane %v5970_v1, 2  ;;  %v5993_v16 = vld [vmem:[%s5964_s29 + $0x28] sm:$0xff]  ;;  %v6010_v31 = vld [vmem:[%s5964_s29 + $0x30] sm:$0xff] }
  0x36   : > { %v502_v12 = vsel %vm499_vm0, %v500_v3, %v501_v4  ;;  %v504_v13 = vsel %vm499_vm0, %v501_v4, %v503_v5  ;;  %v523_v15 = vrot.slane %v5973_v2, 2  ;;  %v505_v20 = vrot.slane %v5980_v7, 1  ;;  %v6027_v46 = vld [vmem:[%s5964_s29 + $0x38] sm:$0xff]  ;;  %v6039_v57 = vld [vmem:[%s5964_s29 + $0x40] sm:$0xff]  ;;  %v6042_v58 = vld [vmem:[%s5964_s29 + $0x48] sm:$0xff]  ;;  %s455_s22 = scalar_lea.vmem [#allocation11], %s4809_s23 }
  0x37   : > { %v5191_v17 = vpack.i.bf16 %v504_v13, %v502_v12  ;;  %v542_v18 = vsel %vm9412_vm1, %v540_v6, %v541_v8  ;;  %v544_v19 = vsel %vm9412_vm1, %v541_v8, %v543_v9  ;;  %v587_v22 = vrot.slane %v5986_v11, 1  ;;  %v6045_v59 = vld [vmem:[%s5964_s29 + $0x50] sm:$0xff]  ;;  %s4683_s30 = sshll.u32 %s455_s22, 4  ;;  %s4671_s26 = scalar_lea.sflag [#allocation4], %s453_s19  ;;  %s4684_s30 = int_to_ptr.vmem [resolvable:$true] %s4683_s30 }
  0x38   : > { %v5201_v21 = vpack.i.bf16 %v544_v19, %v542_v18  ;;  %v588_v23 = vrot.slane %v5993_v16, 1  ;;  %v525_v24 = vrot.slane %v5980_v7, 2  ;;  %v522_v25 = vsel %vm9426_vm2, %v520_v10, %v521_v14  ;;  %v6058_v10 = vld [vmem:[%s5964_s29 + $0x58] sm:$0xff]  ;;  %s5718_s13 = sshra.s32 %s4686_s12, 4  ;;  %s5724_s2 = scalar_lea.hbm %s9379_s11, 16  ;;  %s5719_s13 = int_to_ptr.hbm [resolvable:$true] %s5718_s13 }
  0x39   : > { %5192 = vrot.lane.b32.xlu0 %v5191_v17, %s5785_s21  ;;  %v524_v26 = vsel %vm9426_vm2, %v521_v14, %v523_v15  ;;  %v607_v27 = vrot.slane %v5993_v16, 2  ;;  %v606_v28 = vrot.slane %v5986_v11, 2  ;;  %v506_v29 = vsel %vm499_vm0, %v503_v5, %v505_v20  ;;  %v6064_v14 = vld [vmem:[%s5964_s29 + $0x60] sm:$0xff]  ;;  %v1277_v17 = vld [vmem:[%s9369_s1 + $0xf8] sm:$0xff]  ;;  %p5725_p3 = scmp.lt.s32.totalorder %s5719_s13, %s9379_s11 }
  0x3a   : > { %5202 = vrot.lane.b32.xlu1 %v5201_v21, %s5786_s25  ;;  %v589_v30 = vsel %vm499_vm0, %v587_v22, %v588_v23  ;;  %v526_v32 = vsel %vm9426_vm2, %v523_v15, %v525_v24  ;;  %v5196_v34 = vpack.i.bf16 %v524_v26, %v522_v25  ;;  %v590_v37 = vrot.slane %v6010_v31, 1  ;;  %v1276_v15 = vld [vmem:[%s9369_s1 + $0xf0] sm:$0xff]  ;;  %v6075_v21 = vld [vmem:[%s5964_s29 + $0x68] sm:$0xff]  ;;  %1554 = vmatpush.msra.mxu2 %v1277_v17  ;;  %v1274_v22 = vld [vmem:[%s9369_s1 + $0xe0] sm:$0xff] }
  0x3b   : > { %v608_v33 = vsel %vm9426_vm2, %v606_v28, %v607_v27  ;;  %v5206_v36 = vpack.i.bf16 %v589_v30, %v506_v29  ;;  %v545_v38 = vrot.slane %v5980_v7, 3  ;;  %v625_v39 = vrot.slane %v5986_v11, 3  ;;  %1352 = vmatpush.msra.mxu0 %v1276_v15  ;;  %v1273_v29 = vld [vmem:[%s9369_s1 + $0xd8] sm:$0xff]  ;;  %v1258_v15 = vld [vmem:[%s9369_s1 + $0x60] sm:$0xff] }
  0x3c   : > { %v5211_v35 = vpack.i.bf16 %v608_v33, %v526_v32  ;;  %v609_v40 = vrot.slane %v6010_v31, 2  ;;  %v626_v41 = vrot.slane %v5993_v16, 3  ;;  %v591_v44 = vsel %vm499_vm0, %v588_v23, %v590_v37  ;;  %v1275_v23 = vld [vmem:[%s9369_s1 + $0xe8] sm:$0xff] }
  0x3d   : > { %v546_v42 = vsel %vm9412_vm1, %v543_v9, %v545_v38  ;;  %v628_v48 = vrot.slane %v6010_v31, 3  ;;  %v5221_v49 = vpack.i.bf16 %v591_v44, %v505_v20  ;;  %v592_v51 = vrot.slane %v6027_v46, 1  ;;  %1353 = vmatpush.msra.mxu0 %v1274_v22  ;;  %1555 = vmatpush.msra.mxu2 %v1275_v23 }
  0x3e   : > { %5212 = vrot.lane.b32.xlu2 %v5211_v35, %s5787_s14  ;;  %v627_v43 = vsel %vm9412_vm1, %v625_v39, %v626_v41  ;;  %v610_v45 = vsel %vm9426_vm2, %v607_v27, %v609_v40  ;;  %v611_v52 = vrot.slane %v6027_v46, 2  ;;  %v630_v60 = vrot.slane %v6027_v46, 3  ;;  %v1272_v27 = vld [vmem:[%s9369_s1 + $0xd0] sm:$0xff]  ;;  %v1270_v35 = vld [vmem:[%s9369_s1 + $0xc0] sm:$0xff]  ;;  %v1271_v39 = vld [vmem:[%s9369_s1 + $0xc8] sm:$0xff] }
  0x3f   : > { %v5216_v47 = vpack.i.bf16 %v627_v43, %v546_v42  ;;  %v5226_v50 = vpack.i.bf16 %v610_v45, %v525_v24  ;;  %v629_v53 = vsel %vm9412_vm1, %v626_v41, %v628_v48  ;;  %v593_v54 = vsel %vm499_vm0, %v590_v37, %v592_v51  ;;  %1354 = vmatpush.msra.mxu0 %v1272_v27  ;;  %v1268_v42 = vld [vmem:[%s9369_s1 + $0xb0] sm:$0xff]  ;;  %v1269_v43 = vld [vmem:[%s9369_s1 + $0xb8] sm:$0xff] }
  0x40   : > { %v612_v55 = vsel %vm9426_vm2, %v609_v40, %v611_v52  ;;  %v5231_v56 = vpack.i.bf16 %v629_v53, %v545_v38  ;;  %v5236_v61 = vpack.i.bf16 %v592_v51, %v593_v54  ;;  %v667_v63 = vrot.slane %v6039_v57, 1  ;;  %1556 = vmatpush.msra.mxu2 %v1273_v29 }
  0x41   : > { %5197 = vrot.lane.b32.xlu0 %v5196_v34, %s5787_s14  ;;  %v5241_v62 = vpack.i.bf16 %v611_v52, %v612_v55  ;;  %v668_v3 = vrot.slane %v6042_v58, 1  ;;  %v670_v4 = vrot.slane %v6045_v59, 1  ;;  %v686_v5 = vrot.slane %v6039_v57, 2  ;;  %1355 = vmatpush.msra.mxu0 %v1270_v35  ;;  %v1267_v52 = vld [vmem:[%s9369_s1 + $0xa8] sm:$0xff] }
  0x42   : > { %5207 = vrot.lane.b32.xlu1 %v5206_v36, %s5785_s21  ;;  %v687_v6 = vrot.slane %v6042_v58, 2  ;;  %v689_v8 = vrot.slane %v6045_v59, 2  ;;  %v631_v9 = vsel %vm9412_vm1, %v628_v48, %v630_v60  ;;  %v705_v24 = vrot.slane %v6039_v57, 3  ;;  %1557 = vmatpush.msra.mxu2 %v1271_v39  ;;  %v6189_v39 = vld [vmem:[%s5964_s29 + $0x90] sm:$0xff] }
  0x43   : > { %v669_v12 = vsel %vm499_vm0, %v667_v63, %v668_v3  ;;  %v671_v13 = vsel %vm499_vm0, %v668_v3, %v670_v4  ;;  %v5246_v18 = vpack.i.bf16 %v630_v60, %v631_v9  ;;  %v706_v25 = vrot.slane %v6042_v58, 3  ;;  %1356 = vmatpush.msra.mxu0 %v1268_v42  ;;  %v1262_v3 = vld [vmem:[%s9369_s1 + $0x80] sm:$0xff]  ;;  %v1260_v9 = vld [vmem:[%s9369_s1 + $0x70] sm:$0xff] }
  0x44   : > { %v688_v19 = vsel %vm9426_vm2, %v686_v5, %v687_v6  ;;  %v690_v20 = vsel %vm9426_vm2, %v687_v6, %v689_v8  ;;  %v708_v26 = vrot.slane %v6045_v59, 3  ;;  %v5251_v28 = vpack.i.bf16 %v671_v13, %v669_v12  ;;  %1558 = vmatpush.msra.mxu2 %v1269_v43  ;;  %v1263_v5 = vld [vmem:[%s9369_s1 + $0x88] sm:$0xff]  ;;  %v1261_v12 = vld [vmem:[%s9369_s1 + $0x78] sm:$0xff] }
  0x45   : > { %v5256_v30 = vpack.i.bf16 %v690_v20, %v688_v19  ;;  %v672_v32 = vrot.slane %v6058_v10, 1  ;;  %v748_v33 = vrot.slane %v6064_v14, 1  ;;  %v749_v34 = vrot.slane %v6075_v21, 1  ;;  %v1259_v20 = vld [vmem:[%s9369_s1 + $0x68] sm:$0xff] }
  0x46   : > { %5217 = vrot.lane.b32.xlu2 %v5216_v47, %s5786_s25  ;;  %v691_v36 = vrot.slane %v6058_v10, 2  ;;  %v767_v37 = vrot.slane %v6064_v14, 2  ;;  %v768_v38 = vrot.slane %v6075_v21, 2  ;;  %v707_v40 = vsel %vm9412_vm1, %v705_v24, %v706_v25  ;;  %v1266_v47 = vld [vmem:[%s9369_s1 + $0xa0] sm:$0xff]  ;;  %1559 = vmatpush.msra.mxu2 %v1267_v52 }
  0x47   : > { %v709_v41 = vsel %vm9412_vm1, %v706_v25, %v708_v26  ;;  %v673_v44 = vsel %vm499_vm0, %v670_v4, %v672_v32  ;;  %v750_v45 = vsel %vm499_vm0, %v748_v33, %v749_v34  ;;  %v710_v53 = vrot.slane %v6058_v10, 3  ;;  %1357 = vmatpush.msra.mxu0 %v1266_v47  ;;  %v1256_v47 = vld [vmem:[%s9369_s1 + $0x50] sm:$0xff]  ;;  %v1254_v52 = vld [vmem:[%s9369_s1 + $0x40] sm:$0xff] }
  0x48   : > { %v692_v48 = vsel %vm9426_vm2, %v689_v8, %v691_v36  ;;  %v5261_v51 = vpack.i.bf16 %v709_v41, %v707_v40  ;;  %v786_v54 = vrot.slane %v6064_v14, 3  ;;  %v787_v55 = vrot.slane %v6075_v21, 3 }
  0x49   : > { %5222 = vrot.lane.b32.xlu0 %v5221_v49, %s5785_s21  ;;  %v769_v49 = vsel %vm9426_vm2, %v767_v37, %v768_v38  ;;  %v5266_v60 = vpack.i.bf16 %v750_v45, %v673_v44  ;;  %v711_v6 = vsel %vm9412_vm1, %v708_v26, %v710_v53  ;;  %v6183_v37 = vld [vmem:[%s5964_s29 + $0x80] sm:$0xff]  ;;  %v831_v42 = vrot.slane %v6189_v39, 1 }
  0x4a   : > { %5227 = vrot.lane.b32.xlu1 %v5226_v50, %s5787_s14  ;;  %v6123_v50 = vld [vmem:[%s5964_s29 + $0x70] sm:$0xff]  ;;  %v788_v8 = vsel %vm9412_vm1, %v786_v54, %v787_v55  ;;  %v828_v40 = vrot.slane %v6183_v37, 1  ;;  %v847_v43 = vrot.slane %v6183_v37, 2  ;;  %v850_v45 = vrot.slane %v6189_v39, 2 }
  0x4b   : > { %v751_v63 = vrot.slane %v6123_v50, 1  ;;  %v770_v4 = vrot.slane %v6123_v50, 2  ;;  %v5276_v19 = vpack.i.bf16 %v788_v8, %v711_v6  ;;  %v789_v22 = vrot.slane %v6123_v50, 3  ;;  %v6234_v6 = vld [vmem:[%s5964_s29 + $0x98] sm:$0xff]  ;;  %v6237_v8 = vld [vmem:[%s5964_s29 + $0xa0] sm:$0xff] }
  0x4d   : > { %v752_v13 = vsel %vm499_vm0, %v749_v34, %v751_v63  ;;  %v771_v17 = vsel %vm9426_vm2, %v768_v38, %v770_v4  ;;  %v790_v27 = vsel %vm9412_vm1, %v787_v55, %v789_v22  ;;  %v6186_v38 = vld [vmem:[%s5964_s29 + $0x88] sm:$0xff] }
  0x4e   : > { %5232 = vrot.lane.b32.xlu2 %v5231_v56, %s5786_s25  ;;  %v1264_v56 = vld [vmem:[%s9369_s1 + $0x90] sm:$0xff]  ;;  %v5281_v23 = vpack.i.bf16 %v752_v13, %v672_v32  ;;  %v5286_v24 = vpack.i.bf16 %v771_v17, %v691_v36  ;;  %v829_v41 = vrot.slane %v6186_v38, 1  ;;  %v848_v44 = vrot.slane %v6186_v38, 2 }
  0x4f   : > { %1358 = vmatpush.msra.mxu0 %v1264_v56  ;;  %v909_v13 = vrot.slane %v6237_v8, 1  ;;  %v852_v17 = vrot.slane %v6234_v6, 2 }
  0x50   : > { %v849_v55 = vsel %vm9426_vm2, %v847_v43, %v848_v44  ;;  %v851_v56 = vsel %vm9426_vm2, %v848_v44, %v850_v45  ;;  %v1279_v43 = vld [vmem:[%s9369_s1 + $0x108] sm:$0xff] }
  0x51   : > { %5237 = vrot.lane.b32.xlu0 %v5236_v61, %s5785_s21  ;;  %v1265_v61 = vld [vmem:[%s9369_s1 + $0x98] sm:$0xff]  ;;  %1359 = vmatpush.msra.mxu0 %v1262_v3 }
  0x52   : > { %5242 = vrot.lane.b32.xlu1 %v5241_v62, %s5787_s14  ;;  %v5271_v62 = vpack.i.bf16 %v769_v49, %v692_v48  ;;  %1560 = vmatpush.msra.mxu2 %v1265_v61  ;;  %v1257_v48 = vld [vmem:[%s9369_s1 + $0x58] sm:$0xff]  ;;  %v830_v49 = vsel %vm499_vm0, %v828_v40, %v829_v41  ;;  %v1252_v61 = vld [vmem:[%s9369_s1 + $0x30] sm:$0xff]  ;;  %v560_v40 = vrot.slane %v5967_v0, 4 }
  0x53   : > { %1360 = vmatpush.msra.mxu0 %v1260_v9  ;;  %v1285_v3 = vld [vmem:[%s9369_s1 + $0x138] sm:$0xff]  ;;  %v6240_v9 = vld [vmem:[%s5964_s29 + $0xa8] sm:$0xff] }
  0x54   : > { %1561 = vmatpush.msra.mxu2 %v1263_v5  ;;  %v1251_v5 = vld [vmem:[%s9369_s1 + $0x28] sm:$0xff]  ;;  %1667 = vmatpush.msra.mxu3 %v1285_v3  ;;  %v866_v3 = vrot.slane %v6183_v37, 3 }
  0x55   : > { %1361 = vmatpush.msra.mxu0 %v1258_v15  ;;  %v910_v15 = vrot.slane %v6240_v9, 1 }
  0x56   : > { %5247 = vrot.lane.b32.xlu2 %v5246_v18, %s5786_s25  ;;  %v6162_v18 = vld [vmem:[%s5964_s29 + $0x78] sm:$0xff]  ;;  %1562 = vmatpush.msra.mxu2 %v1261_v12  ;;  %v833_v12 = vrot.slane %v6234_v6, 1 }
  0x57   : > { %v753_v25 = vrot.slane %v6162_v18, 1  ;;  %v772_v26 = vrot.slane %v6162_v18, 2  ;;  %v791_v32 = vrot.slane %v6162_v18, 3  ;;  %1362 = vmatpush.msra.mxu0 %v1256_v47 }
  0x58   : > { %1563 = vmatpush.msra.mxu2 %v1259_v20  ;;  %v929_v20 = vrot.slane %v6240_v9, 2 }
  0x59   : > { %5252 = vrot.lane.b32.xlu0 %v5251_v28, %s5785_s21  ;;  %v754_v28 = vsel %vm499_vm0, %v751_v63, %v753_v25  ;;  %v773_v29 = vsel %vm9426_vm2, %v770_v4, %v772_v26  ;;  %v792_v35 = vsel %vm9412_vm1, %v789_v22, %v791_v32  ;;  %1363 = vmatpush.msra.mxu0 %v1254_v52  ;;  %v1284_v63 = vld [vmem:[%s9369_s1 + $0x130] sm:$0xff]  ;;  %v1250_v4 = vld [vmem:[%s9369_s1 + $0x20] sm:$0xff] }
  0x5a   : > { %5257 = vrot.lane.b32.xlu1 %v5256_v30, %s5787_s14  ;;  %v5291_v30 = vpack.i.bf16 %v790_v27, %v710_v53  ;;  %v5296_v33 = vpack.i.bf16 %v753_v25, %v754_v28  ;;  %v5301_v34 = vpack.i.bf16 %v772_v26, %v773_v29  ;;  %v5306_v36 = vpack.i.bf16 %v791_v32, %v792_v35  ;;  %v1255_v53 = vld [vmem:[%s9369_s1 + $0x48] sm:$0xff]  ;;  %v1248_v22 = vld [vmem:[%s9369_s1 + $0x10] sm:$0xff]  ;;  %v1246_v32 = vld [vmem:[%s9369_s1] sm:$0xff] }
  0x5b   : > { %1564 = vmatpush.msra.mxu2 %v1257_v48  ;;  %1364 = vmatpush.msra.mxu0 %v1252_v61  ;;  %v834_v25 = vsel %vm499_vm0, %v831_v42, %v833_v12  ;;  %v911_v26 = vsel %vm499_vm0, %v909_v13, %v910_v15  ;;  %v1283_v27 = vld [vmem:[%s9369_s1 + $0x128] sm:$0xff]  ;;  %v853_v29 = vsel %vm9426_vm2, %v850_v45, %v852_v17  ;;  %v6288_v45 = vld [vmem:[%s5964_s29 + $0xb0] sm:$0xff]  ;;  %v869_v13 = vrot.slane %v6189_v39, 3 }
  0x5c   : > { %1465 = vmatpush.msra.mxu1 %v1284_v63  ;;  %v5326_v28 = vpack.i.bf16 %v911_v26, %v834_v25  ;;  %1668 = vmatpush.msra.mxu3 %v1283_v27  ;;  %v912_v47 = vrot.slane %v6288_v45, 1  ;;  %v931_v48 = vrot.slane %v6288_v45, 2  ;;  %v947_v25 = vrot.slane %v6237_v8, 3 }
  0x5d   : > { %1565 = vmatpush.msra.mxu2 %v1255_v53  ;;  %1365 = vmatpush.msra.mxu0 %v1250_v4  ;;  %v867_v4 = vrot.slane %v6186_v38, 3  ;;  %v948_v26 = vrot.slane %v6240_v9, 3  ;;  %v644_v27 = vrot.slane %v5986_v11, 4 }
  0x5e   : > { %5262 = vrot.lane.b32.xlu2 %v5261_v51, %s5786_s25  ;;  %v832_v51 = vsel %vm499_vm0, %v829_v41, %v831_v42  ;;  %v561_v41 = vrot.slane %v5970_v1, 4  ;;  %v1278_v42 = vld [vmem:[%s9369_s1 + $0x100] sm:$0xff]  ;;  %v932_v52 = vsel %vm9426_vm2, %v929_v20, %v931_v48 }
  0x5f   : > { %v5311_v54 = vpack.i.bf16 %v832_v51, %v830_v49  ;;  %1366 = vmatpush.msra.mxu0 %v1248_v22  ;;  %v913_v49 = vsel %vm499_vm0, %v910_v15, %v912_v47  ;;  %v5346_v53 = vpack.i.bf16 %v932_v52, %v852_v17  ;;  %v868_v15 = vsel %vm9412_vm1, %v866_v3, %v867_v4 }
  0x60   : > { %v562_v44 = vsel %vm9427_vm3, %v560_v40, %v561_v41  ;;  %v5341_v51 = vpack.i.bf16 %v913_v49, %v833_v12  ;;  %v870_v17 = vsel %vm9412_vm1, %v867_v4, %v869_v13 }
  0x61   : > { %5267 = vrot.lane.b32.xlu0 %v5266_v60, %s5785_s21  ;;  %v5316_v60 = vpack.i.bf16 %v851_v56, %v849_v55  ;;  %1367 = vmatpush.msra.mxu0 %v1246_v32  ;;  %v6298_v55 = vld [vmem:[%s5964_s29 + $0xb8] sm:$0xff]  ;;  %v949_v32 = vsel %vm9412_vm1, %v947_v25, %v948_v26  ;;  %v6363_v25 = vld [vmem:[%s5964_s29 + $0xd0] sm:$0xff] }
  0x62   : > { %5272 = vrot.lane.b32.xlu1 %v5271_v62, %s5787_s14  ;;  %v1253_v62 = vld [vmem:[%s9369_s1 + $0x38] sm:$0xff]  ;;  %v933_v61 = vrot.slane %v6298_v55, 2 }
  0x63   : > { %1566 = vmatpush.msra.mxu2 %v1253_v62 }
  0x64   : > { %v934_v63 = vsel %vm9426_vm2, %v931_v48, %v933_v61  ;;  %v647_v48 = vrot.slane %v6010_v31, 4 }
  0x65   : > { %1567 = vmatpush.msra.mxu2 %v1251_v5  ;;  %v5361_v12 = vpack.i.bf16 %v933_v61, %v934_v63 }
  0x66   : > { %5277 = vrot.lane.b32.xlu2 %v5276_v19, %s5786_s25  ;;  %v928_v19 = vrot.slane %v6237_v8, 2 }
  0x69   : > { %5282 = vrot.lane.b32.xlu0 %v5281_v23, %s5785_s21  ;;  %v1282_v23 = vld [vmem:[%s9369_s1 + $0x120] sm:$0xff] }
  0x6a   : > { %5287 = vrot.lane.b32.xlu1 %v5286_v24, %s5787_s14  ;;  %v1249_v24 = vld [vmem:[%s9369_s1 + $0x18] sm:$0xff]  ;;  %1466 = vmatpush.msra.mxu1 %v1282_v23 }
  0x6b   : > { %1568 = vmatpush.msra.mxu2 %v1249_v24  ;;  %v871_v24 = vrot.slane %v6234_v6, 3 }
  0x6e   : > { %5292 = vrot.lane.b32.xlu2 %v5291_v30, %s5786_s25  ;;  %v930_v30 = vsel %vm9426_vm2, %v928_v19, %v929_v20  ;;  %v565_v19 = vrot.slane %v5980_v7, 4  ;;  %v5321_v20 = vpack.i.bf16 %v870_v17, %v868_v15  ;;  %v952_v15 = vrot.slane %v6298_v55, 3 }
  0x6f   : > { %v5331_v35 = vpack.i.bf16 %v930_v30, %v853_v29  ;;  %v872_v29 = vsel %vm9412_vm1, %v869_v13, %v871_v24  ;;  %v645_v30 = vrot.slane %v5993_v16, 4  ;;  %v649_v17 = vrot.slane %v6027_v46, 4 }
  0x71   : > { %5297 = vrot.lane.b32.xlu0 %v5296_v33, %s5785_s21  ;;  %v1280_v33 = vld [vmem:[%s9369_s1 + $0x110] sm:$0xff] }
  0x72   : > { %5302 = vrot.lane.b32.xlu1 %v5301_v34, %s5787_s14  ;;  %v1247_v34 = vld [vmem:[%s9369_s1 + $0x8] sm:$0xff]  ;;  %1467 = vmatpush.msra.mxu1 %v1280_v33  ;;  %v5336_v33 = vpack.i.bf16 %v949_v32, %v872_v29 }
  0x73   : > { %1569 = vmatpush.msra.mxu2 %v1247_v34  ;;  %v646_v34 = vsel %vm9427_vm3, %v644_v27, %v645_v30 }
  0x74   : > { %1468 = vmatpush.msra.mxu1 %v1278_v42  ;;  %v1151_v40 = vrot.slane %v646_v34, 4 }
  0x75   : > { %4813 = vmatmul.msk.f32.vlgmr.msra.gmra.mxu1 %vm9391_vm4, %v562_v44 }
  0x76   : > { %5307 = vrot.lane.b32.xlu2 %v5306_v36, %s5786_s25  ;;  %v1281_v36 = vld [vmem:[%s9369_s1 + $0x118] sm:$0xff] }
  0x77   : > { %1669 = vmatpush.msra.mxu3 %v1281_v36 }
  0x79   : > { %5312 = vrot.lane.b32.xlu0 %v5311_v54, %s5785_s21  ;;  %1670 = vmatpush.msra.mxu3 %v1279_v43  ;;  %v563_v54 = vrot.slane %v5973_v2, 4  ;;  %v1239_v43 = vsel %vm9427_vm3, %v565_v19, %v1151_v40 }
  0x7a   : > { %5317 = vrot.lane.b32.xlu1 %v5316_v60, %s5787_s14  ;;  %4841 = vmatmul.msk.f32.vlgmr.msra.gmra.mxu3 %vm9391_vm4, %v562_v44  ;;  %v914_v60 = vrot.slane %v6298_v55, 1 }
  0x7b   : > { %v564_v56 = vsel %vm9427_vm3, %v561_v41, %v563_v54  ;;  %v566_v22 = vsel %vm9427_vm3, %v563_v54, %v565_v19 }
  0x7c   : > { %v915_v62 = vsel %vm499_vm0, %v912_v47, %v914_v60  ;;  %v950_v47 = vrot.slane %v6288_v45, 3 }
  0x7d   : > { %4814 = vmatmul.msk.f32.gmra.mxu1 %vm9391_vm4, %v564_v56  ;;  %v5356_v5 = vpack.i.bf16 %v914_v60, %v915_v62 }
  0x7e   : > { %5322 = vrot.lane.b32.xlu2 %v5321_v20, %s5786_s25  ;;  %v951_v52 = vsel %vm9412_vm1, %v948_v26, %v950_v47  ;;  %v6355_v20 = vld [vmem:[%s5964_s29 + $0xc0] sm:$0xff] }
  0x7f   : > { %v5351_v62 = vpack.i.bf16 %v951_v52, %v871_v24  ;;  %v953_v24 = vsel %vm9412_vm1, %v950_v47, %v952_v15  ;;  %v1011_v47 = vrot.slane %v6363_v25, 2 }
  0x81   : > { %5327 = vrot.lane.b32.xlu0 %v5326_v28, %s5785_s21 }
  0x82   : > { %5332 = vrot.lane.b32.xlu1 %v5331_v35, %s5787_s14  ;;  %4842 = vmatmul.msk.f32.gmra.mxu3 %vm9391_vm4, %v564_v56 }
  0x85   : > { %4815 = vmatmul.msk.f32.gmra.mxu1 %vm9391_vm4, %v566_v22 }
  0x86   : > { %5337 = vrot.lane.b32.xlu2 %v5336_v33, %s5786_s25  ;;  %v989_v33 = vrot.slane %v6355_v20, 1 }
  0x89   : > { %5342 = vrot.lane.b32.xlu0 %v5341_v51, %s5785_s21 }
  0x8a   : > { %5347 = vrot.lane.b32.xlu1 %v5346_v53, %s5787_s14  ;;  %4843 = vmatmul.msk.f32.gmra.mxu3 %vm9391_vm4, %v566_v22  ;;  %v648_v53 = vsel %vm9427_vm3, %v645_v30, %v647_v48  ;;  %v6358_v22 = vld [vmem:[%s5964_s29 + $0xc8] sm:$0xff] }
  0x8b   : > { %v1154_v63 = vrot.slane %v648_v53, 4  ;;  %v990_v34 = vrot.slane %v6358_v22, 1 }
  0x8d   : > { %4816 = vmatmul.msk.f32.gmra.mxu1 %vm9391_vm4, %v1239_v43 }
  0x8e   : > { %5352 = vrot.lane.b32.xlu2 %v5351_v62, %s5786_s25  ;;  %v6391_v62 = vld [vmem:[%s5964_s29 + $0xd8] sm:$0xff] }
  0x91   : > { %5357 = vrot.lane.b32.xlu0 %v5356_v5, %s5785_s21 }
  0x92   : > { %5362 = vrot.lane.b32.xlu1 %v5361_v12, %s5787_s14  ;;  %4844 = vmatmul.msk.f32.gmra.mxu3 %vm9391_vm4, %v1239_v43 }
  0x98   : > { %v6329_v36 = vpop.permute.xlu2 %5212 }
  0x99   : > { %v5215_v26 = vunpack.i.h.bf16 %v6329_v36  ;;  %v5214_v30 = vunpack.i.l.bf16 %v6329_v36  ;;  %v991_v36 = vsel %vm499_vm0, %v989_v33, %v990_v34 }
  0xa0   : > { %v6345_v4 = vpop.permute.xlu2 %5217 }
  0xab   : > { %v5193_v23 = vpop.permute.xlu0 %5192 }
  0xac   : > { %v5203_v28 = vpop.permute.xlu1 %5202  ;;  %v5194_v35 = vunpack.i.l.bf16 %v5193_v23  ;;  %v5195_v54 = vunpack.i.h.bf16 %v5193_v23 }
  0xad   : > { %v5204_v41 = vunpack.i.l.bf16 %v5203_v28  ;;  %v5205_v3 = vunpack.i.h.bf16 %v5203_v28  ;;  %v5366_v28 = vpack.i.bf16 %v952_v15, %v953_v24  ;;  %v1162_v15 = vrot.slane %v649_v17, 4 }
  0xae   : > { %v569_v49 = vsel %vm9391_vm4, %v5967_v0, %v5194_v35  ;;  %v1155_v0 = vsel %vm9427_vm3, %v1151_v40, %v1154_v63  ;;  %v570_v5 = vsel %vm9391_vm4, %v5970_v1, %v5195_v54  ;;  %v650_v1 = vsel %vm9427_vm3, %v647_v48, %v649_v17 }
  0xaf   : > { %4817 = vmatmul.msk.f32.gmra.mxu1 %vm9391_vm4, %v1155_v0  ;;  %4845 = vmatmul.msk.f32.gmra.mxu3 %vm9391_vm4, %v1155_v0  ;;  %v1158_v29 = vrot.slane %v650_v1, 4  ;;  %v6397_v0 = vld [vmem:[%s5964_s29 + $0xe8] sm:$0xff] }
  0xb0   : > { %5367 = vrot.lane.b32.xlu2 %v5366_v28, %s5786_s25 }
  0xb1   : > { %v1163_v28 = vsel %vm9427_vm3, %v1158_v29, %v1162_v15 }
  0xb3   : > { %v5198_v42 = vpop.permute.xlu0 %5197 }
  0xb4   : > { %v5199_v44 = vunpack.i.l.bf16 %v5198_v42  ;;  %v5200_v60 = vunpack.i.h.bf16 %v5198_v42  ;;  %v5208_v61 = vpop.permute.xlu1 %5207  ;;  %v992_v42 = vrot.slane %v6363_v25, 1 }
  0xb5   : > { %v5210_v12 = vunpack.i.h.bf16 %v5208_v61  ;;  %v5209_v19 = vunpack.i.l.bf16 %v5208_v61 }
  0xb6   : > { %v574_v51 = vsel %vm9390_vm5, %v569_v49, %v5199_v44  ;;  %v575_v13 = vsel %vm9390_vm5, %v570_v5, %v5200_v60  ;;  %v1009_v44 = vrot.slane %v6358_v22, 2  ;;  %v993_v48 = vsel %vm499_vm0, %v990_v34, %v992_v42 }
  0xb7   : > { %v579_v56 = vsel %vm578_vm6, %v574_v51, %v5204_v41  ;;  %v580_v27 = vsel %vm578_vm6, %v575_v13, %v5205_v3  ;;  %v651_v32 = vsel %vm9391_vm4, %v5986_v11, %v5210_v12  ;;  %v571_v40 = vsel %vm9391_vm4, %v5973_v2, %v5209_v19 }
  0xb8   : > { %1368 = vmatmul.f32.vlgmr.msra.gmra.mxu0 %v579_v56  ;;  %1570 = vmatmul.f32.vlgmr.msra.gmra.mxu2 %v579_v56  ;;  %v1159_v41 = vsel %vm9427_vm3, %v1154_v63, %v1158_v29  ;;  %v1008_v11 = vrot.slane %v6355_v20, 2  ;;  %v5219_v2 = vunpack.i.l.bf16 %v6345_v4  ;;  %v5220_v49 = vunpack.i.h.bf16 %v6345_v4  ;;  %v5233_v56 = vpop.permute.xlu2 %5232  ;;  %v6394_v63 = vld [vmem:[%s5964_s29 + $0xe0] sm:$0xff] }
  0xb9   : > { %v576_v51 = vsel %vm9390_vm5, %v571_v40, %v5214_v30  ;;  %4818 = vmatmul.msk.f32.gmra.mxu1 %vm9391_vm4, %v1159_v41  ;;  %4846 = vmatmul.msk.f32.gmra.mxu3 %vm9391_vm4, %v1159_v41  ;;  %v5371_v52 = vpack.i.bf16 %v993_v48, %v991_v36  ;;  %v655_v60 = vsel %vm9390_vm5, %v651_v32, %v5215_v26  ;;  %v994_v12 = vrot.slane %v6391_v62, 1 }
  0xba   : > { %v1010_v53 = vsel %vm9426_vm2, %v1008_v11, %v1009_v44  ;;  %v1012_v61 = vsel %vm9426_vm2, %v1009_v44, %v1011_v47  ;;  %v581_v13 = vsel %vm578_vm6, %v576_v51, %v5219_v2  ;;  %v1070_v19 = vrot.slane %v6394_v63, 1  ;;  %v6424_v11 = vld [vmem:[%s5964_s29 + $0xf0] sm:$0xff] }
  0xbb   : > { %v5223_v23 = vpop.permute.xlu0 %5222  ;;  %5372 = vrot.lane.b32.xlu0 %v5371_v52, %s5785_s21  ;;  %v5376_v5 = vpack.i.bf16 %v1012_v61, %v1010_v53  ;;  %v5234_v24 = vunpack.i.l.bf16 %v5233_v56  ;;  %v659_v1 = vsel %vm578_vm6, %v655_v60, %v5220_v49  ;;  %v1071_v26 = vrot.slane %v6397_v0, 1 }
  0xbc   : > { %v5224_v35 = vunpack.i.l.bf16 %v5223_v23  ;;  %v5228_v43 = vpop.permute.xlu1 %5227  ;;  %v5225_v3 = vunpack.i.h.bf16 %v5223_v23  ;;  %v995_v23 = vsel %vm499_vm0, %v992_v42, %v994_v12  ;;  %v1013_v32 = vrot.slane %v6391_v62, 2 }
  0xbd   : > { %v5229_v54 = vunpack.i.l.bf16 %v5228_v43  ;;  %5377 = vrot.lane.b32.xlu1 %v5376_v5, %s5787_s14  ;;  %v1072_v30 = vsel %vm499_vm0, %v1070_v19, %v1071_v26  ;;  %v1089_v33 = vrot.slane %v6394_v63, 2  ;;  %v1090_v41 = vrot.slane %v6397_v0, 2 }
  0xbe   : > { %v572_v4 = vsel %vm9391_vm4, %v5980_v7, %v5224_v35  ;;  %v5230_v7 = vunpack.i.h.bf16 %v5228_v43  ;;  %v652_v17 = vsel %vm9391_vm4, %v5993_v16, %v5225_v3  ;;  %v1150_v35 = vrot.slane %v659_v1, 4 }
  0xbf   : > { %v5386_v40 = vpack.i.bf16 %v1072_v30, %v995_v23  ;;  %v5235_v42 = vunpack.i.h.bf16 %v5233_v56  ;;  %v1014_v16 = vsel %vm9426_vm2, %v1011_v47, %v1013_v32  ;;  %v1091_v36 = vsel %vm9426_vm2, %v1089_v33, %v1090_v41 }
  0xc0   : > { %1371 = vmatmul.f32.gmra.mxu0 %v580_v27  ;;  %1573 = vmatmul.f32.gmra.mxu2 %v580_v27  ;;  %v577_v27 = vsel %vm9390_vm5, %v572_v4, %v5229_v54  ;;  %v656_v29 = vsel %vm9390_vm5, %v652_v17, %v5230_v7  ;;  %v5391_v48 = vpack.i.bf16 %v1091_v36, %v1014_v16  ;;  %v1073_v49 = vrot.slane %v6424_v11, 1  ;;  %v5248_v61 = vpop.permute.xlu2 %5247 }
  0xc1   : > { %v582_v43 = vsel %vm578_vm6, %v577_v27, %v5234_v24  ;;  %4819 = vmatmul.msk.f32.gmra.mxu1 %vm9391_vm4, %v1163_v28  ;;  %4847 = vmatmul.msk.f32.gmra.mxu3 %vm9391_vm4, %v1163_v28  ;;  %v724_v52 = vrot.slane %v6039_v57, 4  ;;  %v725_v53 = vrot.slane %v6042_v58, 4  ;;  %v660_v47 = vsel %vm578_vm6, %v656_v29, %v5235_v42 }
  0xc2   : > { %v1238_v51 = vsel %vm9427_vm3, %v582_v43, %v1150_v35  ;;  %v1074_v54 = vsel %vm499_vm0, %v1071_v26, %v1073_v49  ;;  %v1092_v56 = vrot.slane %v6424_v11, 2  ;;  %v1152_v15 = vrot.slane %v660_v47, 4 }
  0xc3   : > { %v5238_v34 = vpop.permute.xlu0 %5237  ;;  %5387 = vrot.lane.b32.xlu0 %v5386_v40, %s5785_s21  ;;  %v726_v3 = vsel %vm9427_vm3, %v724_v52, %v725_v53  ;;  %v5401_v5 = vpack.i.bf16 %v1074_v54, %v994_v12  ;;  %v5249_v19 = vunpack.i.l.bf16 %v5248_v61  ;;  %v1109_v7 = vrot.slane %v6397_v0, 3  ;;  %v6459_v40 = vld [vmem:[%s5964_s29 + $0xf8] sm:$0xff]  ;;  %s5790_s29 = smov 127  }
  0xc4   : > { %v5239_v44 = vunpack.i.l.bf16 %v5238_v34  ;;  %v5243_v2 = vpop.permute.xlu1 %5242  ;;  %v5240_v23 = vunpack.i.h.bf16 %v5238_v34  ;;  %v1153_v26 = vsel %vm9427_vm3, %v1150_v35, %v1152_v15  ;;  %v1111_v27 = vrot.slane %v6424_v11, 3 }
  0xc5   : > { %v5244_v60 = vunpack.i.l.bf16 %v5243_v2  ;;  %5392 = vrot.lane.b32.xlu1 %v5391_v48, %s5787_s14  ;;  %v5245_v28 = vunpack.i.h.bf16 %v5243_v2  ;;  %v5250_v34 = vunpack.i.h.bf16 %v5248_v61  ;;  %v1028_v42 = vrot.slane %v6358_v22, 3 }
  0xc6   : > { %v653_v4 = vsel %vm9391_vm4, %v6010_v31, %v5239_v44  ;;  %v727_v31 = vrot.slane %v6045_v59, 4  ;;  %v654_v30 = vsel %vm9391_vm4, %v6027_v46, %v5240_v23  ;;  %v1112_v33 = vsel %vm9412_vm1, %v1109_v7, %v1111_v27 }
  0xc7   : > { %v657_v24 = vsel %vm9390_vm5, %v653_v4, %v5244_v60  ;;  %v658_v35 = vsel %vm9390_vm5, %v654_v30, %v5245_v28  ;;  %v1075_v46 = vrot.slane %v6459_v40, 1  ;;  %v1030_v43 = vrot.slane %v6363_v25, 3 }
  0xc8   : > { %1374 = vmatmul.f32.gmra.mxu0 %v581_v13  ;;  %1576 = vmatmul.f32.gmra.mxu2 %v581_v13  ;;  %v1093_v13 = vsel %vm9426_vm2, %v1090_v41, %v1092_v56  ;;  %v661_v12 = vsel %vm578_vm6, %v657_v24, %v5249_v19  ;;  %v728_v17 = vsel %vm9427_vm3, %v725_v53, %v727_v31  ;;  %v1027_v41 = vrot.slane %v6355_v20, 3 }
  0xc9   : > { %4820 = vmatmul.msk.f32.gmra.mxu1 %vm9391_vm4, %v726_v3  ;;  %4848 = vmatmul.msk.f32.gmra.mxu3 %vm9391_vm4, %v726_v3  ;;  %v5406_v1 = vpack.i.bf16 %v1093_v13, %v1013_v32  ;;  %v1156_v32 = vrot.slane %v661_v12, 4  ;;  %v729_v36 = vrot.slane %v6058_v10, 4  ;;  %v662_v44 = vsel %vm578_vm6, %v658_v35, %v5250_v34 }
  0xca   : > { %v1029_v29 = vsel %vm9412_vm1, %v1027_v41, %v1028_v42  ;;  %v1076_v48 = vsel %vm499_vm0, %v1073_v49, %v1075_v46  ;;  %v1113_v52 = vrot.slane %v6459_v40, 3  ;;  %v1160_v54 = vrot.slane %v662_v44, 4 }
  0xcb   : > { %5402 = vrot.lane.b32.xlu0 %v5401_v5, %s5785_s21  ;;  %v1157_v16 = vsel %vm9427_vm3, %v1152_v15, %v1156_v32  ;;  %v5253_v2 = vpop.permute.xlu0 %5252  ;;  %v730_v47 = vsel %vm9427_vm3, %v727_v31, %v729_v36  ;;  %v805_v49 = vrot.slane %v6064_v14, 4  ;;  %v806_v4 = vrot.slane %v6075_v21, 4  ;;  %v5263_v15 = vpop.permute.xlu2 %5262 }
  0xcc   : > { %v5254_v60 = vunpack.i.l.bf16 %v5253_v2  ;;  %v5258_v61 = vpop.permute.xlu1 %5257  ;;  %v1114_v3 = vsel %vm9412_vm1, %v1111_v27, %v1113_v52  ;;  %v1032_v5 = vrot.slane %v6391_v62, 3  ;;  %v1108_v19 = vrot.slane %v6394_v63, 3 }
  0xcd   : > { %5407 = vrot.lane.b32.xlu1 %v5406_v1, %s5787_s14  ;;  %v5259_v13 = vunpack.i.l.bf16 %v5258_v61  ;;  %v807_v24 = vsel %vm9427_vm3, %v805_v49, %v806_v4  ;;  %v1161_v1 = vsel %vm9427_vm3, %v1156_v32, %v1160_v54  ;;  %v5264_v27 = vunpack.i.l.bf16 %v5263_v15 }
  0xce   : > { %v732_v23 = vsel %vm9391_vm4, %v6039_v57, %v5254_v60  ;;  %v1174_v31 = vrot.slane %v807_v24, 4  ;;  %v1110_v12 = vsel %vm9412_vm1, %v1108_v19, %v1109_v7  ;;  %v808_v57 = vrot.slane %v6123_v50, 4 }
  0xcf   : > { %v736_v30 = vsel %vm9390_vm5, %v732_v23, %v5259_v13  ;;  %v5255_v32 = vunpack.i.h.bf16 %v5253_v2  ;;  %v5260_v41 = vunpack.i.h.bf16 %v5258_v61  ;;  %v810_v44 = vrot.slane %v6162_v18, 4 }
  0xd0   : > { %1377 = vmatmul.f32.gmra.mxu0 %v1238_v51  ;;  %1579 = vmatmul.f32.gmra.mxu2 %v1238_v51  ;;  %v1031_v51 = vsel %vm9412_vm1, %v1028_v42, %v1030_v43  ;;  %v809_v7 = vsel %vm9427_vm3, %v806_v4, %v808_v57 }
  0xd1   : > { %4821 = vmatmul.msk.f32.gmra.mxu1 %vm9391_vm4, %v728_v17  ;;  %4849 = vmatmul.msk.f32.gmra.mxu3 %vm9391_vm4, %v728_v17  ;;  %v5381_v53 = vpack.i.bf16 %v1031_v51, %v1029_v29  ;;  %v1241_v17 = vsel %vm9427_vm3, %v729_v36, %v1174_v31  ;;  %v1177_v35 = vrot.slane %v809_v7, 4  ;;  %v733_v42 = vsel %vm9391_vm4, %v6042_v58, %v5255_v32 }
  0xd2   : > { %v737_v36 = vsel %vm9390_vm5, %v733_v42, %v5260_v41  ;;  %v811_v58 = vsel %vm9427_vm3, %v808_v57, %v810_v44 }
  0xd3   : > { %1117 = vrot.lane.b32.xlu0 %v1112_v33, %s5786_s25  ;;  %5382 = vrot.lane.b32.xlu2 %v5381_v53, %s5786_s25  ;;  %v740_v33 = vsel %vm578_vm6, %v736_v30, %v5264_v27  ;;  %v5268_v34 = vpop.permute.xlu0 %5267  ;;  %v5278_v2 = vpop.permute.xlu2 %5277  ;;  %v1181_v54 = vrot.slane %v811_v58, 4 }
  0xd4   : > { %v5269_v29 = vunpack.i.l.bf16 %v5268_v34  ;;  %v5279_v61 = vunpack.i.l.bf16 %v5278_v2 }
  0xd5   : > { %1081 = vrot.lane.b32.xlu1 %v1076_v48, %s5785_s21  ;;  %v5270_v48 = vunpack.i.h.bf16 %v5268_v34  ;;  %v1182_v4 = vsel %vm9427_vm3, %v1177_v35, %v1181_v54 }
  0xd6   : > { %v734_v53 = vsel %vm9391_vm4, %v6045_v59, %v5269_v29 }
  0xd8   : > { %1380 = vmatmul.f32.gmra.mxu0 %v1153_v26  ;;  %1582 = vmatmul.f32.gmra.mxu2 %v1153_v26  ;;  %v1033_v26 = vsel %vm9412_vm1, %v1030_v43, %v1032_v5  ;;  %v5273_v43 = vpop.permute.xlu1 %5272 }
  0xd9   : > { %4822 = vmatmul.msk.f32.gmra.mxu1 %vm9391_vm4, %v730_v47  ;;  %4850 = vmatmul.msk.f32.gmra.mxu3 %vm9391_vm4, %v730_v47  ;;  %v5396_v28 = vpack.i.bf16 %v1110_v12, %v1033_v26  ;;  %v5274_v51 = vunpack.i.l.bf16 %v5273_v43  ;;  %v1094_v47 = vrot.slane %v6459_v40, 2  ;;  %v5275_v60 = vunpack.i.h.bf16 %v5273_v43 }
  0xdb   : > { %1119 = vrot.lane.b32.xlu0 %v1114_v3, %s5786_s25  ;;  %5397 = vrot.lane.b32.xlu2 %v5396_v28, %s5786_s25  ;;  %v5283_v3 = vpop.permute.xlu0 %5282  ;;  %v1095_v49 = vsel %vm9426_vm2, %v1092_v56, %v1094_v47  ;;  %v738_v59 = vsel %vm9390_vm5, %v734_v53, %v5274_v51  ;;  %v5293_v26 = vpop.permute.xlu2 %5292  ;;  %v888_v53 = vrot.slane %v6189_v39, 4 }
  0xdc   : > { %v5284_v13 = vunpack.i.l.bf16 %v5283_v3  ;;  %v742_v56 = vsel %vm578_vm6, %v738_v59, %v5279_v61  ;;  %v5285_v23 = vunpack.i.h.bf16 %v5283_v3  ;;  %v5294_v12 = vunpack.i.l.bf16 %v5293_v26 }
  0xdd   : > { %1083 = vrot.lane.b32.xlu1 %v1075_v46, %s5785_s21  ;;  %v1178_v46 = vsel %vm9427_vm3, %v1174_v31, %v1177_v35  ;;  %v1185_v31 = vrot.slane %v810_v44, 4 }
  0xde   : > { %v813_v57 = vsel %vm9391_vm4, %v6075_v21, %v5285_v23  ;;  %v886_v21 = vrot.slane %v6186_v38, 4  ;;  %v967_v23 = vrot.slane %v6240_v9, 4 }
  0xdf   : > { %v1186_v30 = vsel %vm9427_vm3, %v1181_v54, %v1185_v31 }
  0xe0   : > { %1383 = vmatmul.f32.gmra.mxu0 %v1157_v16  ;;  %1585 = vmatmul.f32.gmra.mxu2 %v1157_v16  ;;  %v5265_v16 = vunpack.i.h.bf16 %v5263_v15  ;;  %v5280_v15 = vunpack.i.h.bf16 %v5278_v2  ;;  %v5288_v19 = vpop.permute.xlu1 %5287 }
  0xe1   : > { %4823 = vmatmul.msk.f32.gmra.mxu1 %vm9391_vm4, %v1241_v17  ;;  %4851 = vmatmul.msk.f32.gmra.mxu3 %vm9391_vm4, %v1241_v17  ;;  %v5290_v28 = vunpack.i.h.bf16 %v5288_v19 }
  0xe3   : > { %1121 = vrot.lane.b32.xlu0 %v1113_v52, %s5786_s25  ;;  %1040 = vrot.lane.b32.xlu2 %v1032_v5, %s5786_s25  ;;  %v741_v52 = vsel %vm578_vm6, %v737_v36, %v5265_v16  ;;  %v812_v5 = vsel %vm9391_vm4, %v6064_v14, %v5270_v48  ;;  %v735_v14 = vsel %vm9391_vm4, %v6058_v10, %v5284_v13  ;;  %v5298_v32 = vpop.permute.xlu0 %5297  ;;  %v5295_v10 = vunpack.i.h.bf16 %v5293_v26  ;;  %v5308_v29 = vpop.permute.xlu2 %5307  ;;  %s5791_s25 = smov 40  }
  0xe4   : > { %v816_v24 = vsel %vm9390_vm5, %v812_v5, %v5275_v60  ;;  %v817_v34 = vsel %vm9390_vm5, %v813_v57, %v5290_v28  ;;  %v5299_v35 = vunpack.i.l.bf16 %v5298_v32  ;;  %v5309_v48 = vunpack.i.l.bf16 %v5308_v29 }
  0xe5   : > { %v820_v27 = vsel %vm578_vm6, %v816_v24, %v5280_v15  ;;  %v821_v43 = vsel %vm578_vm6, %v817_v34, %v5295_v10  ;;  %v5300_v58 = vunpack.i.h.bf16 %v5298_v32  ;;  %v5310_v3 = vunpack.i.h.bf16 %v5308_v29 }
  0xe6   : > { %v814_v44 = vsel %vm9391_vm4, %v6123_v50, %v5299_v35  ;;  %v1175_v2 = vrot.slane %v821_v43, 4  ;;  %v889_v50 = vsel %vm9427_vm3, %v886_v21, %v888_v53  ;;  %v890_v5 = vrot.slane %v6234_v6, 4 }
  0xe7   : > { %v815_v60 = vsel %vm9391_vm4, %v6162_v18, %v5300_v58  ;;  %v969_v10 = vrot.slane %v6288_v45, 4 }
  0xe8   : > { %1386 = vmatmul.f32.gmra.mxu0 %v1161_v1  ;;  %1588 = vmatmul.f32.gmra.mxu2 %v1161_v1  ;;  %v5289_v1 = vunpack.i.l.bf16 %v5288_v19  ;;  %v5303_v41 = vpop.permute.xlu1 %5302  ;;  %v891_v18 = vsel %vm9427_vm3, %v888_v53, %v890_v5 }
  0xe9   : > { %4824 = vmatmul.msk.f32.gmra.mxu1 %vm9391_vm4, %v1178_v46  ;;  %4852 = vmatmul.msk.f32.gmra.mxu3 %vm9391_vm4, %v1178_v46  ;;  %v885_v46 = vrot.slane %v6183_v37, 4  ;;  %v5304_v16 = vunpack.i.l.bf16 %v5303_v41  ;;  %v5305_v54 = vunpack.i.h.bf16 %v5303_v41  ;;  %v970_v35 = vsel %vm9427_vm3, %v967_v23, %v969_v10 }
  0xea   : > { %v739_v17 = vsel %vm9390_vm5, %v735_v14, %v5289_v1 }
  0xeb   : > { %1100 = vrot.lane.b32.xlu2 %v1095_v49, %s5787_s14  ;;  %v743_v7 = vsel %vm578_vm6, %v739_v17, %v5294_v12  ;;  %v887_v36 = vsel %vm9427_vm3, %v885_v46, %v886_v21  ;;  %v818_v51 = vsel %vm9390_vm5, %v814_v44, %v5304_v16  ;;  %v819_v49 = vsel %vm9390_vm5, %v815_v60, %v5305_v54  ;;  %v5313_v59 = vpop.permute.xlu0 %5312  ;;  %v5323_v26 = vpop.permute.xlu2 %5322 }
  0xec   : > { %v823_v13 = vsel %vm578_vm6, %v819_v49, %v5310_v3  ;;  %v5314_v24 = vunpack.i.l.bf16 %v5313_v59  ;;  %v5324_v57 = vunpack.i.l.bf16 %v5323_v26 }
  0xed   : > { %v1183_v19 = vrot.slane %v823_v13, 4 }
  0xf0   : > { %1389 = vmatmul.f32.gmra.mxu0 %v740_v33  ;;  %1591 = vmatmul.f32.gmra.mxu2 %v740_v33  ;;  %v1173_v33 = vrot.slane %v820_v27, 4  ;;  %v5318_v1 = vpop.permute.xlu1 %5317  ;;  %v893_v27 = vsel %vm9391_vm4, %v6183_v37, %v5314_v24 }
  0xf1   : > { %4825 = vmatmul.msk.f32.gmra.mxu1 %vm9391_vm4, %v1182_v4  ;;  %4853 = vmatmul.msk.f32.gmra.mxu3 %vm9391_vm4, %v1182_v4  ;;  %v5319_v14 = vunpack.i.l.bf16 %v5318_v1  ;;  %v5320_v46 = vunpack.i.h.bf16 %v5318_v1 }
  0xf2   : > { %v1240_v42 = vsel %vm9427_vm3, %v743_v7, %v1173_v33  ;;  %v6559_v15 = vpop.f32.mrf.mxu1  ;;  %v5315_v7 = vunpack.i.h.bf16 %v5313_v59  ;;  %v1286_v59 = vld [vmem:[#allocation2] sm:$0x3] }
  0xf3   : > { %1102 = vrot.lane.b32.xlu2 %v1094_v47, %s5787_s14  ;;  %v822_v47 = vsel %vm578_vm6, %v818_v51, %v5309_v48  ;;  %v897_v32 = vsel %vm9390_vm5, %v893_v27, %v5319_v14  ;;  %v5328_v41 = vpop.permute.xlu0 %5327  ;;  %v971_v48 = vrot.slane %v6298_v55, 4  ;;  %v5338_v58 = vpop.permute.xlu2 %5337 }
  0xf4   : > { %v1179_v61 = vrot.slane %v822_v47, 4  ;;  %v901_v37 = vsel %vm578_vm6, %v897_v32, %v5324_v57  ;;  %v894_v43 = vsel %vm9391_vm4, %v6186_v38, %v5315_v7  ;;  %v5329_v44 = vunpack.i.l.bf16 %v5328_v41 }
  0xf5   : > { %v5330_v51 = vunpack.i.h.bf16 %v5328_v41  ;;  %v972_v38 = vsel %vm9427_vm3, %v969_v10, %v971_v48  ;;  %v5339_v3 = vunpack.i.l.bf16 %v5338_v58  ;;  %v6614_v32 = vperm.slane %v1286_v59, 1 }
  0xf6   : > { %v1180_v4 = vsel %vm9427_vm3, %v1175_v2, %v1179_v61  ;;  %v1184_v12 = vsel %vm9427_vm3, %v1179_v61, %v1183_v19  ;;  %v895_v54 = vsel %vm9391_vm4, %v6189_v39, %v5329_v44  ;;  %v5340_v39 = vunpack.i.h.bf16 %v5338_v58 }
  0xf7   : > { %v973_v61 = vsel %vm9391_vm4, %v6237_v8, %v5330_v51 }
  0xf8   : > { %1392 = vmatmul.f32.gmra.mxu0 %v741_v52  ;;  %1594 = vmatmul.f32.gmra.mxu2 %v741_v52  ;;  %v1176_v52 = vsel %vm9427_vm3, %v1173_v33, %v1175_v2  ;;  %v5333_v29 = vpop.permute.xlu1 %5332  ;;  %v898_v2 = vsel %vm9390_vm5, %v894_v43, %v5320_v46 }
  0xf9   : > { %4826 = vmatmul.msk.f32.gmra.mxu1 %vm9391_vm4, %v1186_v30  ;;  %4854 = vmatmul.msk.f32.gmra.mxu3 %vm9391_vm4, %v1186_v30  ;;  %v5335_v60 = vunpack.i.h.bf16 %v5333_v29 }
  0xfa   : > { %v6572_v17 = vpop.f32.mrf.mxu1 }
  0xfb   : > { %v5343_v49 = vpop.permute.xlu0 %5342  ;;  %v977_v19 = vsel %vm9390_vm5, %v973_v61, %v5335_v60 }
  0xfc   : > { %v5344_v13 = vunpack.i.l.bf16 %v5343_v49  ;;  %v5345_v1 = vunpack.i.h.bf16 %v5343_v49 }
  0xfd   : > { %v6566_v31 = vpop.f32.mrf.mxu3 }
  0xfe   : > { %v974_v10 = vsel %vm9391_vm4, %v6240_v9, %v5345_v1 }
 0x100   : > { %1395 = vmatmul.f32.gmra.mxu0 %v742_v56  ;;  %1597 = vmatmul.f32.gmra.mxu2 %v742_v56  ;;  %v966_v56 = vrot.slane %v6237_v8, 4  ;;  %v5348_v24 = vpop.permute.xlu1 %5347 }
 0x101   : > { %4827 = vmatmul.msk.f32.gmra.mxu1 %vm9391_vm4, %v887_v36  ;;  %4855 = vmatmul.msk.f32.gmra.mxu3 %vm9391_vm4, %v887_v36  ;;  %v5325_v36 = vunpack.i.h.bf16 %v5323_v26  ;;  %v5349_v8 = vunpack.i.l.bf16 %v5348_v24  ;;  %v896_v26 = vsel %vm9391_vm4, %v6234_v6, %v5344_v13 }
 0x102   : > { %v968_v28 = vsel %vm9427_vm3, %v966_v56, %v967_v23  ;;  %v6583_v21 = vpop.f32.mrf.mxu1  ;;  %v6607_v56 = vperm.slane %v1286_v59, 0 }
 0x103   : > { %v1197_v30 = vrot.slane %v968_v28, 4  ;;  %v902_v47 = vsel %vm578_vm6, %v898_v2, %v5325_v36  ;;  %v1208_v28 = vrot.slane %v971_v48, 4 }
 0x105   : > { %v1243_v33 = vsel %vm9427_vm3, %v890_v5, %v1197_v30  ;;  %v6580_v34 = vpop.f32.mrf.mxu3 }
 0x108   : > { %1398 = vmatmul.f32.gmra.mxu0 %v1240_v42  ;;  %1600 = vmatmul.f32.gmra.mxu2 %v1240_v42  ;;  %v1200_v42 = vrot.slane %v970_v35, 4  ;;  %v5363_v48 = vpop.permute.xlu1 %5362 }
 0x109   : > { %4828 = vmatmul.msk.f32.gmra.mxu1 %vm9391_vm4, %v889_v50  ;;  %4856 = vmatmul.msk.f32.gmra.mxu3 %vm9391_vm4, %v889_v50  ;;  %v1204_v50 = vrot.slane %v972_v38, 4  ;;  %v5364_v61 = vunpack.i.l.bf16 %v5363_v48 }
 0x10a   : > { %v1201_v16 = vsel %vm9427_vm3, %v1197_v30, %v1200_v42  ;;  %v5350_v30 = vunpack.i.h.bf16 %v5348_v24 }
 0x10b   : > { %v1205_v5 = vsel %vm9427_vm3, %v1200_v42, %v1204_v50  ;;  %v1209_v35 = vsel %vm9427_vm3, %v1204_v50, %v1208_v28  ;;  %v5358_v42 = vpop.permute.xlu0 %5357  ;;  %v1047_v50 = vrot.slane %v6358_v22, 4 }
 0x10c   : > { %v5359_v2 = vunpack.i.l.bf16 %v5358_v42  ;;  %v5360_v1 = vunpack.i.h.bf16 %v5358_v42 }
 0x10d   : > { %v6592_v53 = vpop.f32.mrf.mxu3 }
 0x110   : > { %1401 = vmatmul.f32.gmra.mxu0 %v1176_v52  ;;  %1603 = vmatmul.f32.gmra.mxu2 %v1176_v52  ;;  %v5334_v52 = vunpack.i.l.bf16 %v5333_v29 }
 0x111   : > { %4829 = vmatmul.msk.f32.gmra.mxu1 %vm9391_vm4, %v891_v18  ;;  %4857 = vmatmul.msk.f32.gmra.mxu3 %vm9391_vm4, %v891_v18 }
 0x112   : > { %v899_v18 = vsel %vm9390_vm5, %v895_v54, %v5334_v52  ;;  %v1046_v54 = vrot.slane %v6355_v20, 4 }
 0x113   : > { %v903_v14 = vsel %vm578_vm6, %v899_v18, %v5339_v3 }
 0x114   : > { %v1048_v49 = vsel %vm9427_vm3, %v1046_v54, %v1047_v50 }
 0x115   : > { %v6612_v27 = vpop.f32.mrf.mxu3 }
 0x118   : > { %1404 = vmatmul.f32.gmra.mxu0 %v1180_v4  ;;  %1606 = vmatmul.f32.gmra.mxu2 %v1180_v4  ;;  %v6600_v4 = vpop.f32.mrf.mxu1 }
 0x119   : > { %4830 = vmatmul.msk.f32.gmra.mxu1 %vm9391_vm4, %v1243_v33  ;;  %4858 = vmatmul.msk.f32.gmra.mxu3 %vm9391_vm4, %v1243_v33  ;;  %v981_v33 = vsel %vm578_vm6, %v977_v19, %v5340_v39 }
 0x11a   : > { %v1196_v43 = vrot.slane %v981_v33, 4 }
 0x120   : > { %1407 = vmatmul.f32.gmra.mxu0 %v1184_v12  ;;  %1609 = vmatmul.f32.gmra.mxu2 %v1184_v12  ;;  %v5353_v12 = vpop.permute.xlu2 %5352 }
 0x121   : > { %4831 = vmatmul.msk.f32.gmra.mxu1 %vm9391_vm4, %v1201_v16  ;;  %4859 = vmatmul.msk.f32.gmra.mxu3 %vm9391_vm4, %v1201_v16  ;;  %v5354_v57 = vunpack.i.l.bf16 %v5353_v12  ;;  %v5355_v41 = vunpack.i.h.bf16 %v5353_v12  ;;  %v978_v16 = vsel %vm9390_vm5, %v974_v10, %v5350_v30  ;;  %v5365_v12 = vunpack.i.h.bf16 %v5363_v48 }
 0x123   : > { %v982_v38 = vsel %vm578_vm6, %v978_v16, %v5355_v41 }
 0x124   : > { %v1198_v59 = vrot.slane %v982_v38, 4 }
 0x128   : > { %1410 = vmatmul.f32.gmra.mxu0 %v901_v37  ;;  %1612 = vmatmul.f32.gmra.mxu2 %v901_v37  ;;  %v900_v37 = vsel %vm9390_vm5, %v896_v26, %v5349_v8  ;;  %v5368_v3 = vpop.permute.xlu2 %5367  ;;  %v1199_v26 = vsel %vm9427_vm3, %v1196_v43, %v1198_v59 }
 0x129   : > { %4832 = vmatmul.msk.f32.gmra.mxu1 %vm9391_vm4, %v1205_v5  ;;  %4860 = vmatmul.msk.f32.gmra.mxu3 %vm9391_vm4, %v1205_v5  ;;  %v904_v36 = vsel %vm578_vm6, %v900_v37, %v5354_v57  ;;  %v975_v5 = vsel %vm9391_vm4, %v6288_v45, %v5359_v2  ;;  %v5369_v19 = vunpack.i.l.bf16 %v5368_v3  ;;  %v1049_v57 = vrot.slane %v6363_v25, 4 }
 0x12a   : > { %v1242_v52 = vsel %vm9427_vm3, %v904_v36, %v1196_v43  ;;  %v979_v8 = vsel %vm9390_vm5, %v975_v5, %v5364_v61  ;;  %v5370_v16 = vunpack.i.h.bf16 %v5368_v3 }
 0x12b   : > { %v1050_v42 = vsel %vm9427_vm3, %v1047_v50, %v1049_v57  ;;  %v1051_v50 = vrot.slane %v6391_v62, 4 }
 0x12c   : > { %v6621_v6 = vpop.f32.mrf.mxu1 }
 0x130   : > { %1413 = vmatmul.f32.gmra.mxu0 %v902_v47  ;;  %1615 = vmatmul.f32.gmra.mxu2 %v902_v47 }
 0x131   : > { %4833 = vmatmul.msk.f32.gmra.mxu1 %vm9391_vm4, %v1209_v35  ;;  %4861 = vmatmul.msk.f32.gmra.mxu3 %vm9391_vm4, %v1209_v35  ;;  %v976_v35 = vsel %vm9391_vm4, %v6298_v55, %v5360_v1  ;;  %v5378_v1 = vpop.permute.xlu1 %5377 }
 0x132   : > { %v6636_v47 = vpop.f32.mrf.mxu3 }
 0x135   : > { %v1369_v23 = vpop.f32.mrf.mxu0 }
 0x136   : > { %v1370_v7 = vadd.f32 %v1369_v23, %v6607_v56 }
 0x138   : > { %1416 = vmatmul.f32.gmra.mxu0 %v903_v14  ;;  %1618 = vmatmul.f32.gmra.mxu2 %v903_v14  ;;  %v1471_v9 = vadd.f32 %v6559_v15, %v1370_v7 }
 0x139   : > { %4834 = vmatmul.msk.f32.gmra.mxu1 %vm9391_vm4, %v1048_v49  ;;  %4862 = vmatmul.msk.f32.gmra.mxu3 %vm9391_vm4, %v1048_v49 }
 0x13a   : > { %v1756_v60 = vmax.f32 %v1471_v9, 0.0 }
 0x13b   : > { %v1571_v46 = vpop.f32.mrf.mxu2 }
 0x13c   : > { %v1572_v29 = vadd.f32 %v1571_v46, %v6614_v32  ;;  %v1868_v24 = vrot.slane %v1756_v60, 1  ;;  %v6659_v30 = vpop.f32.mrf.mxu3 }
 0x13d   : > { %v1372_v44 = vpop.f32.mrf.mxu0 }
 0x13e   : > { %v1373_v51 = vadd.f32 %v1372_v44, %v6607_v56  ;;  %v6632_v58 = vadd.f32 %v6566_v31, %v1572_v29  ;;  %v6643_v31 = vpop.f32.mrf.mxu1 }
 0x140   : > { %v6641_v15 = vadd.f32 %v6572_v17, %v1373_v51  ;;  %1419 = vmatmul.f32.gmra.mxu0 %v1242_v52  ;;  %1621 = vmatmul.f32.gmra.mxu2 %v1242_v52  ;;  %v1757_v28 = vmax.f32 %v6632_v58, 0.0 }
 0x141   : > { %4835 = vmatmul.msk.f32.gmra.mxu1 %vm9391_vm4, %v1050_v42  ;;  %4863 = vmatmul.msk.f32.gmra.mxu3 %vm9391_vm4, %v1050_v42 }
 0x142   : > { %v1758_v13 = vmax.f32 %v6641_v15, 0.0  ;;  %v1871_v29 = vrot.slane %v1757_v28, 1 }
 0x143   : > { %v1574_v18 = vpop.f32.mrf.mxu2 }
 0x144   : > { %v1869_v39 = vrot.slane %v1758_v13, 1  ;;  %v1575_v17 = vadd.f32 %v1574_v18, %v6614_v32  ;;  %v6682_v54 = vpop.f32.mrf.mxu3  ;;  %v5373_v18 = vpop.permute.xlu0 %5372 }
 0x145   : > { %v1375_v23 = vpop.f32.mrf.mxu0 }
 0x146   : > { %v1376_v14 = vadd.f32 %v1375_v23, %v6607_v56  ;;  %v6655_v45 = vadd.f32 %v6580_v34, %v1575_v17  ;;  %v1870_v33 = vsel %vm499_vm0, %v1868_v24, %v1869_v39  ;;  %v983_v34 = vsel %vm578_vm6, %v979_v8, %v5369_v19  ;;  %v6670_v41 = vpop.f32.mrf.mxu1 }
 0x147   : > { %v6666_v37 = vmax.f32 %v1756_v60, %v1870_v33  ;;  %v1202_v9 = vrot.slane %v983_v34, 4 }
 0x148   : > { %v1759_v10 = vmax.f32 %v6655_v45, 0.0  ;;  %v1477_v7 = vadd.f32 %v6583_v21, %v1376_v14  ;;  %1422 = vmatmul.f32.gmra.mxu0 %v1199_v26  ;;  %1624 = vmatmul.f32.gmra.mxu2 %v1199_v26  ;;  %v980_v21 = vsel %vm9390_vm5, %v976_v35, %v5365_v12  ;;  %v1128_v14 = vrot.slane %v6397_v0, 4 }
 0x149   : > { %9441 = vst [vmem:[#allocation19_spill] sm:$0xff] %v6666_v37  ;;  %v1203_v52 = vsel %vm9427_vm3, %v1198_v59, %v1202_v9  ;;  %v984_v38 = vsel %vm578_vm6, %v980_v21, %v5370_v16 }
 0x14a   : > { %v1872_v46 = vrot.slane %v1759_v10, 1  ;;  %v1760_v43 = vmax.f32 %v1477_v7, 0.0  ;;  %v1206_v19 = vrot.slane %v984_v38, 4 }
 0x14b   : > { %v1577_v36 = vpop.f32.mrf.mxu2 }
 0x14c   : > { %v1874_v44 = vrot.slane %v1760_v43, 1  ;;  %v1578_v2 = vadd.f32 %v1577_v36, %v6614_v32  ;;  %v1873_v48 = vsel %vm499_vm0, %v1871_v29, %v1872_v46  ;;  %v1207_v12 = vsel %vm9427_vm3, %v1202_v9, %v1206_v19  ;;  %v6717_v34 = vpop.f32.mrf.mxu3 }
 0x14d   : > { %v1378_v55 = vpop.f32.mrf.mxu0  ;;  %v6695_v17 = vmax.f32 %v1757_v28, %v1873_v48  ;;  %v5379_v28 = vunpack.i.l.bf16 %v5378_v1 }
 0x14e   : > { %v1379_v51 = vadd.f32 %v1378_v55, %v6607_v56  ;;  %v1679_v58 = vadd.f32 %v6592_v53, %v1578_v2  ;;  %v1875_v61 = vsel %vm499_vm0, %v1869_v39, %v1874_v44  ;;  %v6689_v3 = vpop.f32.mrf.mxu1  ;;  %v1052_v53 = vsel %vm9427_vm3, %v1049_v57, %v1051_v50  ;;  %v5383_v57 = vpop.permute.xlu2 %5382 }
 0x14f   : > { %v6692_v49 = vmax.f32 %v1758_v13, %v1875_v61  ;;  %9442 = vst [vmem:[#allocation20_spill] sm:$0xff] %v6695_v17  ;;  %4836 = vmatmul.msk.f32.gmra.mxu1 %vm9391_vm4, %v1052_v53  ;;  %4864 = vmatmul.msk.f32.gmra.mxu3 %vm9391_vm4, %v1052_v53  ;;  %v1127_v13 = vrot.slane %v6394_v63, 4  ;;  %v5384_v29 = vunpack.i.l.bf16 %v5383_v57  ;;  %v5380_v61 = vunpack.i.h.bf16 %v5378_v1 }
 0x150   : > { %v1761_v15 = vmax.f32 %v1679_v58, 0.0  ;;  %v6686_v60 = vadd.f32 %v6600_v4, %v1379_v51  ;;  %1425 = vmatmul.f32.gmra.mxu0 %v1203_v52  ;;  %1627 = vmatmul.f32.gmra.mxu2 %v1203_v52  ;;  %v5374_v4 = vunpack.i.l.bf16 %v5373_v18  ;;  %v5388_v58 = vpop.permute.xlu0 %5387 }
 0x151   : > { %v1129_v35 = vsel %vm9427_vm3, %v1127_v13, %v1128_v14 }
 0x152   : > { %v1876_v5 = vrot.slane %v1761_v15, 1  ;;  %v9384_v59 = vmax.f32 %v6686_v60, 0.0  ;;  %v1054_v7 = vsel %vm9391_vm4, %v6355_v20, %v5374_v4  ;;  %v1220_v16 = vrot.slane %v1129_v35, 4 }
 0x153   : > { %v1580_v24 = vpop.f32.mrf.mxu2  ;;  %v1058_v20 = vsel %vm9390_vm5, %v1054_v7, %v5379_v28  ;;  %v5389_v4 = vunpack.i.l.bf16 %v5388_v58 }
 0x154   : > { %v6699_v8 = vrot.slane %v9384_v59, 1  ;;  %v1581_v39 = vadd.f32 %v1580_v24, %v6614_v32  ;;  %v1877_v45 = vsel %vm499_vm0, %v1872_v46, %v1876_v5  ;;  %v1245_v21 = vsel %vm9427_vm3, %v1051_v50, %v1220_v16  ;;  %v6744_v52 = vpop.f32.mrf.mxu3  ;;  %v5393_v24 = vpop.permute.xlu1 %5392 }
 0x155   : > { %v6705_v23 = vpop.f32.mrf.mxu0  ;;  %v6722_v46 = vmax.f32 %v1759_v10, %v1877_v45  ;;  %v1130_v10 = vrot.slane %v6424_v11, 4  ;;  %v1062_v55 = vsel %vm578_vm6, %v1058_v20, %v5384_v29  ;;  %v5395_v35 = vunpack.i.h.bf16 %v5393_v24 }
 0x156   : > { %v6710_v26 = vadd.f32 %v6612_v27, %v1581_v39  ;;  %v1879_v33 = vsel %vm499_vm0, %v1874_v44, %v6699_v8  ;;  %v6725_v36 = vpop.f32.mrf.mxu1  ;;  %v5375_v44 = vunpack.i.h.bf16 %v5373_v18  ;;  %v5398_v45 = vpop.permute.xlu2 %5397 }
 0x157   : > { %v6720_v42 = vmax.f32 %v1760_v43, %v1879_v33  ;;  %9444 = vst [vmem:[#allocation22_spill] sm:$0xff] %v6722_v46  ;;  %4837 = vmatmul.msk.f32.gmra.mxu1 %vm9391_vm4, %v1245_v21  ;;  %4865 = vmatmul.msk.f32.gmra.mxu3 %vm9391_vm4, %v1245_v21  ;;  %v1131_v51 = vsel %vm9427_vm3, %v1128_v14, %v1130_v10  ;;  %v5394_v14 = vunpack.i.l.bf16 %v5393_v24 }
 0x158   : > { %9443 = vst [vmem:[#allocation21_spill] sm:$0xff] %v6710_v26  ;;  %v9383_v27 = vmax.f32 %v6710_v26, 0.0  ;;  %1428 = vmatmul.f32.gmra.mxu0 %v1207_v12  ;;  %1630 = vmatmul.f32.gmra.mxu2 %v1207_v12  ;;  %v1223_v38 = vrot.slane %v1131_v51, 4  ;;  %v1055_v53 = vsel %vm9391_vm4, %v6358_v22, %v5375_v44  ;;  %v5390_v22 = vunpack.i.h.bf16 %v5388_v58  ;;  %v5403_v29 = vpop.permute.xlu0 %5402 }
 0x159   : > { %v1059_v13 = vsel %vm9390_vm5, %v1055_v53, %v5380_v61  ;;  %v5404_v44 = vunpack.i.l.bf16 %v5403_v29 }
 0x15a   : > { %v6729_v9 = vrot.slane %v9383_v27, 1  ;;  %v1224_v19 = vsel %vm9427_vm3, %v1220_v16, %v1223_v38  ;;  %v5399_v16 = vunpack.i.l.bf16 %v5398_v45 }
 0x15b   : > { %v6733_v43 = vpop.f32.mrf.mxu2 }
 0x15c   : > { %v1881_v48 = vsel %vm499_vm0, %v1876_v5, %v6729_v9  ;;  %v5385_v5 = vunpack.i.h.bf16 %v5383_v57  ;;  %v1056_v57 = vsel %vm9391_vm4, %v6363_v25, %v5389_v4  ;;  %v6765_v33 = vpop.f32.mrf.mxu3  ;;  %v5400_v25 = vunpack.i.h.bf16 %v5398_v45  ;;  %v5408_v51 = vpop.permute.xlu1 %5407 }
 0x15d   : > { %v6738_v2 = vpop.f32.mrf.mxu0  ;;  %v6746_v50 = vmax.f32 %v1761_v15, %v1881_v48  ;;  %v1132_v15 = vrot.slane %v6459_v40, 4  ;;  %v5409_v61 = vunpack.i.l.bf16 %v5408_v51 }
 0x15e   : > { %v6750_v18 = vpop.f32.mrf.mxu1  ;;  %v1063_v28 = vsel %vm578_vm6, %v1059_v13, %v5385_v5  ;;  %v1041_v13 = vpop.permute.xlu2 %1040 }
 0x15f   : > { %9445 = vst [vmem:[#allocation23_spill] sm:$0xff] %v6746_v50  ;;  %4838 = vmatmul.msk.f32.gmra.mxu1 %vm9391_vm4, %v1224_v19  ;;  %4866 = vmatmul.msk.f32.gmra.mxu3 %vm9391_vm4, %v1224_v19  ;;  %v1133_v12 = vsel %vm9427_vm3, %v1130_v10, %v1132_v15  ;;  %v1134_v10 = vsel %vm9391_vm4, %v6394_v63, %v5390_v22  ;;  %v5405_v19 = vunpack.i.h.bf16 %v5403_v29  ;;  %v1231_v5 = vrot.slane %v1132_v15, 4 }
 0x160   : > { %1431 = vmatmul.f32.gmra.mxu0 %v1062_v55  ;;  %1633 = vmatmul.f32.gmra.mxu2 %v1062_v55  ;;  %v1227_v7 = vrot.slane %v1133_v12, 4  ;;  %v1060_v55 = vsel %vm9390_vm5, %v1056_v57, %v5394_v14  ;;  %v1138_v58 = vsel %vm9390_vm5, %v1134_v10, %v5395_v35  ;;  %v1057_v63 = vsel %vm9391_vm4, %v6391_v62, %v5404_v44  ;;  %v1118_v57 = vpop.permute.xlu0 %1117 }
 0x161   : > { %v1142_v4 = vsel %vm578_vm6, %v1138_v58, %v5400_v25  ;;  %v5410_v22 = vunpack.i.h.bf16 %v5408_v51  ;;  %v1061_v14 = vsel %vm9390_vm5, %v1057_v63, %v5409_v61 }
 0x162   : > { %v1228_v21 = vsel %vm9427_vm3, %v1223_v38, %v1227_v7  ;;  %v1064_v38 = vsel %vm578_vm6, %v1060_v55, %v5399_v16  ;;  %v1232_v12 = vsel %vm9427_vm3, %v1227_v7, %v1231_v5  ;;  %v1219_v35 = vrot.slane %v1142_v4, 4 }
 0x163   : > { %v6753_v39 = vpop.f32.mrf.mxu2  ;;  %v1065_v15 = vsel %vm578_vm6, %v1061_v14, %v1041_v13 }
 0x164   : > { %v6783_v24 = vpop.f32.mrf.mxu3  ;;  %v1244_v10 = vsel %vm9427_vm3, %v1065_v15, %v1219_v35 }
 0x165   : > { %v6759_v1 = vpop.f32.mrf.mxu0 }
 0x166   : > { %v6767_v20 = vpop.f32.mrf.mxu1  ;;  %v1101_v25 = vpop.permute.xlu2 %1100  ;;  %v1388_v27 = vadd.f32 %v6759_v1, %v6607_v56  ;;  %v1587_v1 = vadd.f32 %v6753_v39, %v6614_v32 }
 0x167   : > { %4839 = vmatmul.msk.f32.gmra.mxu1 %vm9391_vm4, %v1228_v21  ;;  %4867 = vmatmul.msk.f32.gmra.mxu3 %vm9391_vm4, %v1228_v21  ;;  %v1082_v21 = vpop.permute.xlu1 %1081 }
 0x168   : > { %1434 = vmatmul.f32.gmra.mxu0 %v1063_v28  ;;  %1636 = vmatmul.f32.gmra.mxu2 %v1063_v28  ;;  %v1135_v28 = vsel %vm9391_vm4, %v6397_v0, %v5405_v19  ;;  %v1136_v55 = vsel %vm9391_vm4, %v6424_v11, %v1082_v21 }
 0x169   : > { %v1139_v16 = vsel %vm9390_vm5, %v1135_v28, %v5410_v22  ;;  %v1140_v61 = vsel %vm9390_vm5, %v1136_v55, %v1101_v25 }
 0x16a   : > { %v1143_v0 = vsel %vm578_vm6, %v1139_v16, %v1118_v57 }
 0x16b   : > { %v6773_v48 = vpop.f32.mrf.mxu2  ;;  %v1221_v51 = vrot.slane %v1143_v0, 4 }
 0x16c   : > { %v6799_v7 = vpop.f32.mrf.mxu3 }
 0x16d   : > { %v6778_v53 = vpop.f32.mrf.mxu0  ;;  %v1222_v63 = vsel %vm9427_vm3, %v1219_v35, %v1221_v51 }
 0x16e   : > { %v6787_v45 = vpop.f32.mrf.mxu1  ;;  %v1103_v14 = vpop.permute.xlu2 %1102  ;;  %v1391_v50 = vadd.f32 %v6778_v53, %v6607_v56  ;;  %v1590_v53 = vadd.f32 %v6773_v48, %v6614_v32  ;;  %v6885_v48 = vadd.f32 %v6659_v30, %v1587_v1 }
 0x16f   : > { %4840 = vmatmul.msk.f32.gmra.mxu1 %vm9391_vm4, %v1232_v12  ;;  %4868 = vmatmul.msk.f32.gmra.mxu3 %vm9391_vm4, %v1232_v12  ;;  %v1084_v5 = vpop.permute.xlu1 %1083 }
 0x170   : > { %1437 = vmatmul.f32.gmra.mxu0 %v1064_v38  ;;  %1639 = vmatmul.f32.gmra.mxu2 %v1064_v38  ;;  %v1120_v38 = vpop.permute.xlu0 %1119  ;;  %v1137_v11 = vsel %vm9391_vm4, %v6459_v40, %v1084_v5 }
 0x171   : > { %v1144_v13 = vsel %vm578_vm6, %v1140_v61, %v1120_v38  ;;  %v1141_v57 = vsel %vm9390_vm5, %v1137_v11, %v1103_v14 }
 0x172   : > { %v1225_v12 = vrot.slane %v1144_v13, 4 }
 0x173   : > { %v6792_v62 = vpop.f32.mrf.mxu2 }
 0x174   : > { %v6810_v4 = vpop.f32.mrf.mxu3  ;;  %v1226_v16 = vsel %vm9427_vm3, %v1221_v51, %v1225_v12 }
 0x175   : > { %v1393_v29 = vpop.f32.mrf.mxu0 }
 0x176   : > { %v6802_v44 = vpop.f32.mrf.mxu1  ;;  %v1394_v59 = vadd.f32 %v1393_v29, %v6607_v56  ;;  %v6858_v29 = vadd.f32 %v6670_v41, %v1388_v27 }
 0x178   : > { %1440 = vmatmul.f32.gmra.mxu0 %v1244_v10  ;;  %1642 = vmatmul.f32.gmra.mxu2 %v1244_v10  ;;  %v1122_v15 = vpop.permute.xlu0 %1121 }
 0x179   : > { %v1145_v10 = vsel %vm578_vm6, %v1141_v57, %v1122_v15 }
 0x17a   : > { %v1229_v0 = vrot.slane %v1145_v10, 4 }
 0x17b   : > { %v6806_v58 = vpop.f32.mrf.mxu2 }
 0x17c   : > { %v6821_v21 = vpop.f32.mrf.mxu3  ;;  %v1230_v61 = vsel %vm9427_vm3, %v1225_v12, %v1229_v0  ;;  %v1382_v12 = vadd.f32 %v6705_v23, %v6607_v56  ;;  %v1385_v0 = vadd.f32 %v6738_v2, %v6607_v56  ;;  %v1584_v23 = vadd.f32 %v6733_v43, %v6614_v32 }
 0x17d   : > { %v1396_v19 = vpop.f32.mrf.mxu0 }
 0x17e   : > { %v6813_v22 = vpop.f32.mrf.mxu1  ;;  %v6845_v46 = vadd.f32 %v6621_v6, %v1382_v12  ;;  %v1397_v37 = vadd.f32 %v1396_v19, %v6607_v56  ;;  %v6853_v2 = vadd.f32 %v6643_v31, %v1385_v0  ;;  %v6865_v19 = vadd.f32 %v6725_v36, %v1394_v59 }
 0x17f   : > { %v6871_v0 = vadd.f32 %v6689_v3, %v1391_v50  ;;  %v1593_v59 = vadd.f32 %v6792_v62, %v6614_v32 }
 0x180   : > { %1443 = vmatmul.f32.gmra.mxu0 %v1222_v63  ;;  %1645 = vmatmul.f32.gmra.mxu2 %v1222_v63  ;;  %v6874_v41 = vadd.f32 %v6750_v18, %v1397_v37  ;;  %v6892_v18 = vadd.f32 %v6682_v54, %v1590_v53 }
 0x181   : > { %v1770_v30 = vmax.f32 %v6871_v0, 0.0  ;;  %v6904_v54 = vadd.f32 %v6717_v34, %v1593_v59 }
 0x183   : > { %v6817_v28 = vpop.f32.mrf.mxu2 }
 0x184   : > { %v6827_v38 = vpop.f32.mrf.mxu3 }
 0x185   : > { %v1399_v35 = vpop.f32.mrf.mxu0 }
 0x186   : > { %v1512_v40 = vpop.f32.mrf.mxu1  ;;  %v1400_v6 = vadd.f32 %v1399_v35, %v6607_v56  ;;  %v1596_v35 = vadd.f32 %v6806_v58, %v6614_v32 }
 0x188   : > { %1446 = vmatmul.f32.gmra.mxu0 %v1226_v16  ;;  %1648 = vmatmul.f32.gmra.mxu2 %v1226_v16  ;;  %v6889_v37 = vadd.f32 %v6767_v20, %v1400_v6 }
 0x18a   : > { %v1776_v53 = vmax.f32 %v6889_v37, 0.0  ;;  %v9447_v37 = vmax.f32 %v6874_v41, 0.0 }
 0x18b   : > { %v6824_v55 = vpop.f32.mrf.mxu2 }
 0x18c   : > { %v1717_v11 = vpop.f32.mrf.mxu3 }
 0x18d   : > { %v1402_v25 = vpop.f32.mrf.mxu0 }
 0x18e   : > { %v1515_v5 = vpop.f32.mrf.mxu1  ;;  %v1403_v1 = vadd.f32 %v1402_v25, %v6607_v56  ;;  %v6920_v25 = vadd.f32 %v6744_v52, %v1596_v35 }
 0x190   : > { %1449 = vmatmul.f32.gmra.mxu0 %v1230_v61  ;;  %1651 = vmatmul.f32.gmra.mxu2 %v1230_v61 }
 0x193   : > { %v6829_v63 = vpop.f32.mrf.mxu2 }
 0x194   : > { %v6833_v10 = vpop.f32.mrf.mxu3 }
 0x195   : > { %v1405_v51 = vpop.f32.mrf.mxu0 }
 0x196   : > { %v1518_v57 = vpop.f32.mrf.mxu1  ;;  %v1406_v62 = vadd.f32 %v1405_v51, %v6607_v56 }
 0x19b   : > { %v6831_v13 = vpop.f32.mrf.mxu2 }
 0x19c   : > { %v6867_v43 = vpop.f32.mrf.mxu3  ;;  %v1608_v52 = vadd.f32 %v6831_v13, %v6614_v32  ;;  %v1602_v13 = vadd.f32 %v6824_v55, %v6614_v32 }
 0x19d   : > { %v1408_v14 = vpop.f32.mrf.mxu0 }
 0x19e   : > { %v6839_v61 = vpop.f32.mrf.mxu1  ;;  %v1409_v36 = vadd.f32 %v1408_v14, %v6607_v56  ;;  %v6967_v55 = vadd.f32 %v6810_v4, %v1608_v52 }
 0x1a0   : > { %v6908_v6 = vadd.f32 %v6813_v22, %v1409_v36  ;;  %v6923_v22 = vadd.f32 %v6802_v44, %v1406_v62 }
 0x1a2   : > { %v1782_v44 = vmax.f32 %v6908_v6, 0.0 }
 0x1a3   : > { %v1610_v15 = vpop.f32.mrf.mxu2 }
 0x1a5   : > { %v1411_v16 = vpop.f32.mrf.mxu0 }
 0x1a6   : > { %v1412_v27 = vadd.f32 %v1411_v16, %v6607_v56  ;;  %v6898_v16 = vpop.f32.mrf.mxu1 }
 0x1a8   : > { %v1513_v20 = vadd.f32 %v1512_v40, %v1412_v27 }
 0x1aa   : > { %v1784_v27 = vmax.f32 %v1513_v20, 0.0 }
 0x1ab   : > { %v1613_v17 = vpop.f32.mrf.mxu2 }
 0x1ac   : > { %v1614_v58 = vadd.f32 %v1613_v17, %v6614_v32  ;;  %v1611_v17 = vadd.f32 %v1610_v15, %v6614_v32  ;;  %v6943_v15 = vpop.f32.mrf.mxu3 }
 0x1ad   : > { %v1414_v26 = vpop.f32.mrf.mxu0 }
 0x1ae   : > { %v1415_v12 = vadd.f32 %v1414_v26, %v6607_v56  ;;  %v6878_v26 = vadd.f32 %v6636_v47, %v1584_v23  ;;  %v9386_v47 = vmax.f32 %v6865_v19, 0.0  ;;  %v9387_v23 = vmax.f32 %v6874_v41, 0.0 }
 0x1af   : > { %v6941_v35 = vadd.f32 %v6827_v38, %v1614_v58  ;;  %v1780_v38 = vmax.f32 %v6923_v22, 0.0  ;;  %v6959_v20 = vadd.f32 %v6821_v21, %v1611_v17  ;;  %v6970_v21 = vpop.f32.mrf.mxu1  ;;  %v9449_v41 = vmax.f32 %v6865_v19, 0.0 }
 0x1b0   : > { %v1516_v50 = vadd.f32 %v1515_v5, %v1415_v12  ;;  %v1599_v12 = vadd.f32 %v6817_v28, %v6614_v32  ;;  %v6917_v34 = vrot.slane %v9386_v47, 1  ;;  %v6928_v28 = vrot.slane %v9387_v23, 1 }
 0x1b1   : > { %v1914_v4 = vrot.slane %v1780_v38, 1  ;;  %v1783_v52 = vmax.f32 %v6959_v20, 0.0 }
 0x1b2   : > { %v1786_v31 = vmax.f32 %v1516_v50, 0.0  ;;  %v6935_v50 = vadd.f32 %v6787_v45, %v1403_v1  ;;  %v6946_v62 = vadd.f32 %v6765_v33, %v1599_v12  ;;  %v1785_v12 = vmax.f32 %v6941_v35, 0.0 }
 0x1b3   : > { %v1616_v14 = vpop.f32.mrf.mxu2 }
 0x1b4   : > { %v1617_v5 = vadd.f32 %v1616_v14, %v6614_v32  ;;  %v1605_v14 = vadd.f32 %v6829_v63, %v6614_v32  ;;  %v1918_v63 = vrot.slane %v1782_v44, 1  ;;  %v6997_v3 = vpop.f32.mrf.mxu3 }
 0x1b5   : > { %v1417_v51 = vpop.f32.mrf.mxu0 }
 0x1b6   : > { %v1418_v40 = vadd.f32 %v1417_v51, %v6607_v56  ;;  %v6930_v59 = vadd.f32 %v1717_v11, %v1617_v5  ;;  %v6950_v11 = vrot.slane %v1776_v53, 1  ;;  %v1922_v5 = vrot.slane %v1784_v27, 1 }
 0x1b7   : > { %v1778_v51 = vmax.f32 %v6935_v50, 0.0  ;;  %v6979_v50 = vadd.f32 %v6799_v7, %v1605_v14  ;;  %v1924_v14 = vrot.slane %v1785_v12, 1 }
 0x1b8   : > { %v6932_v36 = vadd.f32 %v1518_v57, %v1418_v40  ;;  %v1926_v57 = vrot.slane %v1786_v31, 1  ;;  %v1787_v1 = vmax.f32 %v6930_v59, 0.0 }
 0x1ba   : > { %v1788_v45 = vmax.f32 %v6932_v36, 0.0  ;;  %v1928_v35 = vrot.slane %v1787_v1, 1 }
 0x1bb   : > { %v1619_v33 = vpop.f32.mrf.mxu2 }
 0x1bc   : > { %v1930_v6 = vrot.slane %v1788_v45, 1  ;;  %v1620_v58 = vadd.f32 %v1619_v33, %v6614_v32  ;;  %v1927_v33 = vsel %vm499_vm0, %v1922_v5, %v1926_v57 }
 0x1bd   : > { %v1420_v40 = vpop.f32.mrf.mxu0  ;;  %v2062_v7 = vmax.f32 %v1784_v27, %v1927_v33 }
 0x1be   : > { %v1421_v22 = vadd.f32 %v1420_v40, %v6607_v56  ;;  %v6974_v17 = vadd.f32 %v6833_v10, %v1620_v58  ;;  %v1931_v59 = vsel %vm499_vm0, %v1926_v57, %v1930_v6  ;;  %v1923_v10 = vsel %vm499_vm0, %v1918_v63, %v1922_v5 }
 0x1bf   : > { %v2064_v47 = vmax.f32 %v1786_v31, %v1931_v59  ;;  %v6988_v58 = vadd.f32 %v6783_v24, %v1602_v13  ;;  %v1910_v40 = vrot.slane %v1778_v51, 1  ;;  %v1781_v57 = vmax.f32 %v6967_v55, 0.0 }
 0x1c0   : > { %v9389_v39 = vmax.f32 %v6974_v17, 0.0  ;;  %v6984_v23 = vadd.f32 %v6839_v61, %v1421_v22  ;;  %v1919_v59 = vsel %vm499_vm0, %v1914_v4, %v1918_v63  ;;  %v1779_v61 = vmax.f32 %v6979_v50, 0.0 }
 0x1c1   : > { %2255 = vmatpush.msrb.mxu1 %v2064_v47  ;;  %v1920_v22 = vrot.slane %v1783_v52, 1  ;;  %v2060_v24 = vmax.f32 %v1782_v44, %v1923_v10  ;;  %v1915_v13 = vsel %vm499_vm0, %v1910_v40, %v1914_v4  ;;  %v1929_v63 = vsel %vm499_vm0, %v1924_v14, %v1928_v35 }
 0x1c2   : > { %v1932_v31 = vrot.slane %v9389_v39, 1  ;;  %v9388_v20 = vmax.f32 %v6984_v23, 0.0  ;;  %v1777_v33 = vmax.f32 %v6988_v58, 0.0  ;;  %v2058_v44 = vmax.f32 %v1780_v38, %v1919_v59  ;;  %v7018_v38 = vpop.f32.mrf.mxu1 }
 0x1c3   : > { %v1622_v5 = vpop.f32.mrf.mxu2  ;;  %2256 = vmatpush.msrb.mxu1 %v2062_v7  ;;  %v1911_v4 = vsel %vm499_vm0, %v6950_v11, %v1910_v40  ;;  %v1916_v7 = vrot.slane %v1781_v57, 1  ;;  %v2056_v58 = vmax.f32 %v1778_v51, %v1915_v13  ;;  %v1912_v40 = vrot.slane %v1779_v61, 1 }
 0x1c4   : > { %v7001_v47 = vrot.slane %v9388_v20, 1  ;;  %v1623_v27 = vadd.f32 %v1622_v5, %v6614_v32  ;;  %v1933_v55 = vsel %vm499_vm0, %v1928_v35, %v1932_v31  ;;  %v1925_v5 = vsel %vm499_vm0, %v1920_v22, %v1924_v14 }
 0x1c5   : > { %v7007_v50 = vpop.f32.mrf.mxu0  ;;  %2257 = vmatpush.msrb.mxu1 %v2060_v24  ;;  %v2065_v10 = vmax.f32 %v1787_v1, %v1933_v55  ;;  %v1775_v35 = vmax.f32 %v6946_v62, 0.0  ;;  %v2063_v24 = vmax.f32 %v1785_v12, %v1929_v63  ;;  %v1907_v14 = vsel %vm499_vm0, %v6928_v28, %v6950_v11 }
 0x1c6   : > { %v7012_v20 = vadd.f32 %v6867_v43, %v1623_v27  ;;  %v1935_v39 = vsel %vm499_vm0, %v1930_v6, %v7001_v47  ;;  %v1921_v6 = vsel %vm499_vm0, %v1916_v7, %v1920_v22  ;;  %v1894_v62 = vrot.slane %v1770_v30, 1 }
 0x1c7   : > { %2258 = vmatpush.msrb.mxu1 %v2058_v44  ;;  %2373 = vmatpush.msrb.mxu0 %v2065_v10  ;;  %v7022_v1 = vmax.f32 %v1788_v45, %v1935_v39  ;;  %v1773_v51 = vmax.f32 %v6920_v25, 0.0  ;;  %v2054_v39 = vmax.f32 %v1776_v53, %v1911_v4  ;;  %v2061_v36 = vmax.f32 %v1783_v52, %v1925_v5  ;;  %v7060_v5 = vpop.f32.mrf.mxu3 }
 0x1c8   : > { %v1791_v43 = vmax.f32 %v7012_v20, 0.0  ;;  %v1908_v45 = vrot.slane %v1777_v33, 1  ;;  %v1903_v11 = vsel %vm499_vm0, %v6917_v34, %v6928_v28  ;;  %v1917_v59 = vsel %vm499_vm0, %v1912_v40, %v1916_v7 }
 0x1c9   : > { %2259 = vmatpush.msrb.mxu1 %v2056_v58  ;;  %2374 = vmatpush.msrb.mxu0 %v2063_v24  ;;  %v9446_v22 = vmax.f32 %v6858_v29, 0.0  ;;  %v1771_v13 = vmax.f32 %v6904_v54, 0.0  ;;  %v2052_v53 = vmax.f32 %v9447_v37, %v1907_v14  ;;  %v2059_v52 = vmax.f32 %v1781_v57, %v1921_v6 }
 0x1ca   : > { %v7036_v12 = vrot.slane %v1791_v43, 1  ;;  %v1904_v55 = vrot.slane %v1775_v35, 1  ;;  %v1899_v63 = vsel %vm499_vm0, %v1894_v62, %v6917_v34  ;;  %v1913_v28 = vsel %vm499_vm0, %v1908_v45, %v1912_v40 }
 0x1cb   : > { %v1890_v25 = vrot.slane %v9446_v22, 1  ;;  %v7045_v27 = vpop.f32.mrf.mxu2  ;;  %2260 = vmatpush.msrb.mxu1 %v2054_v39  ;;  %2375 = vmatpush.msrb.mxu0 %v2061_v36  ;;  %v9448_v10 = vmax.f32 %v6853_v2, 0.0  ;;  %v2050_v7 = vmax.f32 %v9449_v41, %v1903_v11  ;;  %v2057_v57 = vmax.f32 %v1779_v61, %v1917_v59 }
 0x1cc   : > { %v1937_v44 = vsel %vm499_vm0, %v1932_v31, %v7036_v12  ;;  %v9450_v34 = vmax.f32 %v6974_v17, 0.0  ;;  %v1769_v24 = vmax.f32 %v6892_v18, 0.0  ;;  %v1900_v31 = vrot.slane %v1773_v51, 1 }
 0x1cd   : > { %v1886_v54 = vrot.slane %v9448_v10, 1  ;;  %v7056_v4 = vpop.f32.mrf.mxu0  ;;  %2261 = vmatpush.msrb.mxu1 %v2052_v53  ;;  %2376 = vmatpush.msrb.mxu0 %v2059_v52  ;;  %v1895_v40 = vsel %vm499_vm0, %v1890_v25, %v1894_v62  ;;  %v1909_v14 = vsel %vm499_vm0, %v1904_v55, %v1908_v45  ;;  %v9451_v6 = vmax.f32 %v6845_v46, 0.0 }
 0x1ce   : > { %v7064_v58 = vmax.f32 %v9450_v34, %v1937_v44  ;;  %v2048_v19 = vmax.f32 %v1770_v30, %v1899_v63  ;;  %v2055_v61 = vmax.f32 %v1777_v33, %v1913_v28  ;;  %v1767_v17 = vmax.f32 %v6885_v48, 0.0 }
 0x1cf   : > { %v1882_v39 = vrot.slane %v9451_v6, 1  ;;  %2262 = vmatpush.msrb.mxu1 %v2050_v7  ;;  %2377 = vmatpush.msrb.mxu0 %v2057_v57  ;;  %v1896_v36 = vrot.slane %v1771_v13, 1  ;;  %v1891_v11 = vsel %vm499_vm0, %v1886_v54, %v1890_v25  ;;  %v1905_v18 = vsel %vm499_vm0, %v1900_v31, %v1904_v55  ;;  %v7095_v7 = vpop.f32.mrf.mxu3 }
 0x1d0   : > { %v9452_v62 = vmov %v9446_v22  ;;  %v2053_v59 = vmax.f32 %v1775_v35, %v1909_v14  ;;  %v7078_v22 = vpop.f32.mrf.mxu1  ;;  %v1765_v37 = vmax.f32 %v6878_v26, 0.0  ;;  %v1892_v0 = vrot.slane %v1769_v24, 1 }
 0x1d1   : > { %2263 = vmatpush.msrb.mxu1 %v2048_v19  ;;  %2378 = vmatpush.msrb.mxu0 %v2055_v61  ;;  %v2046_v45 = vmax.f32 %v9452_v62, %v1895_v40  ;;  %v1887_v30 = vsel %vm499_vm0, %v1882_v39, %v1886_v54  ;;  %v1901_v48 = vsel %vm499_vm0, %v1896_v36, %v1900_v31  ;;  %v1888_v29 = vrot.slane %v1767_v17, 1  ;;  %v9460_v61 = vld [vmem:[#allocation22_spill] sm:$0xff] }
 0x1d2   : > { %v9453_v25 = vmov %v9448_v10  ;;  %v2051_v52 = vmax.f32 %v1773_v51, %v1905_v18  ;;  %v1883_v35 = vsel %vm499_vm0, %v6699_v8, %v1882_v39  ;;  %v1897_v55 = vsel %vm499_vm0, %v1892_v0, %v1896_v36  ;;  %v9459_v39 = vld [vmem:[#allocation23_spill] sm:$0xff] }
 0x1d3   : > { %v7083_v33 = vpop.f32.mrf.mxu2  ;;  %2264 = vmatpush.msrb.mxu1 %v2046_v45  ;;  %2379 = vmatpush.msrb.mxu0 %v2053_v59  ;;  %v2044_v53 = vmax.f32 %v9453_v25, %v1891_v11  ;;  %v9454_v63 = vmov %v9451_v6  ;;  %v2049_v44 = vmax.f32 %v1771_v13, %v1901_v48  ;;  %v1884_v10 = vrot.slane %v1765_v37, 1  ;;  %v9458_v6 = vld [vmem:[#allocation19_spill] sm:$0xff] }
 0x1d4   : > { %v2042_v28 = vmax.f32 %v9454_v63, %v1887_v30  ;;  %v1893_v54 = vsel %vm499_vm0, %v1888_v29, %v1892_v0  ;;  %v9455_v2 = vmax.f32 %v6686_v60, 0.0  ;;  %v2047_v41 = vmax.f32 %v1769_v24, %v1897_v55  ;;  %v9456_v60 = vld [vmem:[#allocation21_spill] sm:$0xff] }
 0x1d5   : > { %v1429_v26 = vpop.f32.mrf.mxu0  ;;  %2265 = vmatpush.msrb.mxu1 %v2044_v53  ;;  %2380 = vmatpush.msrb.mxu0 %v2051_v52  ;;  %v1889_v8 = vsel %vm499_vm0, %v1884_v10, %v1888_v29  ;;  %v2045_v57 = vmax.f32 %v1767_v17, %v1893_v54  ;;  %v1885_v46 = vsel %vm499_vm0, %v6729_v9, %v1884_v10  ;;  %v9457_v24 = vmax.f32 %v9456_v60, 0.0  ;;  %v9461_v17 = vld [vmem:[#allocation20_spill] sm:$0xff] }
 0x1d6   : > { %v2040_v51 = vmax.f32 %v9455_v2, %v1883_v35  ;;  %v2043_v34 = vmax.f32 %v1765_v37, %v1889_v8  ;;  %v1424_v53 = vadd.f32 %v7007_v50, %v6607_v56  ;;  %v1427_v35 = vadd.f32 %v7056_v4, %v6607_v56 }
 0x1d7   : > { %2266 = vmatpush.msrb.mxu1 %v2042_v28  ;;  %2381 = vmatpush.msrb.mxu0 %v2049_v44  ;;  %v2041_v14 = vmax.f32 %v9457_v24, %v1885_v46  ;;  %v7106_v19 = vpop.f32.mrf.mxu3  ;;  %v1430_v63 = vadd.f32 %v1429_v26, %v6607_v56  ;;  %v1626_v10 = vadd.f32 %v7045_v27, %v6614_v32 }
 0x1d8   : > { %v1536_v31 = vpop.f32.mrf.mxu1  ;;  %v7118_v28 = vadd.f32 %v6898_v16, %v1424_v53  ;;  %v7126_v2 = vadd.f32 %v6970_v21, %v1427_v35  ;;  %v7147_v60 = vadd.f32 %v7083_v33, %v6614_v32 }
 0x1d9   : > { %2267 = vmatpush.msrb.mxu1 %v2040_v51  ;;  %2382 = vmatpush.msrb.mxu0 %v2047_v41  ;;  %v7130_v26 = vadd.f32 %v7018_v38, %v1430_v63  ;;  %v7136_v46 = vadd.f32 %v6943_v15, %v1626_v10 }
 0x1da   : > { %v1792_v41 = vmax.f32 %v7118_v28, 0.0  ;;  %v1794_v38 = vmax.f32 %v7126_v2, 0.0 }
 0x1db   : > { %v1631_v13 = vpop.f32.mrf.mxu2  ;;  %2268 = vmatpush.msrb.mxu1 %v6720_v42  ;;  %2383 = vmatpush.msrb.mxu0 %v2045_v57  ;;  %v1796_v15 = vmax.f32 %v7130_v26, 0.0  ;;  %v9467_v26 = vmov 0 }
 0x1dc   : > { %v1632_v21 = vadd.f32 %v1631_v13, %v6614_v32 }
 0x1dd   : > { %v1432_v40 = vpop.f32.mrf.mxu0  ;;  %2269 = vmatpush.msrb.mxu1 %v6692_v49  ;;  %2384 = vmatpush.msrb.mxu0 %v2043_v34 }
 0x1de   : > { %v1433_v54 = vadd.f32 %v1432_v40, %v6607_v56 }
 0x1df   : > { %2270 = vmatpush.msrb.mxu1 %v9458_v6  ;;  %2385 = vmatpush.msrb.mxu0 %v2041_v14  ;;  %v1741_v49 = vpop.f32.mrf.mxu3 }
 0x1e0   : > { %v1539_v36 = vpop.f32.mrf.mxu1  ;;  %v7140_v34 = vadd.f32 %v7078_v22, %v1433_v54 }
 0x1e1   : > { %2386 = vmatpush.msrb.mxu0 %v9459_v39 }
 0x1e3   : > { %v1634_v9 = vpop.f32.mrf.mxu2  ;;  %2387 = vmatpush.msrb.mxu0 %v9460_v61 }
 0x1e5   : > { %v1435_v42 = vpop.f32.mrf.mxu0  ;;  %2388 = vmatpush.msrb.mxu0 %v9461_v17 }
 0x1e6   : > { %v1436_v16 = vadd.f32 %v1435_v42, %v6607_v56 }
 0x1e7   : > { %v7110_v37 = vpop.f32.mrf.mxu3 }
 0x1e8   : > { %v1542_v62 = vpop.f32.mrf.mxu1  ;;  %v7151_v61 = vadd.f32 %v1536_v31, %v1436_v16 }
 0x1ea   : > { %v1800_v53 = vmax.f32 %v7151_v61, 0.0  ;;  %v1938_v61 = vrot.slane %v1792_v41, 1 }
 0x1eb   : > { %v1637_v11 = vpop.f32.mrf.mxu2 }
 0x1ec   : > { %v1638_v22 = vadd.f32 %v1637_v11, %v6614_v32 }
 0x1ed   : > { %v1438_v18 = vpop.f32.mrf.mxu0 }
 0x1ee   : > { %v1439_v8 = vadd.f32 %v1438_v18, %v6607_v56 }
 0x1ef   : > { %v1747_v25 = vpop.f32.mrf.mxu3 }
 0x1f0   : > { %v1545_v0 = vpop.f32.mrf.mxu1  ;;  %v7155_v42 = vadd.f32 %v1539_v36, %v1439_v8 }
 0x1f3   : > { %v1640_v45 = vpop.f32.mrf.mxu2 }
 0x1f4   : > { %v1641_v17 = vadd.f32 %v1640_v45, %v6614_v32  ;;  %v7168_v45 = vadd.f32 %v7106_v19, %v1638_v22 }
 0x1f5   : > { %v1441_v59 = vpop.f32.mrf.mxu0 }
 0x1f6   : > { %v1442_v50 = vadd.f32 %v1441_v59, %v6607_v56  ;;  %v1798_v59 = vmax.f32 %v7140_v34, 0.0  ;;  %v7171_v35 = vadd.f32 %v1741_v49, %v1641_v17 }
 0x1f7   : > { %v1750_v51 = vpop.f32.mrf.mxu3 }
 0x1f8   : > { %v1548_v29 = vpop.f32.mrf.mxu1  ;;  %v7142_v40 = vadd.f32 %v1542_v62, %v1442_v50  ;;  %v7160_v62 = vadd.f32 %v7060_v5, %v1632_v21  ;;  %v1802_v5 = vmax.f32 %v7155_v42, 0.0  ;;  %v9409_v42 = vmov 1.0  }
 0x1fb   : > { %v1643_v30 = vpop.f32.mrf.mxu2 }
 0x1fc   : > { %v1644_v11 = vadd.f32 %v1643_v30, %v6614_v32 }
 0x1fd   : > { %v1444_v48 = vpop.f32.mrf.mxu0 }
 0x1fe   : > { %v1445_v4 = vadd.f32 %v1444_v48, %v6607_v56  ;;  %v1635_v48 = vadd.f32 %v1634_v9, %v6614_v32  ;;  %v7179_v19 = vadd.f32 %v7110_v37, %v1644_v11  ;;  %v1801_v11 = vmax.f32 %v7168_v45, 0.0 }
 0x1ff   : > { %v1753_v9 = vpop.f32.mrf.mxu3  ;;  %v7222_v45 = vadd.f32 %v6997_v3, %v7147_v60 }
 0x200   : > { %v1546_v24 = vadd.f32 %v1545_v0, %v1445_v4  ;;  %v1551_v39 = vpop.f32.mrf.mxu1  ;;  %v1804_v0 = vmax.f32 %v7142_v40, 0.0  ;;  %v1950_v40 = vrot.slane %v1798_v59, 1  ;;  %v7209_v17 = vadd.f32 %v7095_v7, %v1635_v48 }
 0x202   : > { %v1962_v10 = vrot.slane %v1804_v0, 1 }
 0x203   : > { %v1646_v52 = vpop.f32.mrf.mxu2 }
 0x204   : > { %v1647_v33 = vadd.f32 %v1646_v52, %v6614_v32 }
 0x205   : > { %v1447_v55 = vpop.f32.mrf.mxu0 }
 0x206   : > { %v1448_v44 = vadd.f32 %v1447_v55, %v6607_v56  ;;  %v7173_v55 = vadd.f32 %v1747_v25, %v1647_v33  ;;  %v1954_v33 = vrot.slane %v1800_v53, 1 }
 0x208   : > { %v1549_v27 = vadd.f32 %v1548_v29, %v1448_v44  ;;  %v2090_v29 = vlaneseq  ;;  %v1955_v3 = vsel %vm499_vm0, %v1950_v40, %v1954_v33 }
 0x20a   : > { %v1808_v18 = vmax.f32 %v1549_v27, 0.0  ;;  %v7176_v50 = vshrl.u32 %v2090_v29, 7  ;;  %v7181_v16 = vand.u32 127, %v2090_v29 }
 0x20b   : > { %v1649_v57 = vpop.f32.mrf.mxu2 }
 0x20c   : > { %v1650_v14 = vadd.f32 %v1649_v57, %v6614_v32  ;;  %v1970_v63 = vrot.slane %v1808_v18, 1  ;;  %v2108_v27 = vmul.u32 2, %v7176_v50  ;;  %v1807_v57 = vmax.f32 %v7173_v55, 0.0 }
 0x20d   : > { %v1450_v6 = vpop.f32.mrf.mxu0  ;;  %v7282_v2 = vadd.s32 24, %v7176_v50 }
 0x20e   : > { %v1451_v13 = vadd.f32 %v1450_v6, %v6607_v56  ;;  %v1806_v56 = vmax.f32 %v1546_v24, 0.0  ;;  %v1751_v36 = vadd.f32 %v1750_v51, %v1650_v14  ;;  %vm7193_vm7 = vcmp.eq.s32.totalorder %v7181_v16, %v2108_v27 }
 0x20f   : > { %v7198_v14 = vadd.s32 8, %v7176_v50  ;;  %v1958_v6 = vrot.slane %v1802_v5, 1  ;;  %4926 = vmatmul.msk.f32.vlgmr.msrb.gmra.mxu0 %vm7193_vm7, %v9409_v42  ;;  %4897 = vmatmul.msk.f32.vlgmr.msrb.gmra.mxu1 %vm7193_vm7, %v9409_v42 }
 0x210   : > { %v1552_v31 = vadd.f32 %v1551_v39, %v1451_v13  ;;  %v1966_v4 = vrot.slane %v1806_v56, 1  ;;  %v1809_v51 = vmax.f32 %v1751_v36, 0.0  ;;  %v1805_v39 = vmax.f32 %v7179_v19, 0.0 }
 0x211   : > { %v1803_v36 = vmax.f32 %v7171_v35, 0.0  ;;  %v1963_v29 = vsel %vm499_vm0, %v1958_v6, %v1962_v10  ;;  %v2109_v7 = vmul.u32 2, %v7198_v14  ;;  %v1946_v35 = vrot.slane %v1796_v15, 1 }
 0x212   : > { %v1810_v52 = vmax.f32 %v1552_v31, 0.0  ;;  %v1972_v22 = vrot.slane %v1809_v51, 1  ;;  %v1967_v13 = vsel %vm499_vm0, %v1962_v10, %v1966_v4  ;;  %v1964_v48 = vrot.slane %v1805_v39, 1 }
 0x213   : > { %v1652_v44 = vpop.f32.mrf.mxu2  ;;  %v2082_v55 = vmax.f32 %v1804_v0, %v1967_v13  ;;  %v2080_v0 = vmax.f32 %v1802_v5, %v1963_v29  ;;  %vm7230_vm8 = vcmp.eq.s32.totalorder %v7181_v16, %v2109_v7  ;;  %v9464_v10 = vmov 0 }
 0x214   : > { %v1974_v30 = vrot.slane %v1810_v52, 1  ;;  %v1653_v54 = vadd.f32 %v1652_v44, %v6614_v32  ;;  %v1971_v32 = vsel %vm499_vm0, %v1966_v4, %v1970_v63  ;;  %v9465_v10 = vsel %vm7230_vm8, 4294967295, %v9464_v10 }
 0x215   : > { %v2084_v31 = vmax.f32 %v1806_v56, %v1971_v32  ;;  %9466 = vst [vmem:[#allocation21_spill] sm:$0xff] %v9465_v10  ;;  %v1960_v19 = vrot.slane %v1803_v36, 1  ;;  %v1942_v4 = vrot.slane %v1794_v38, 1 }
 0x216   : > { %v1754_v49 = vadd.f32 %v1753_v9, %v1653_v54  ;;  %v2088_v8 = vmax.f32 %v1810_v52, %v1974_v30  ;;  %v1975_v25 = vsel %vm499_vm0, %v1970_v63, %v1974_v30  ;;  %v1968_v52 = vrot.slane %v1807_v57, 1 }
 0x217   : > { %v2086_v21 = vmax.f32 %v1808_v18, %v1975_v25  ;;  %v1959_v30 = vsel %vm499_vm0, %v1954_v33, %v1958_v6  ;;  %v1799_v54 = vmax.f32 %v7209_v17, 0.0  ;;  %v1956_v25 = vrot.slane %v1801_v11, 1  ;;  %4927 = vmatmul.msk.f32.gmra.mxu0 %vm7230_vm8, %v9409_v42  ;;  %4898 = vmatmul.msk.f32.gmra.mxu1 %vm7230_vm8, %v9409_v42 }
 0x218   : > { %v1811_v37 = vmax.f32 %v1754_v49, 0.0  ;;  %4911 = vmatpush.msk.msrb.mxu3 %vm499_vm0, %v2088_v8  ;;  %v1973_v56 = vsel %vm499_vm0, %v1968_v52, %v1972_v22  ;;  %v1969_v60 = vsel %vm499_vm0, %v1964_v48, %v1968_v52  ;;  %v2078_v5 = vmax.f32 %v1800_v53, %v1959_v30 }
 0x219   : > { %v7242_v49 = vadd.s32 16, %v7176_v50  ;;  %v1797_v8 = vmax.f32 %v7160_v62, 0.0  ;;  %v1965_v32 = vsel %vm499_vm0, %v1960_v19, %v1964_v48  ;;  %v2076_v62 = vmax.f32 %v1798_v59, %v1955_v3 }
 0x21a   : > { %v1976_v18 = vrot.slane %v1811_v37, 1  ;;  %2319 = vmatpush.msrb.mxu3 %v2086_v21  ;;  %v1951_v21 = vsel %vm499_vm0, %v1946_v35, %v1950_v40  ;;  %v2083_v53 = vmax.f32 %v1805_v39, %v1969_v60  ;;  %v1952_v40 = vrot.slane %v1799_v54, 1 }
 0x21b   : > { %v1961_v6 = vsel %vm499_vm0, %v1956_v25, %v1960_v19  ;;  %v2074_v13 = vmax.f32 %v1796_v15, %v1951_v21  ;;  %v2081_v17 = vmax.f32 %v1803_v36, %v1965_v32  ;;  %v2110_v33 = vmul.u32 2, %v7242_v49 }
 0x21c   : > { %2320 = vmatpush.msrb.mxu3 %v2084_v31  ;;  %v2089_v63 = vmax.f32 %v1811_v37, %v1976_v18  ;;  %v1977_v44 = vsel %vm499_vm0, %v1972_v22, %v1976_v18  ;;  %v1947_v37 = vsel %vm499_vm0, %v1942_v4, %v1946_v35  ;;  %v1793_v22 = vmax.f32 %v7136_v46, 0.0 }
 0x21d   : > { %v2087_v9 = vmax.f32 %v1809_v51, %v1977_v44  ;;  %v2085_v51 = vmax.f32 %v1807_v57, %v1973_v56  ;;  %v1795_v57 = vmax.f32 %v7222_v45, 0.0  ;;  %v1948_v34 = vrot.slane %v1797_v8, 1 }
 0x21e   : > { %2321 = vmatpush.msrb.mxu3 %v2082_v55  ;;  %4940 = vmatpush.msk.msrb.mxu2 %vm499_vm0, %v2089_v63  ;;  %v1943_v59 = vsel %vm499_vm0, %v1938_v61, %v1942_v4  ;;  %v1957_v39 = vsel %vm499_vm0, %v1952_v40, %v1956_v25  ;;  %v7267_v18 = vadd.s32 128, %v7181_v16  ;;  %v2072_v46 = vmax.f32 %v1794_v38, %v1947_v37 }
 0x21f   : > { %v2079_v31 = vmax.f32 %v1801_v11, %v1961_v6  ;;  %vm7272_vm9 = vcmp.eq.s32.totalorder %v7181_v16, %v2110_v33  ;;  %v1944_v15 = vrot.slane %v1795_v57, 1  ;;  %v1939_v36 = vsel %vm499_vm0, %v7001_v47, %v1938_v61 }
 0x220   : > { %2322 = vmatpush.msrb.mxu3 %v2080_v0  ;;  %2437 = vmatpush.msrb.mxu2 %v2087_v9  ;;  %v9468_v26 = vsel %vm7272_vm9, 4294967295, %v9467_v26  ;;  %v1953_v52 = vsel %vm499_vm0, %v1948_v34, %v1952_v40  ;;  %v2070_v29 = vmax.f32 %v1792_v41, %v1943_v59  ;;  %v2077_v55 = vmax.f32 %v1799_v54, %v1957_v39 }
 0x221   : > { %9469 = vst [vmem:[#allocation19_spill] sm:$0xff] %v9468_v26  ;;  %v1940_v38 = vrot.slane %v1793_v22, 1  ;;  %v1949_v11 = vsel %vm499_vm0, %v1944_v15, %v1948_v34  ;;  %vm2123_vm10 = vcmp.eq.s32.totalorder %v7267_v18, %v2108_v27  ;;  %4928 = vmatmul.msk.f32.gmra.mxu0 %vm7272_vm9, %v9409_v42  ;;  %4899 = vmatmul.msk.f32.gmra.mxu1 %vm7272_vm9, %v9409_v42  ;;  %v9470_v47 = vmax.f32 %v6984_v23, 0.0 }
 0x222   : > { %2323 = vmatpush.msrb.mxu3 %v2078_v5  ;;  %2438 = vmatpush.msrb.mxu2 %v2085_v51  ;;  %v2075_v41 = vmax.f32 %v1797_v8, %v1953_v52  ;;  %v2073_v44 = vmax.f32 %v1795_v57, %v1949_v11  ;;  %v9407_v27 = vmov 0.0   ;;  %v2111_v9 = vmul.u32 2, %v7282_v2 }
 0x223   : > { %v2068_v28 = vmax.f32 %v9470_v47, %v1939_v36  ;;  %v1945_v63 = vsel %vm499_vm0, %v1940_v38, %v1944_v15  ;;  %v4870_v48 = vsel %vm2123_vm10, 1.0, %v9407_v27  ;;  %v1941_v30 = vsel %vm499_vm0, %v7036_v12, %v1940_v38 }
 0x224   : > { %2324 = vmatpush.msrb.mxu3 %v2076_v62  ;;  %2439 = vmatpush.msrb.mxu2 %v2083_v53  ;;  %v2071_v23 = vmax.f32 %v1793_v22, %v1945_v63  ;;  %vm7303_vm12 = vcmp.eq.s32.totalorder %v7181_v16, %v2111_v9  ;;  %v9471_v56 = vmov 0  ;;  %v2069_v45 = vmax.f32 %v1791_v43, %v1941_v30 }
 0x225   : > { %v9472_v56 = vsel %vm7303_vm12, 4294967295, %v9471_v56  ;;  %v7311_v35 = vadd.s32 32, %v7176_v50  ;;  %vm2125_vm13 = vcmp.eq.s32.totalorder %v7267_v18, %v2109_v7  ;;  %v9474_v43 = vmov 0 }
 0x226   : > { %2325 = vmatpush.msrb.mxu3 %v2074_v13  ;;  %2440 = vmatpush.msrb.mxu2 %v2081_v17  ;;  %9473 = vst [vmem:[#allocation23_spill] sm:$0xff] %v9472_v56  ;;  %v4872_v20 = vsel %vm2125_vm13, 1.0, %v9407_v27  ;;  %v7333_v12 = vadd.s32 40, %v7176_v50  ;;  %vm2127_vm15 = vcmp.eq.s32.totalorder %v7267_v18, %v2110_v33  ;;  %v7348_v0 = vadd.s32 48, %v7176_v50 }
 0x227   : > { %vm2129_vm10 = vcmp.eq.s32.totalorder %v7267_v18, %v2111_v9  ;;  %v7359_v3 = vadd.s32 56, %v7176_v50  ;;  %v7370_v5 = vadd.s32 64, %v7176_v50  ;;  %v7381_v25 = vadd.s32 72, %v7176_v50 }
 0x228   : > { %2326 = vmatpush.msrb.mxu3 %v2072_v46  ;;  %2441 = vmatpush.msrb.mxu2 %v2079_v31  ;;  %v2113_v7 = vmul.u32 2, %v7333_v12  ;;  %v4876_v54 = vsel %vm2129_vm10, 1.0, %v9407_v27  ;;  %v2114_v19 = vmul.u32 2, %v7348_v0  ;;  %v7392_v61 = vadd.s32 80, %v7176_v50 }
 0x229   : > { %4929 = vmatmul.msk.f32.gmra.mxu0 %vm7303_vm12, %v9409_v42  ;;  %4900 = vmatmul.msk.f32.gmra.mxu1 %vm7303_vm12, %v9409_v42  ;;  %v2115_v4 = vmul.u32 2, %v7359_v3  ;;  %v2116_v8 = vmul.u32 2, %v7370_v5  ;;  %v2117_v32 = vmul.u32 2, %v7381_v25  ;;  %v7403_v57 = vadd.s32 88, %v7176_v50 }
 0x22a   : > { %2327 = vmatpush.msrb.mxu3 %v2070_v29  ;;  %2442 = vmatpush.msrb.mxu2 %v2077_v55  ;;  %vm2132_vm6 = vcmp.eq.s32.totalorder %v7181_v16, %v2113_v7  ;;  %vm2134_vm13 = vcmp.eq.s32.totalorder %v7181_v16, %v2114_v19  ;;  %vm2133_vm10 = vcmp.eq.s32.totalorder %v7267_v18, %v2113_v7  ;;  %v2118_v53 = vmul.u32 2, %v7392_v61 }
 0x22b   : > { %v4880_v51 = vsel %vm2133_vm10, 1.0, %v9407_v27  ;;  %vm2137_vm10 = vcmp.eq.s32.totalorder %v7267_v18, %v2115_v4  ;;  %v2119_v37 = vmul.u32 2, %v7403_v57  ;;  %v7414_v6 = vadd.s32 96, %v7176_v50 }
 0x22c   : > { %2328 = vmatpush.msrb.mxu3 %v2068_v28  ;;  %2443 = vmatpush.msrb.mxu2 %v2075_v41  ;;  %v4884_v62 = vsel %vm2137_vm10, 1.0, %v9407_v27  ;;  %vm2141_vm10 = vcmp.eq.s32.totalorder %v7267_v18, %v2117_v32  ;;  %v7425_v17 = vadd.s32 104, %v7176_v50 }
 0x22d   : > { %v4888_v22 = vsel %vm2141_vm10, 1.0, %v9407_v27  ;;  %v2120_v13 = vmul.u32 2, %v7414_v6  ;;  %vm2145_vm10 = vcmp.eq.s32.totalorder %v7267_v18, %v2119_v37 }
 0x22e   : > { %2329 = vmatpush.msrb.mxu3 %v7022_v1  ;;  %2444 = vmatpush.msrb.mxu2 %v2073_v44  ;;  %v2112_v1 = vmul.u32 2, %v7311_v35  ;;  %v2121_v34 = vmul.u32 2, %v7425_v17  ;;  %v4892_v59 = vsel %vm2145_vm10, 1.0, %v9407_v27 }
 0x22f   : > { %4912 = vmatmul.msk.f32.vlgmr.msrb.gmra.mxu3 %vm2206_vm11, %v4870_v48 }
 0x230   : > { %2445 = vmatpush.msrb.mxu2 %v2071_v23  ;;  %vm7327_vm14 = vcmp.eq.s32.totalorder %v7181_v16, %v2112_v1 }
 0x231   : > { %v9475_v43 = vsel %vm7327_vm14, 4294967295, %v9474_v43  ;;  %4930 = vmatmul.msk.f32.gmra.mxu0 %vm7327_vm14, %v9409_v42  ;;  %4901 = vmatmul.msk.f32.gmra.mxu1 %vm7327_vm14, %v9409_v42 }
 0x232   : > { %2446 = vmatpush.msrb.mxu2 %v2069_v45  ;;  %9476 = vst [vmem:[#allocation22_spill] sm:$0xff] %v9475_v43 }
 0x234   : > { %2447 = vmatpush.msrb.mxu2 %v7064_v58  ;;  %v4874_v58 = vsel %vm2127_vm15, 1.0, %v9407_v27  ;;  %vm2131_vm15 = vcmp.eq.s32.totalorder %v7267_v18, %v2112_v1 }
 0x235   : > { %4941 = vmatmul.msk.f32.vlgmr.msrb.gmra.mxu2 %vm2206_vm11, %v4870_v48  ;;  %v4878_v60 = vsel %vm2131_vm15, 1.0, %v9407_v27  ;;  %vm2135_vm15 = vcmp.eq.s32.totalorder %v7267_v18, %v2114_v19 }
 0x236   : > { %v4882_v21 = vsel %vm2135_vm15, 1.0, %v9407_v27  ;;  %vm2139_vm15 = vcmp.eq.s32.totalorder %v7267_v18, %v2116_v8 }
 0x237   : > { %4913 = vmatmul.msk.f32.gmra.mxu3 %vm2206_vm11, %v4872_v20  ;;  %v4886_v40 = vsel %vm2139_vm15, 1.0, %v9407_v27  ;;  %vm2143_vm15 = vcmp.eq.s32.totalorder %v7267_v18, %v2118_v53 }
 0x238   : > { %v4890_v33 = vsel %vm2143_vm15, 1.0, %v9407_v27  ;;  %vm2149_vm15 = vcmp.eq.s32.totalorder %v7267_v18, %v2121_v34 }
 0x239   : > { %4931 = vmatmul.msk.f32.gmra.mxu0 %vm2132_vm6, %v9409_v42  ;;  %4902 = vmatmul.msk.f32.gmra.mxu1 %vm2132_vm6, %v9409_v42  ;;  %vm2136_vm6 = vcmp.eq.s32.totalorder %v7181_v16, %v2115_v4  ;;  %v4896_v46 = vsel %vm2149_vm15, 1.0, %v9407_v27 }
 0x23d   : > { %4942 = vmatmul.msk.f32.gmra.mxu2 %vm2206_vm11, %v4872_v20 }
 0x23f   : > { %4914 = vmatmul.msk.f32.gmra.mxu3 %vm2206_vm11, %v4874_v58 }
 0x241   : > { %4932 = vmatmul.msk.f32.gmra.mxu0 %vm2134_vm13, %v9409_v42  ;;  %4903 = vmatmul.msk.f32.gmra.mxu1 %vm2134_vm13, %v9409_v42  ;;  %vm2138_vm13 = vcmp.eq.s32.totalorder %v7181_v16, %v2116_v8 }
 0x245   : > { %4943 = vmatmul.msk.f32.gmra.mxu2 %vm2206_vm11, %v4874_v58 }
 0x247   : > { %4915 = vmatmul.msk.f32.gmra.mxu3 %vm2206_vm11, %v4876_v54 }
 0x249   : > { %4933 = vmatmul.msk.f32.gmra.mxu0 %vm2136_vm6, %v9409_v42  ;;  %4904 = vmatmul.msk.f32.gmra.mxu1 %vm2136_vm6, %v9409_v42  ;;  %vm2140_vm6 = vcmp.eq.s32.totalorder %v7181_v16, %v2117_v32 }
 0x24d   : > { %4944 = vmatmul.msk.f32.gmra.mxu2 %vm2206_vm11, %v4876_v54 }
 0x24f   : > { %4916 = vmatmul.msk.f32.gmra.mxu3 %vm2206_vm11, %v4878_v60 }
 0x251   : > { %4934 = vmatmul.msk.f32.gmra.mxu0 %vm2138_vm13, %v9409_v42  ;;  %4905 = vmatmul.msk.f32.gmra.mxu1 %vm2138_vm13, %v9409_v42  ;;  %vm2142_vm13 = vcmp.eq.s32.totalorder %v7181_v16, %v2118_v53 }
 0x255   : > { %4945 = vmatmul.msk.f32.gmra.mxu2 %vm2206_vm11, %v4878_v60 }
 0x257   : > { %4917 = vmatmul.msk.f32.gmra.mxu3 %vm2206_vm11, %v4880_v51 }
 0x259   : > { %4935 = vmatmul.msk.f32.gmra.mxu0 %vm2140_vm6, %v9409_v42  ;;  %4906 = vmatmul.msk.f32.gmra.mxu1 %vm2140_vm6, %v9409_v42  ;;  %vm2144_vm6 = vcmp.eq.s32.totalorder %v7181_v16, %v2119_v37 }
 0x25d   : > { %4946 = vmatmul.msk.f32.gmra.mxu2 %vm2206_vm11, %v4880_v51 }
 0x25f   : > { %4918 = vmatmul.msk.f32.gmra.mxu3 %vm2206_vm11, %v4882_v21 }
 0x261   : > { %4936 = vmatmul.msk.f32.gmra.mxu0 %vm2142_vm13, %v9409_v42  ;;  %4907 = vmatmul.msk.f32.gmra.mxu1 %vm2142_vm13, %v9409_v42  ;;  %vm2146_vm13 = vcmp.eq.s32.totalorder %v7181_v16, %v2120_v13 }
 0x265   : > { %4947 = vmatmul.msk.f32.gmra.mxu2 %vm2206_vm11, %v4882_v21 }
 0x267   : > { %4919 = vmatmul.msk.f32.gmra.mxu3 %vm2206_vm11, %v4884_v62 }
 0x269   : > { %4937 = vmatmul.msk.f32.gmra.mxu0 %vm2144_vm6, %v9409_v42  ;;  %4908 = vmatmul.msk.f32.gmra.mxu1 %vm2144_vm6, %v9409_v42  ;;  %vm2148_vm6 = vcmp.eq.s32.totalorder %v7181_v16, %v2121_v34 }
 0x26d   : > { %4948 = vmatmul.msk.f32.gmra.mxu2 %vm2206_vm11, %v4884_v62 }
 0x26f   : > { %4920 = vmatmul.msk.f32.gmra.mxu3 %vm2206_vm11, %v4886_v40 }
 0x271   : > { %4938 = vmatmul.msk.f32.gmra.mxu0 %vm2146_vm13, %v9409_v42  ;;  %4909 = vmatmul.msk.f32.gmra.mxu1 %vm2146_vm13, %v9409_v42  ;;  %vm2147_vm13 = vcmp.eq.s32.totalorder %v7267_v18, %v2120_v13 }
 0x272   : > { %v4894_v39 = vsel %vm2147_vm13, 1.0, %v9407_v27 }
 0x275   : > { %4949 = vmatmul.msk.f32.gmra.mxu2 %vm2206_vm11, %v4886_v40 }
 0x277   : > { %4921 = vmatmul.msk.f32.gmra.mxu3 %vm2206_vm11, %v4888_v22 }
 0x279   : > { %4939 = vmatmul.msk.f32.gmra.mxu0 %vm2148_vm6, %v9409_v42  ;;  %4910 = vmatmul.msk.f32.gmra.mxu1 %vm2148_vm6, %v9409_v42 }
 0x27d   : > { %4950 = vmatmul.msk.f32.gmra.mxu2 %vm2206_vm11, %v4888_v22 }
 0x27f   : > { %4922 = vmatmul.msk.f32.gmra.mxu3 %vm2206_vm11, %v4890_v33 }
 0x285   : > { %4951 = vmatmul.msk.f32.gmra.mxu2 %vm2206_vm11, %v4890_v33 }
 0x287   : > { %4923 = vmatmul.msk.f32.gmra.mxu3 %vm2206_vm11, %v4892_v59 }
 0x28c   : > { %v2272_v31 = vpop.f32.mrf.mxu1  ;;  %v2390_v15 = vpop.f32.mrf.mxu0 }
 0x28d   : > { %4952 = vmatmul.msk.f32.gmra.mxu2 %vm2206_vm11, %v4892_v59 }
 0x28f   : > { %4924 = vmatmul.msk.f32.gmra.mxu3 %vm2206_vm11, %v4894_v39 }
 0x294   : > { %v2275_v36 = vpop.f32.mrf.mxu1  ;;  %v2393_v52 = vpop.f32.mrf.mxu0 }
 0x295   : > { %4953 = vmatmul.msk.f32.gmra.mxu2 %vm2206_vm11, %v4894_v39 }
 0x297   : > { %4925 = vmatmul.msk.f32.gmra.mxu3 %vm2206_vm11, %v4896_v46 }
 0x29d   : > { %4954 = vmatmul.msk.f32.gmra.mxu2 %vm2206_vm11, %v4896_v46 }
 0x29e   : > { %v2278_v29 = vpop.f32.mrf.mxu1  ;;  %v2396_v55 = vpop.f32.mrf.mxu0 }
 0x2a6   : > { %v2281_v47 = vpop.f32.mrf.mxu1  ;;  %v2399_v63 = vpop.f32.mrf.mxu0 }
 0x2ae   : > { %v2284_v23 = vpop.f32.mrf.mxu1  ;;  %v2402_v45 = vpop.f32.mrf.mxu0 }
 0x2b2   : > { %v2331_v38 = vpop.f32.mrf.mxu3 }
 0x2b3   : > { %v7450_v11 = vadd.f32 %v2331_v38, %v2272_v31 }
 0x2b5   : > { %2519 = vrot.lane.b32.xlu2 %v7450_v11, %s5790_s29 }
 0x2b6   : > { %v2287_v54 = vpop.f32.mrf.mxu1  ;;  %v2405_v19 = vpop.f32.mrf.mxu0 }
 0x2b8   : > { %v2449_v18 = vpop.f32.mrf.mxu2 }
 0x2b9   : > { %v7454_v28 = vadd.f32 %v2449_v18, %v2390_v15 }
 0x2ba   : > { %v2334_v41 = vpop.f32.mrf.mxu3 }
 0x2bb   : > { %2521 = vrot.lane.b32.xlu1 %v7454_v28, %s5790_s29  ;;  %v7458_v44 = vadd.f32 %v2334_v41, %v2275_v36  ;;  %v7514_v41 = vadd.s32 120, %v7176_v50 }
 0x2be   : > { %v2290_v21 = vpop.f32.mrf.mxu1  ;;  %v2408_v53 = vpop.f32.mrf.mxu0 }
 0x2c0   : > { %v2452_v48 = vpop.f32.mrf.mxu2 }
 0x2c1   : > { %v7460_v9 = vadd.f32 %v2452_v48, %v2393_v52 }
 0x2c2   : > { %v2337_v30 = vpop.f32.mrf.mxu3 }
 0x2c3   : > { %2525 = vrot.lane.b32.xlu0 %v7460_v9, %s5790_s29  ;;  %2523 = vrot.lane.b32.xlu1 %v7458_v44, %s5790_s29  ;;  %v7466_v20 = vadd.f32 %v2337_v30, %v2278_v29  ;;  %v7527_v30 = vadd.s32 112, %v7176_v50 }
 0x2c6   : > { %v2293_v33 = vpop.f32.mrf.mxu1  ;;  %v2411_v39 = vpop.f32.mrf.mxu0 }
 0x2c8   : > { %v2455_v1 = vpop.f32.mrf.mxu2 }
 0x2c9   : > { %v7468_v58 = vadd.f32 %v2455_v1, %v2396_v55  ;;  %v7507_v55 = vmul.u32 2, %v7181_v16 }
 0x2ca   : > { %v2340_v7 = vpop.f32.mrf.mxu3 }
 0x2cb   : > { %2527 = vrot.lane.b32.xlu0 %v7466_v20, %s5790_s29  ;;  %2529 = vrot.lane.b32.xlu2 %v7468_v58, %s5790_s29  ;;  %v7474_v60 = vadd.f32 %v2340_v7, %v2281_v47  ;;  %vm9394_vm6 = vcmp.eq.s32.totalorder %v7514_v41, %v7507_v55  ;;  %vm9392_vm10 = vcmp.eq.s32.totalorder %v7527_v30, %v7507_v55  ;;  %v2659_v7 = vadd.s32 216, %v7176_v50 }
 0x2cc   : > { %4983 = vmatpush.msk.msra.mxu1 %vm9394_vm6, %v9409_v42  ;;  %vm9393_vm13 = vcmp.eq.s32.totalorder %v7425_v17, %v7507_v55  ;;  %vm9397_vm4 = vcmp.eq.s32.totalorder %v7414_v6, %v7507_v55  ;;  %vm9396_vm6 = vcmp.eq.s32.totalorder %v7392_v61, %v7507_v55 }
 0x2cd   : > { %vm2688_vm15 = vcmp.eq.s32.totalorder %v2659_v7, %v7507_v55 }
 0x2ce   : > { %v2296_v52 = vpop.f32.mrf.mxu1  ;;  %v2414_v29 = vpop.f32.mrf.mxu0  ;;  %4984 = vmatpush.msk.msra.mxu1 %vm9392_vm10, %v9409_v42  ;;  %vm9395_vm10 = vcmp.eq.s32.totalorder %v7403_v57, %v7507_v55 }
 0x2d0   : > { %v2458_v4 = vpop.f32.mrf.mxu2  ;;  %4985 = vmatpush.msk.msra.mxu1 %vm9393_vm13, %v9409_v42 }
 0x2d1   : > { %v7476_v51 = vadd.f32 %v2458_v4, %v2399_v63  ;;  %v2657_v4 = vadd.s32 200, %v7176_v50 }
 0x2d2   : > { %v2343_v8 = vpop.f32.mrf.mxu3  ;;  %4986 = vmatpush.msk.msra.mxu1 %vm9397_vm4, %v9409_v42 }
 0x2d3   : > { %2533 = vrot.lane.b32.xlu1 %v7476_v51, %s5790_s29  ;;  %2531 = vrot.lane.b32.xlu2 %v7474_v60, %s5790_s29  ;;  %v7482_v32 = vadd.f32 %v2343_v8, %v2284_v23  ;;  %v4982_v8 = vsel %vm2688_vm15, 1.0, %v9407_v27  ;;  %vm2686_vm15 = vcmp.eq.s32.totalorder %v2657_v4, %v7507_v55  ;;  %v7664_v4 = vadd.s32 128, %v7176_v50 }
 0x2d4   : > { %4999 = vmatpush.msk.msra.mxu3 %vm499_vm0, %v4982_v8  ;;  %4987 = vmatpush.msk.msra.mxu1 %vm9395_vm10, %v9409_v42 }
 0x2d5   : > { %9480 = vst [vmem:[#allocation26_spill] sm:$0xff] %v7664_v4 }
 0x2d6   : > { %v2299_v16 = vpop.f32.mrf.mxu1  ;;  %v2417_v48 = vpop.f32.mrf.mxu0  ;;  %4988 = vmatpush.msk.msra.mxu1 %vm9396_vm6, %v9409_v42  ;;  %vm9404_vm6 = vcmp.eq.s32.totalorder %v7370_v5, %v7507_v55 }
 0x2d8   : > { %v2461_v62 = vpop.f32.mrf.mxu2 }
 0x2d9   : > { %v7484_v40 = vadd.f32 %v2461_v62, %v2402_v45 }
 0x2da   : > { %v2346_v37 = vpop.f32.mrf.mxu3 }
 0x2db   : > { %2537 = vrot.lane.b32.xlu0 %v7484_v40, %s5790_s29  ;;  %2535 = vrot.lane.b32.xlu1 %v7482_v32, %s5790_s29  ;;  %v7490_v22 = vadd.f32 %v2346_v37, %v2287_v54  ;;  %v2658_v54 = vadd.s32 208, %v7176_v50 }
 0x2dd   : > { %vm2687_vm5 = vcmp.eq.s32.totalorder %v2658_v54, %v7507_v55 }
 0x2de   : > { %v2302_v62 = vpop.f32.mrf.mxu1  ;;  %5000 = vmatpush.msk.msra.mxu3 %vm2687_vm5, %v9409_v42  ;;  %vm9398_vm5 = vcmp.eq.s32.totalorder %v7381_v25, %v7507_v55 }
 0x2df   : > { %4989 = vmatpush.msk.msra.mxu1 %vm9398_vm5, %v9409_v42  ;;  %vm9400_vm5 = vcmp.eq.s32.totalorder %v7348_v0, %v7507_v55 }
 0x2e0   : > { %v2464_v13 = vpop.f32.mrf.mxu2  ;;  %5001 = vmatpush.msk.msra.mxu3 %vm2686_vm15, %v9409_v42 }
 0x2e1   : > { %v7492_v34 = vadd.f32 %v2464_v13, %v2405_v19  ;;  %v2420_v13 = vpop.f32.mrf.mxu0  ;;  %4990 = vmatpush.msk.msra.mxu1 %vm9404_vm6, %v9409_v42  ;;  %vm2662_vm6 = vcmp.eq.s32.totalorder %v7198_v14, %v7507_v55 }
 0x2e2   : > { %v2349_v59 = vpop.f32.mrf.mxu3 }
 0x2e3   : > { %2539 = vrot.lane.b32.xlu0 %v7490_v22, %s5790_s29  ;;  %2541 = vrot.lane.b32.xlu2 %v7492_v34, %s5790_s29  ;;  %v7498_v46 = vadd.f32 %v2349_v59, %v2290_v21  ;;  %v2656_v21 = vadd.s32 192, %v7176_v50  ;;  %v2655_v59 = vadd.s32 184, %v7176_v50 }
 0x2e5   : > { %vm2685_vm13 = vcmp.eq.s32.totalorder %v2656_v21, %v7507_v55  ;;  %vm2684_vm15 = vcmp.eq.s32.totalorder %v2655_v59, %v7507_v55 }
 0x2e6   : > { %5002 = vmatpush.msk.msra.mxu3 %vm2685_vm13, %v9409_v42  ;;  %vm9399_vm13 = vcmp.eq.s32.totalorder %v7359_v3, %v7507_v55 }
 0x2e7   : > { %4991 = vmatpush.msk.msra.mxu1 %vm9399_vm13, %v9409_v42  ;;  %vm9402_vm13 = vcmp.eq.s32.totalorder %v7311_v35, %v7507_v55 }
 0x2e8   : > { %v2467_v31 = vpop.f32.mrf.mxu2  ;;  %5003 = vmatpush.msk.msra.mxu3 %vm2684_vm15, %v9409_v42 }
 0x2e9   : > { %v7500_v15 = vadd.f32 %v2467_v31, %v2408_v53  ;;  %v2423_v7 = vpop.f32.mrf.mxu0  ;;  %4992 = vmatpush.msk.msra.mxu1 %vm9400_vm5, %v9409_v42 }
 0x2ea   : > { %v2352_v36 = vpop.f32.mrf.mxu3 }
 0x2eb   : > { %2545 = vrot.lane.b32.xlu1 %v7500_v15, %s5790_s29  ;;  %2543 = vrot.lane.b32.xlu2 %v7498_v46, %s5790_s29  ;;  %v7509_v38 = vadd.f32 %v2352_v36, %v2293_v33  ;;  %v2653_v36 = vadd.s32 168, %v7176_v50 }
 0x2ed   : > { %vm2682_vm4 = vcmp.eq.s32.totalorder %v2653_v36, %v7507_v55 }
 0x2f0   : > { %v2470_v18 = vpop.f32.mrf.mxu2 }
 0x2f1   : > { %v7511_v47 = vadd.f32 %v2470_v18, %v2411_v39  ;;  %v2654_v39 = vadd.s32 176, %v7176_v50  ;;  %v7616_v18 = vadd.s32 152, %v7176_v50  ;;  %v2426_v59 = vpop.f32.mrf.mxu0 }
 0x2f2   : > { %v2355_v63 = vpop.f32.mrf.mxu3 }
 0x2f3   : > { %2549 = vrot.lane.b32.xlu0 %v7511_v47, %s5790_s29  ;;  %2547 = vrot.lane.b32.xlu1 %v7509_v38, %s5790_s29  ;;  %v7529_v23 = vadd.f32 %v2355_v63, %v2296_v52  ;;  %vm2683_vm10 = vcmp.eq.s32.totalorder %v2654_v39, %v7507_v55  ;;  %v2652_v52 = vadd.s32 160, %v7176_v50  ;;  %9477 = vst [vmem:[#allocation20_spill] sm:$0xff] %v7616_v18 }
 0x2f4   : > { %5004 = vmatpush.msk.msra.mxu3 %vm2683_vm10, %v9409_v42  ;;  %vm9403_vm10 = vcmp.eq.s32.totalorder %v7333_v12, %v7507_v55 }
 0x2f5   : > { %vm2681_vm15 = vcmp.eq.s32.totalorder %v2652_v52, %v7507_v55  ;;  %4993 = vmatpush.msk.msra.mxu1 %vm9403_vm10, %v9409_v42  ;;  %vm9406_vm10 = vcmp.eq.s32.totalorder %v7664_v4, %v7507_v55 }
 0x2f6   : > { %5005 = vmatpush.msk.msra.mxu3 %vm2682_vm4, %v9409_v42  ;;  %vm9401_vm4 = vcmp.eq.s32.totalorder %v7616_v18, %v7507_v55 }
 0x2f7   : > { %4994 = vmatpush.msk.msra.mxu1 %vm9402_vm13, %v9409_v42  ;;  %vm2663_vm13 = vcmp.eq.s32.totalorder %v7242_v49, %v7507_v55 }
 0x2f8   : > { %v2473_v45 = vpop.f32.mrf.mxu2  ;;  %5006 = vmatpush.msk.msra.mxu3 %vm2681_vm15, %v9409_v42  ;;  %vm2664_vm15 = vcmp.eq.s32.totalorder %v7282_v2, %v7507_v55  ;;  %v9498_v2 = vmov 0.0  }
 0x2f9   : > { %v7533_v1 = vadd.f32 %v2473_v45, %v2414_v29  ;;  %v7629_v45 = vadd.s32 144, %v7176_v50  ;;  %4995 = vmatpush.msk.msra.mxu1 %vm2664_vm15, %v9409_v42 }
 0x2fa   : > { %v2358_v19 = vpop.f32.mrf.mxu3  ;;  %5007 = vmatpush.msk.msra.mxu3 %vm9401_vm4, %v9409_v42 }
 0x2fb   : > { %2551 = vrot.lane.b32.xlu0 %v7529_v23, %s5790_s29  ;;  %2553 = vrot.lane.b32.xlu2 %v7533_v1, %s5790_s29  ;;  %v7567_v37 = vadd.f32 %v2358_v19, %v2299_v16  ;;  %v2305_v16 = vpop.f32.mrf.mxu1  ;;  %9478 = vst [vmem:[#allocation24_spill] sm:$0xff] %v7629_v45  ;;  %vm9414_vm5 = vcmp.eq.s32.totalorder %v7629_v45, %v7507_v55  ;;  %v7659_v19 = vadd.s32 136, %v7176_v50 }
 0x2fc   : > { %5008 = vmatpush.msk.msra.mxu3 %vm9414_vm5, %v9409_v42  ;;  %4996 = vmatpush.msk.msra.mxu1 %vm2663_vm13, %v9409_v42  ;;  %vm2952_vm5 = vcmask 1014784  }
 0x2fd   : > { %9479 = vst [vmem:[#allocation25_spill] sm:$0xff] %v7659_v19  ;;  %vm9405_vm4 = vcmp.eq.s32.totalorder %v7659_v19, %v7507_v55 }
 0x2fe   : > { %5009 = vmatpush.msk.msra.mxu3 %vm9405_vm4, %v9409_v42  ;;  %4997 = vmatpush.msk.msra.mxu1 %vm2662_vm6, %v9409_v42  ;;  %vm2661_vm4 = vcmp.eq.s32.totalorder %v7176_v50, %v7507_v55 }
 0x300   : > { %v2476_v53 = vpop.f32.mrf.mxu2  ;;  %5010 = vmatpush.msk.msra.mxu3 %vm9406_vm10, %v9409_v42  ;;  %4998 = vmatpush.msk.msra.mxu1 %vm2661_vm4, %v9409_v42  ;;  %vm9413_vm10 = vcmask 1039360  }
 0x301   : > { %v7576_v33 = vadd.f32 %v2476_v53, %v2417_v48 }
 0x302   : > { %v2361_v31 = vpop.f32.mrf.mxu3 }
 0x303   : > { %2557 = vrot.lane.b32.xlu1 %v7576_v33, %s5790_s29  ;;  %2555 = vrot.lane.b32.xlu2 %v7567_v37, %s5790_s29  ;;  %v7610_v29 = vadd.f32 %v2361_v31, %v2302_v62  ;;  %v2308_v53 = vpop.f32.mrf.mxu1 }
 0x308   : > { %v2479_v63 = vpop.f32.mrf.mxu2 }
 0x309   : > { %v7622_v48 = vadd.f32 %v2479_v63, %v2420_v13 }
 0x30a   : > { %v2364_v54 = vpop.f32.mrf.mxu3 }
 0x30b   : > { %2561 = vrot.lane.b32.xlu0 %v7622_v48, %s5790_s29  ;;  %2559 = vrot.lane.b32.xlu1 %v7610_v29, %s5790_s29  ;;  %v7666_v8 = vadd.f32 %v2364_v54, %v2305_v16  ;;  %v2311_v52 = vpop.f32.mrf.mxu1  ;;  %v2429_v16 = vpop.f32.mrf.mxu0 }
 0x310   : > { %v2482_v21 = vpop.f32.mrf.mxu2 }
 0x311   : > { %v7680_v62 = vadd.f32 %v2482_v21, %v2423_v7 }
 0x312   : > { %v2367_v13 = vpop.f32.mrf.mxu3 }
 0x313   : > { %2563 = vrot.lane.b32.xlu0 %v7666_v8, %s5790_s29  ;;  %2565 = vrot.lane.b32.xlu2 %v7680_v62, %s5790_s29  ;;  %v7712_v39 = vadd.f32 %v2367_v13, %v2308_v53  ;;  %v2520_v13 = vpop.permute.xlu2 %2519 }
 0x318   : > { %v2485_v31 = vpop.f32.mrf.mxu2 }
 0x319   : > { %v7714_v36 = vadd.f32 %v2485_v31, %v2426_v59 }
 0x31a   : > { %v2370_v63 = vpop.f32.mrf.mxu3 }
 0x31b   : > { %2569 = vrot.lane.b32.xlu1 %v7714_v36, %s5790_s29  ;;  %2567 = vrot.lane.b32.xlu2 %v7712_v39, %s5790_s29  ;;  %v7720_v7 = vadd.f32 %v2370_v63, %v2311_v52 }
 0x320   : > { %v2488_v54 = vpop.f32.mrf.mxu2 }
 0x321   : > { %v7722_v21 = vadd.f32 %v2488_v54, %v2429_v16 }
 0x323   : > { %2573 = vrot.lane.b32.xlu0 %v7722_v21, %s5790_s29  ;;  %2571 = vrot.lane.b32.xlu1 %v7720_v7, %s5790_s29 }
 0x325   : > { %v2530_v4 = vpop.permute.xlu2 %2529 }
 0x32d   : > { %v2522_v53 = vpop.permute.xlu1 %2521 }
 0x32e   : > { %v2619_v59 = vmax.f32 %v7454_v28, %v2522_v53  ;;  %v2576_v31 = vsel %vm9413_vm10, %v2520_v13, %v2522_v53  ;;  %v2623_v53 = vmax.f32 %v7468_v58, %v2530_v4 }
 0x32f   : > { %v2618_v27 = vmax.f32 %v7450_v11, %v2576_v31 }
 0x330   : > { %5011 = vmatmul.msk.f32.vlgmr.msra.gmra.mxu3 %vm2206_vm11, %v2619_v59 }
 0x331   : > { %2806 = vmatmul.f32.vlgmr.msra.gmra.mxu1 %v2618_v27 }
 0x335   : > { %v2526_v52 = vpop.permute.xlu0 %2525  ;;  %v2524_v63 = vpop.permute.xlu1 %2523 }
 0x336   : > { %v2621_v16 = vmax.f32 %v7460_v9, %v2526_v52  ;;  %v2577_v54 = vsel %vm9413_vm10, %v2524_v63, %v2526_v52  ;;  %v2532_v9 = vpop.permute.xlu2 %2531 }
 0x337   : > { %v2620_v42 = vmax.f32 %v7458_v44, %v2577_v54 }
 0x338   : > { %5012 = vmatmul.msk.f32.gmra.mxu3 %vm2206_vm11, %v2621_v16 }
 0x339   : > { %2809 = vmatmul.f32.gmra.mxu1 %v2620_v42 }
 0x33d   : > { %v2528_v28 = vpop.permute.xlu0 %2527 }
 0x33e   : > { %v2578_v11 = vsel %vm9413_vm10, %v2528_v28, %v2530_v4  ;;  %v2542_v63 = vpop.permute.xlu2 %2541 }
 0x33f   : > { %v2622_v13 = vmax.f32 %v7466_v20, %v2578_v11  ;;  %v2629_v16 = vmax.f32 %v7492_v34, %v2542_v63 }
 0x340   : > { %5013 = vmatmul.msk.f32.gmra.mxu3 %vm2206_vm11, %v2623_v53 }
 0x341   : > { %2812 = vmatmul.f32.gmra.mxu1 %v2622_v13 }
 0x345   : > { %v2534_v27 = vpop.permute.xlu1 %2533 }
 0x346   : > { %v2625_v59 = vmax.f32 %v7476_v51, %v2534_v27  ;;  %v2579_v44 = vsel %vm9413_vm10, %v2532_v9, %v2534_v27 }
 0x347   : > { %v2624_v31 = vmax.f32 %v7474_v60, %v2579_v44 }
 0x348   : > { %5014 = vmatmul.msk.f32.gmra.mxu3 %vm2206_vm11, %v2625_v59 }
 0x349   : > { %2815 = vmatmul.f32.gmra.mxu1 %v2624_v31 }
 0x34d   : > { %v2538_v42 = vpop.permute.xlu0 %2537  ;;  %v2536_v58 = vpop.permute.xlu1 %2535 }
 0x34e   : > { %v2627_v4 = vmax.f32 %v7484_v40, %v2538_v42  ;;  %v2580_v20 = vsel %vm9413_vm10, %v2536_v58, %v2538_v42  ;;  %v2544_v40 = vpop.permute.xlu2 %2543 }
 0x34f   : > { %v2626_v52 = vmax.f32 %v7482_v32, %v2580_v20 }
 0x350   : > { %5015 = vmatmul.msk.f32.gmra.mxu3 %vm2206_vm11, %v2627_v4 }
 0x351   : > { %2818 = vmatmul.f32.gmra.mxu1 %v2626_v52 }
 0x355   : > { %v2540_v51 = vpop.permute.xlu0 %2539 }
 0x356   : > { %v2581_v60 = vsel %vm9413_vm10, %v2540_v51, %v2542_v63  ;;  %v2554_v59 = vpop.permute.xlu2 %2553 }
 0x357   : > { %v2628_v54 = vmax.f32 %v7490_v22, %v2581_v60  ;;  %v2635_v44 = vmax.f32 %v7533_v1, %v2554_v59 }
 0x358   : > { %5016 = vmatmul.msk.f32.gmra.mxu3 %vm2206_vm11, %v2629_v16 }
 0x359   : > { %2821 = vmatmul.f32.gmra.mxu1 %v2628_v54 }
 0x35d   : > { %v2546_v28 = vpop.permute.xlu1 %2545 }
 0x35e   : > { %v2631_v53 = vmax.f32 %v7500_v15, %v2546_v28  ;;  %v2582_v32 = vsel %vm9413_vm10, %v2544_v40, %v2546_v28 }
 0x35f   : > { %v2630_v11 = vmax.f32 %v7498_v46, %v2582_v32 }
 0x360   : > { %5017 = vmatmul.msk.f32.gmra.mxu3 %vm2206_vm11, %v2631_v53 }
 0x361   : > { %2824 = vmatmul.f32.gmra.mxu1 %v2630_v11 }
 0x365   : > { %v2550_v13 = vpop.permute.xlu0 %2549  ;;  %v2548_v34 = vpop.permute.xlu1 %2547 }
 0x366   : > { %v2633_v27 = vmax.f32 %v7511_v47, %v2550_v13  ;;  %v2583_v22 = vsel %vm9413_vm10, %v2548_v34, %v2550_v13  ;;  %v2556_v47 = vpop.permute.xlu2 %2555 }
 0x367   : > { %v2632_v9 = vmax.f32 %v7509_v38, %v2583_v22 }
 0x368   : > { %5018 = vmatmul.msk.f32.gmra.mxu3 %vm2206_vm11, %v2633_v27 }
 0x369   : > { %2827 = vmatmul.f32.gmra.mxu1 %v2632_v9 }
 0x36d   : > { %v2552_v15 = vpop.permute.xlu0 %2551 }
 0x36e   : > { %v2584_v46 = vsel %vm9413_vm10, %v2552_v15, %v2554_v59  ;;  %v2566_v51 = vpop.permute.xlu2 %2565 }
 0x36f   : > { %v2634_v31 = vmax.f32 %v7529_v23, %v2584_v46  ;;  %v2641_v16 = vmax.f32 %v7680_v62, %v2566_v51 }
 0x370   : > { %5019 = vmatmul.msk.f32.gmra.mxu3 %vm2206_vm11, %v2635_v44 }
 0x371   : > { %2830 = vmatmul.f32.gmra.mxu1 %v2634_v31 }
 0x375   : > { %v2558_v42 = vpop.permute.xlu1 %2557 }
 0x376   : > { %v2637_v58 = vmax.f32 %v7576_v33, %v2558_v42  ;;  %v2585_v38 = vsel %vm9413_vm10, %v2556_v47, %v2558_v42 }
 0x377   : > { %v2636_v4 = vmax.f32 %v7567_v37, %v2585_v38 }
 0x378   : > { %5020 = vmatmul.msk.f32.gmra.mxu3 %vm2206_vm11, %v2637_v58 }
 0x379   : > { %2833 = vmatmul.f32.gmra.mxu1 %v2636_v4 }
 0x37d   : > { %v2562_v20 = vpop.permute.xlu0 %2561  ;;  %v2560_v1 = vpop.permute.xlu1 %2559 }
 0x37e   : > { %v2639_v52 = vmax.f32 %v7622_v48, %v2562_v20  ;;  %v2586_v23 = vsel %vm9413_vm10, %v2560_v1, %v2562_v20  ;;  %v2568_v48 = vpop.permute.xlu2 %2567 }
 0x37f   : > { %v2638_v63 = vmax.f32 %v7610_v29, %v2586_v23 }
 0x380   : > { %5021 = vmatmul.msk.f32.gmra.mxu3 %vm2206_vm11, %v2639_v52 }
 0x381   : > { %2836 = vmatmul.f32.gmra.mxu1 %v2638_v63 }
 0x385   : > { %v2564_v33 = vpop.permute.xlu0 %2563 }
 0x386   : > { %v2587_v37 = vsel %vm9413_vm10, %v2564_v33, %v2566_v51 }
 0x387   : > { %v2640_v60 = vmax.f32 %v7666_v8, %v2587_v37 }
 0x388   : > { %5022 = vmatmul.msk.f32.gmra.mxu3 %vm2206_vm11, %v2641_v16 }
 0x389   : > { %2839 = vmatmul.f32.gmra.mxu1 %v2640_v60 }
 0x38d   : > { %v2570_v54 = vpop.permute.xlu1 %2569 }
 0x38e   : > { %v2643_v28 = vmax.f32 %v7714_v36, %v2570_v54  ;;  %v2588_v29 = vsel %vm9413_vm10, %v2568_v48, %v2570_v54 }
 0x38f   : > { %v2642_v40 = vmax.f32 %v7712_v39, %v2588_v29 }
 0x390   : > { %5023 = vmatmul.msk.f32.gmra.mxu3 %vm2206_vm11, %v2643_v28 }
 0x391   : > { %2842 = vmatmul.f32.gmra.mxu1 %v2642_v40 }
 0x395   : > { %v2574_v53 = vpop.permute.xlu0 %2573  ;;  %v2572_v62 = vpop.permute.xlu1 %2571 }
 0x396   : > { %v2645_v32 = vmax.f32 %v7722_v21, %v2574_v53  ;;  %v2589_v8 = vsel %vm9413_vm10, %v2572_v62, %v2574_v53  ;;  %vm2949_vm10 = vcmask 326656  }
 0x397   : > { %v2644_v11 = vmax.f32 %v7720_v7, %v2589_v8 }
 0x398   : > { %5024 = vmatmul.msk.f32.gmra.mxu3 %vm2206_vm11, %v2645_v32  ;;  %vm2946_vm11 = vcmask 687104  }
 0x399   : > { %2845 = vmatmul.f32.gmra.mxu1 %v2644_v11 }
 0x3ae   : > { %v2807_v13 = vpop.f32.mrf.mxu1 }
 0x3b3   : > { %v2866_v36 = vpop.f32.mrf.mxu3 }
 0x3b4   : > { %v7786_v9 = vadd.f32 %v2866_v36, %v2807_v13 }
 0x3b6   : > { %v2810_v34 = vpop.f32.mrf.mxu1  ;;  %v2919_v46 = vrot.slane %v7786_v9, 2  ;;  %v2928_v31 = vrot.slane %v7786_v9, 3  ;;  %v2910_v47 = vrot.slane %v7786_v9, 1 }
 0x3bb   : > { %v2869_v27 = vpop.f32.mrf.mxu3 }
 0x3bc   : > { %v7784_v39 = vadd.f32 %v2869_v27, %v2810_v34 }
 0x3be   : > { %v2813_v22 = vpop.f32.mrf.mxu1  ;;  %v2920_v15 = vrot.slane %v7784_v39, 2  ;;  %v2929_v21 = vrot.slane %v7784_v39, 3  ;;  %v2911_v7 = vrot.slane %v7784_v39, 1 }
 0x3c0   : > { %v2921_v20 = vsel %vm9426_vm2, %v2919_v46, %v2920_v15  ;;  %v2930_v1 = vsel %vm9412_vm1, %v2928_v31, %v2929_v21  ;;  %v2912_v23 = vsel %vm499_vm0, %v2910_v47, %v2911_v7  ;;  %v3431_v31 = vld [vmem:[%s9371_s3 + $0xf0] sm:$0xff] }
 0x3c1   : > { %3546 = vmatpush.msra.mxu0 %v3431_v31  ;;  %v3423_v31 = vld [vmem:[%s9371_s3 + $0xb0] sm:$0xff] }
 0x3c3   : > { %v2872_v59 = vpop.f32.mrf.mxu3 }
 0x3c4   : > { %v7790_v44 = vadd.f32 %v2872_v59, %v2813_v22 }
 0x3c6   : > { %v2970_v42 = vrot.slane %v7790_v44, 2  ;;  %v2960_v58 = vrot.slane %v7790_v44, 1  ;;  %v2816_v38 = vpop.f32.mrf.mxu1  ;;  %v2979_v4 = vrot.slane %v7790_v44, 3 }
 0x3c8   : > { %v5411_v52 = vpack.i.bf16 %v2970_v42, %v2921_v20  ;;  %v2961_v63 = vsel %vm499_vm0, %v2911_v7, %v2960_v58  ;;  %v5416_v51 = vpack.i.bf16 %v2979_v4, %v2930_v1 }
 0x3c9   : > { %v5421_v33 = vpack.i.bf16 %v2961_v63, %v2912_v23 }
 0x3ca   : > { %5412 = vrot.lane.b32.xlu0 %v5411_v52, %s5791_s25  ;;  %5417 = vrot.lane.b32.xlu1 %v5416_v51, %s5792_s4 }
 0x3cb   : > { %v2875_v16 = vpop.f32.mrf.mxu3  ;;  %5422 = vrot.lane.b32.xlu2 %v5421_v33, %s5793_s8 }
 0x3cc   : > { %v7806_v37 = vadd.f32 %v2875_v16, %v2816_v38 }
 0x3ce   : > { %v2971_v60 = vrot.slane %v7806_v37, 2  ;;  %v2962_v54 = vrot.slane %v7806_v37, 1  ;;  %v2819_v48 = vpop.f32.mrf.mxu1  ;;  %v2980_v28 = vrot.slane %v7806_v37, 3 }
 0x3d0   : > { %v2972_v29 = vsel %vm9426_vm2, %v2970_v42, %v2971_v60  ;;  %v2963_v40 = vsel %vm499_vm0, %v2960_v58, %v2962_v54  ;;  %v2981_v53 = vsel %vm9412_vm1, %v2979_v4, %v2980_v28  ;;  %v3432_v42 = vld [vmem:[%s9371_s3 + $0xf8] sm:$0xff] }
 0x3d1   : > { %v5431_v62 = vpack.i.bf16 %v2920_v15, %v2972_v29  ;;  %v5426_v32 = vpack.i.bf16 %v2911_v7, %v2963_v40  ;;  %v5436_v8 = vpack.i.bf16 %v2929_v21, %v2981_v53  ;;  %3734 = vmatpush.msrb.mxu1 %v3432_v42 }
 0x3d3   : > { %v2878_v11 = vpop.f32.mrf.mxu3  ;;  %5432 = vrot.lane.b32.xlu0 %v5431_v62, %s5791_s25  ;;  %5427 = vrot.lane.b32.xlu2 %v5426_v32, %s5793_s8  ;;  %v3428_v32 = vld [vmem:[%s9371_s3 + $0xd8] sm:$0xff] }
 0x3d4   : > { %5437 = vrot.lane.b32.xlu1 %v5436_v8, %s5792_s4  ;;  %v7817_v27 = vadd.f32 %v2878_v11, %v2819_v48  ;;  %v3425_v11 = vld [vmem:[%s9371_s3 + $0xc0] sm:$0xff] }
 0x3d6   : > { %v2822_v13 = vpop.f32.mrf.mxu1  ;;  %v3014_v46 = vrot.slane %v7817_v27, 2  ;;  %v3006_v15 = vrot.slane %v7817_v27, 1  ;;  %v3023_v7 = vrot.slane %v7817_v27, 3 }
 0x3d8   : > { %v3015_v23 = vsel %vm9426_vm2, %v2971_v60, %v3014_v46  ;;  %v3007_v63 = vsel %vm499_vm0, %v2962_v54, %v3006_v15  ;;  %v3024_v16 = vsel %vm9412_vm1, %v2980_v28, %v3023_v7  ;;  %v3429_v60 = vld [vmem:[%s9371_s3 + $0xe0] sm:$0xff]  ;;  %v3430_v54 = vld [vmem:[%s9371_s3 + $0xe8] sm:$0xff]  ;;  %v3427_v28 = vld [vmem:[%s9371_s3 + $0xd0] sm:$0xff] }
 0x3d9   : > { %3547 = vmatpush.msra.mxu0 %v3429_v60  ;;  %3735 = vmatpush.msrb.mxu1 %v3430_v54 }
 0x3db   : > { %v2881_v36 = vpop.f32.mrf.mxu3  ;;  %3548 = vmatpush.msra.mxu0 %v3427_v28  ;;  %3736 = vmatpush.msrb.mxu1 %v3428_v32  ;;  %v3411_v32 = vld [vmem:[%s9371_s3 + $0x50] sm:$0xff] }
 0x3dc   : > { %v7819_v22 = vadd.f32 %v2881_v36, %v2822_v13  ;;  %v3426_v13 = vld [vmem:[%s9371_s3 + $0xc8] sm:$0xff] }
 0x3dd   : > { %3549 = vmatpush.msra.mxu0 %v3425_v11  ;;  %3737 = vmatpush.msrb.mxu1 %v3426_v13 }
 0x3de   : > { %v2825_v34 = vpop.f32.mrf.mxu1  ;;  %v3060_v47 = vrot.slane %v7819_v22, 2  ;;  %v3051_v58 = vrot.slane %v7819_v22, 1  ;;  %v3025_v1 = vrot.slane %v7819_v22, 3 }
 0x3df   : > { %3550 = vmatpush.msra.mxu0 %v3423_v31 }
 0x3e3   : > { %v2884_v59 = vpop.f32.mrf.mxu3 }
 0x3e4   : > { %v7823_v21 = vadd.f32 %v2884_v59, %v2825_v34  ;;  %v3026_v59 = vsel %vm9412_vm1, %v3023_v7, %v3025_v1  ;;  %v3419_v7 = vld [vmem:[%s9371_s3 + $0x90] sm:$0xff] }
 0x3e6   : > { %v3061_v38 = vrot.slane %v7823_v21, 2  ;;  %v3052_v4 = vrot.slane %v7823_v21, 1  ;;  %v2828_v20 = vpop.f32.mrf.mxu1  ;;  %v3069_v52 = vrot.slane %v7823_v21, 3 }
 0x3e8   : > { %v3062_v51 = vsel %vm9426_vm2, %v3060_v47, %v3061_v38  ;;  %v3053_v33 = vsel %vm499_vm0, %v3051_v58, %v3052_v4  ;;  %v3070_v48 = vsel %vm9412_vm1, %v3025_v1, %v3069_v52  ;;  %v5456_v36 = vpack.i.bf16 %v3061_v38, %v3014_v46  ;;  %v3424_v47 = vld [vmem:[%s9371_s3 + $0xb8] sm:$0xff]  ;;  %v3421_v46 = vld [vmem:[%s9371_s3 + $0xa0] sm:$0xff] }
 0x3e9   : > { %v5451_v29 = vpack.i.bf16 %v3062_v51, %v3015_v23  ;;  %v5441_v40 = vpack.i.bf16 %v3053_v33, %v3007_v63  ;;  %v5461_v53 = vpack.i.bf16 %v3070_v48, %v3024_v16  ;;  %v5446_v34 = vpack.i.bf16 %v3052_v4, %v3006_v15  ;;  %v3422_v15 = vld [vmem:[%s9371_s3 + $0xa8] sm:$0xff]  ;;  %3738 = vmatpush.msrb.mxu1 %v3424_v47  ;;  %v3420_v4 = vld [vmem:[%s9371_s3 + $0x98] sm:$0xff]  ;;  %v3415_v51 = vld [vmem:[%s9371_s3 + $0x70] sm:$0xff] }
 0x3ea   : > { %v5466_v42 = vpack.i.bf16 %v3069_v52, %v3026_v59  ;;  %3551 = vmatpush.msra.mxu0 %v3421_v46  ;;  %v3417_v52 = vld [vmem:[%s9371_s3 + $0x80] sm:$0xff]  ;;  %v3418_v23 = vld [vmem:[%s9371_s3 + $0x88] sm:$0xff]  ;;  %v3416_v33 = vld [vmem:[%s9371_s3 + $0x78] sm:$0xff] }
 0x3eb   : > { %v2887_v62 = vpop.f32.mrf.mxu3  ;;  %5452 = vrot.lane.b32.xlu0 %v5451_v29, %s5791_s25  ;;  %5442 = vrot.lane.b32.xlu2 %v5441_v40, %s5793_s8  ;;  %v3463_v59 = vld [vmem:[%s9371_s3 + $0x1f0] sm:$0xff] }
 0x3ec   : > { %5462 = vrot.lane.b32.xlu1 %v5461_v53, %s5792_s4  ;;  %3739 = vmatpush.msrb.mxu1 %v3422_v15  ;;  %v7895_v63 = vadd.f32 %v2887_v62, %v2828_v20  ;;  %v3413_v53 = vld [vmem:[%s9371_s3 + $0x60] sm:$0xff]  ;;  %v3414_v62 = vld [vmem:[%s9371_s3 + $0x68] sm:$0xff] }
 0x3ed   : > { %3552 = vmatpush.msra.mxu0 %v3419_v7  ;;  %3593 = vmatpush.msra.mxu2 %v3463_v59 }
 0x3ee   : > { %v2831_v8 = vpop.f32.mrf.mxu1  ;;  %3740 = vmatpush.msrb.mxu1 %v3420_v4  ;;  %v3104_v60 = vrot.slane %v7895_v63, 2  ;;  %v3095_v54 = vrot.slane %v7895_v63, 1  ;;  %v3113_v28 = vrot.slane %v7895_v63, 3 }
 0x3ef   : > { %3553 = vmatpush.msra.mxu0 %v3417_v52  ;;  %v3410_v52 = vld [vmem:[%s9371_s3 + $0x48] sm:$0xff] }
 0x3f0   : > { %3741 = vmatpush.msrb.mxu1 %v3418_v23  ;;  %v3407_v23 = vld [vmem:[%s9371_s3 + $0x30] sm:$0xff] }
 0x3f1   : > { %3554 = vmatpush.msra.mxu0 %v3415_v51 }
 0x3f2   : > { %3742 = vmatpush.msrb.mxu1 %v3416_v33  ;;  %v3408_v33 = vld [vmem:[%s9371_s3 + $0x38] sm:$0xff] }
 0x3f3   : > { %v2890_v58 = vpop.f32.mrf.mxu3  ;;  %5457 = vrot.lane.b32.xlu0 %v5456_v36, %s5791_s25  ;;  %5447 = vrot.lane.b32.xlu2 %v5446_v34, %s5793_s8  ;;  %v3412_v34 = vld [vmem:[%s9371_s3 + $0x58] sm:$0xff] }
 0x3f4   : > { %5467 = vrot.lane.b32.xlu1 %v5466_v42, %s5792_s4  ;;  %v7887_v1 = vadd.f32 %v2890_v58, %v2831_v8  ;;  %3555 = vmatpush.msra.mxu0 %v3413_v53  ;;  %v3464_v58 = vld [vmem:[%s9371_s3 + $0x1f8] sm:$0xff]  ;;  %v3405_v53 = vld [vmem:[%s9371_s3 + $0x20] sm:$0xff] }
 0x3f5   : > { %3743 = vmatpush.msrb.mxu1 %v3414_v62  ;;  %3781 = vmatpush.msrb.mxu3 %v3464_v58  ;;  %v3461_v62 = vld [vmem:[%s9371_s3 + $0x1e0] sm:$0xff] }
 0x3f6   : > { %v2834_v38 = vpop.f32.mrf.mxu1  ;;  %v3105_v48 = vrot.slane %v7887_v1, 2  ;;  %v7905_v29 = vrot.slane %v7887_v1, 1  ;;  %v3114_v40 = vrot.slane %v7887_v1, 3  ;;  %3556 = vmatpush.msra.mxu0 %v3411_v32  ;;  %3594 = vmatpush.msra.mxu2 %v3461_v62  ;;  %v3452_v62 = vld [vmem:[%s9371_s3 + $0x198] sm:$0xff] }
 0x3f7   : > { %3744 = vmatpush.msrb.mxu1 %v3412_v34 }
 0x3f8   : > { %v3106_v31 = vsel %vm9426_vm2, %v3104_v60, %v3105_v48  ;;  %v3097_v42 = vsel %vm499_vm0, %v3095_v54, %v7905_v29  ;;  %v3115_v47 = vsel %vm9412_vm1, %v3113_v28, %v3114_v40  ;;  %v3406_v60 = vld [vmem:[%s9371_s3 + $0x28] sm:$0xff] }
 0x3f9   : > { %3745 = vmatpush.msrb.mxu1 %v3410_v52  ;;  %v3462_v54 = vld [vmem:[%s9371_s3 + $0x1e8] sm:$0xff]  ;;  %v3456_v52 = vld [vmem:[%s9371_s3 + $0x1b8] sm:$0xff] }
 0x3fa   : > { %3782 = vmatpush.msrb.mxu3 %v3462_v54  ;;  %v3449_v54 = vld [vmem:[%s9371_s3 + $0x180] sm:$0xff] }
 0x3fb   : > { %v2893_v16 = vpop.f32.mrf.mxu3  ;;  %3746 = vmatpush.msrb.mxu1 %v3408_v33 }
 0x3fc   : > { %v7908_v20 = vadd.f32 %v2893_v16, %v2834_v38  ;;  %v3409_v38 = vld [vmem:[%s9371_s3 + $0x40] sm:$0xff] }
 0x3fd   : > { %3557 = vmatpush.msra.mxu0 %v3409_v38  ;;  %3747 = vmatpush.msrb.mxu1 %v3406_v60  ;;  %v3458_v38 = vld [vmem:[%s9371_s3 + $0x1c8] sm:$0xff] }
 0x3fe   : > { %v3151_v8 = vrot.slane %v7908_v20, 2  ;;  %v3141_v11 = vrot.slane %v7908_v20, 1  ;;  %v2837_v13 = vpop.f32.mrf.mxu1  ;;  %v3160_v36 = vrot.slane %v7908_v20, 3 }
 0x3ff   : > { %3558 = vmatpush.msra.mxu0 %v3407_v23  ;;  %v3453_v23 = vld [vmem:[%s9371_s3 + $0x1a0] sm:$0xff] }
 0x400   : > { %v5471_v46 = vpack.i.bf16 %v3151_v8, %v3106_v31  ;;  %v3142_v15 = vsel %vm499_vm0, %v7905_v29, %v3141_v11  ;;  %v5476_v7 = vpack.i.bf16 %v3160_v36, %v3115_v47 }
 0x401   : > { %v5481_v4 = vpack.i.bf16 %v3142_v15, %v3097_v42  ;;  %3559 = vmatpush.msra.mxu0 %v3405_v53  ;;  %v3403_v15 = vld [vmem:[%s9371_s3 + $0x10] sm:$0xff] }
 0x402   : > { %5472 = vrot.lane.b32.xlu0 %v5471_v46, %s5791_s25  ;;  %5477 = vrot.lane.b32.xlu1 %v5476_v7, %s5792_s4  ;;  %v3402_v7 = vld [vmem:[%s9371_s3 + $0x8] sm:$0xff]  ;;  %v3451_v53 = vld [vmem:[%s9371_s3 + $0x190] sm:$0xff] }
 0x403   : > { %v2896_v51 = vpop.f32.mrf.mxu3  ;;  %5482 = vrot.lane.b32.xlu2 %v5481_v4, %s5793_s8  ;;  %3560 = vmatpush.msra.mxu0 %v3403_v15  ;;  %v3455_v4 = vld [vmem:[%s9371_s3 + $0x1b0] sm:$0xff] }
 0x404   : > { %v7955_v16 = vadd.f32 %v2896_v51, %v2837_v13  ;;  %v3454_v51 = vld [vmem:[%s9371_s3 + $0x1a8] sm:$0xff] }
 0x406   : > { %v3152_v28 = vrot.slane %v7955_v16, 2  ;;  %v3143_v32 = vrot.slane %v7955_v16, 1  ;;  %v3161_v13 = vrot.slane %v7955_v16, 3  ;;  %v2840_v34 = vpop.f32.mrf.mxu1 }
 0x408   : > { %v3153_v59 = vsel %vm9426_vm2, %v3151_v8, %v3152_v28  ;;  %v3144_v31 = vsel %vm499_vm0, %v3141_v11, %v3143_v32  ;;  %v3162_v42 = vsel %vm9412_vm1, %v3160_v36, %v3161_v13  ;;  %v3459_v8 = vld [vmem:[%s9371_s3 + $0x1d0] sm:$0xff]  ;;  %v3404_v11 = vld [vmem:[%s9371_s3 + $0x18] sm:$0xff]  ;;  %v3457_v36 = vld [vmem:[%s9371_s3 + $0x1c0] sm:$0xff] }
 0x409   : > { %v5491_v47 = vpack.i.bf16 %v3105_v48, %v3153_v59  ;;  %v5486_v58 = vpack.i.bf16 %v7905_v29, %v3144_v31  ;;  %v5496_v46 = vpack.i.bf16 %v3114_v40, %v3162_v42  ;;  %3595 = vmatpush.msra.mxu2 %v3459_v8  ;;  %v3460_v48 = vld [vmem:[%s9371_s3 + $0x1d8] sm:$0xff]  ;;  %v3401_v29 = vld [vmem:[%s9371_s3] sm:$0xff]  ;;  %3748 = vmatpush.msrb.mxu1 %v3404_v11  ;;  %v3450_v59 = vld [vmem:[%s9371_s3 + $0x188] sm:$0xff] }
 0x40a   : > { %3783 = vmatpush.msrb.mxu3 %v3460_v48  ;;  %3561 = vmatpush.msra.mxu0 %v3401_v29  ;;  %v3447_v31 = vld [vmem:[%s9371_s3 + $0x170] sm:$0xff]  ;;  %v3448_v42 = vld [vmem:[%s9371_s3 + $0x178] sm:$0xff] }
 0x40b   : > { %v2899_v40 = vpop.f32.mrf.mxu3  ;;  %5492 = vrot.lane.b32.xlu0 %v5491_v47, %s5791_s25  ;;  %5487 = vrot.lane.b32.xlu2 %v5486_v58, %s5793_s8  ;;  %v3445_v58 = vld [vmem:[%s9371_s3 + $0x160] sm:$0xff]  ;;  %v3443_v8 = vld [vmem:[%s9371_s3 + $0x150] sm:$0xff] }
 0x40c   : > { %5497 = vrot.lane.b32.xlu1 %v5496_v46, %s5792_s4  ;;  %3596 = vmatpush.msra.mxu2 %v3457_v36  ;;  %v8039_v47 = vadd.f32 %v2899_v40, %v2840_v34  ;;  %v3446_v46 = vld [vmem:[%s9371_s3 + $0x168] sm:$0xff]  ;;  %v3444_v34 = vld [vmem:[%s9371_s3 + $0x158] sm:$0xff]  ;;  %v3441_v36 = vld [vmem:[%s9371_s3 + $0x140] sm:$0xff] }
 0x40d   : > { %3749 = vmatpush.msrb.mxu1 %v3402_v7  ;;  %3784 = vmatpush.msrb.mxu3 %v3458_v38 }
 0x40e   : > { %3597 = vmatpush.msra.mxu2 %v3455_v4  ;;  %v2843_v33 = vpop.f32.mrf.mxu1  ;;  %v3204_v29 = vrot.slane %v8039_v47, 3  ;;  %v3195_v40 = vrot.slane %v8039_v47, 2  ;;  %v3187_v38 = vrot.slane %v8039_v47, 1  ;;  %v3442_v4 = vld [vmem:[%s9371_s3 + $0x148] sm:$0xff] }
 0x40f   : > { %3785 = vmatpush.msrb.mxu3 %v3456_v52 }
 0x410   : > { %3598 = vmatpush.msra.mxu2 %v3453_v23 }
 0x411   : > { %3786 = vmatpush.msrb.mxu3 %v3454_v51  ;;  %v3439_v51 = vld [vmem:[%s9371_s3 + $0x130] sm:$0xff] }
 0x412   : > { %3599 = vmatpush.msra.mxu2 %v3451_v53 }
 0x413   : > { %v2902_v60 = vpop.f32.mrf.mxu3  ;;  %3787 = vmatpush.msrb.mxu3 %v3452_v62 }
 0x414   : > { %3600 = vmatpush.msra.mxu2 %v3449_v54  ;;  %v8047_v15 = vadd.f32 %v2902_v60, %v2843_v33  ;;  %v3440_v54 = vld [vmem:[%s9371_s3 + $0x138] sm:$0xff] }
 0x415   : > { %3788 = vmatpush.msrb.mxu3 %v3450_v59  ;;  %v3205_v59 = vsel %vm9412_vm1, %v3161_v13, %v3204_v29 }
 0x416   : > { %3601 = vmatpush.msra.mxu2 %v3447_v31  ;;  %v2846_v11 = vpop.f32.mrf.mxu1  ;;  %v3206_v52 = vrot.slane %v8047_v15, 3  ;;  %v3241_v23 = vrot.slane %v8047_v15, 2  ;;  %v3232_v62 = vrot.slane %v8047_v15, 1  ;;  %v3196_v31 = vsel %vm9426_vm2, %v3152_v28, %v3195_v40  ;;  %v3438_v28 = vld [vmem:[%s9371_s3 + $0x128] sm:$0xff] }
 0x417   : > { %3789 = vmatpush.msrb.mxu3 %v3448_v42  ;;  %v3437_v42 = vld [vmem:[%s9371_s3 + $0x120] sm:$0xff] }
 0x418   : > { %3602 = vmatpush.msra.mxu2 %v3445_v58 }
 0x419   : > { %3790 = vmatpush.msrb.mxu3 %v3446_v46 }
 0x41a   : > { %3603 = vmatpush.msra.mxu2 %v3443_v8  ;;  %v3188_v8 = vsel %vm499_vm0, %v3143_v32, %v3187_v38  ;;  %v3436_v32 = vld [vmem:[%s9371_s3 + $0x118] sm:$0xff] }
 0x41b   : > { %v2905_v48 = vpop.f32.mrf.mxu3  ;;  %3791 = vmatpush.msrb.mxu3 %v3444_v34 }
 0x41c   : > { %v8060_v7 = vadd.f32 %v2905_v48, %v2846_v11  ;;  %3604 = vmatpush.msra.mxu2 %v3441_v36  ;;  %v3435_v36 = vld [vmem:[%s9371_s3 + $0x110] sm:$0xff] }
 0x41d   : > { %3792 = vmatpush.msrb.mxu3 %v3442_v4  ;;  %v3433_v4 = vld [vmem:[%s9371_s3 + $0x100] sm:$0xff] }
 0x41e   : > { %v3250_v33 = vrot.slane %v8060_v7, 3  ;;  %v3242_v53 = vrot.slane %v8060_v7, 2  ;;  %v3233_v60 = vrot.slane %v8060_v7, 1  ;;  %3605 = vmatpush.msra.mxu2 %v3439_v51  ;;  %v3434_v51 = vld [vmem:[%s9371_s3 + $0x108] sm:$0xff] }
 0x41f   : > { %3793 = vmatpush.msrb.mxu3 %v3440_v54 }
 0x420   : > { %v3251_v58 = vsel %vm9412_vm1, %v3206_v52, %v3250_v33  ;;  %v3243_v46 = vsel %vm9426_vm2, %v3241_v23, %v3242_v53  ;;  %v3234_v34 = vsel %vm499_vm0, %v3232_v62, %v3233_v60  ;;  %3606 = vmatpush.msra.mxu2 %v3437_v42  ;;  %v5506_v42 = vpack.i.bf16 %v3233_v60, %v3187_v38 }
 0x421   : > { %v5516_v13 = vpack.i.bf16 %v3251_v58, %v3205_v59  ;;  %v5511_v11 = vpack.i.bf16 %v3243_v46, %v3196_v31  ;;  %v5501_v48 = vpack.i.bf16 %v3234_v34, %v3188_v8  ;;  %3794 = vmatpush.msrb.mxu3 %v3438_v28  ;;  %v3207_v31 = vsel %vm9412_vm1, %v3204_v29, %v3206_v52 }
 0x422   : > { %3607 = vmatpush.msra.mxu2 %v3435_v36  ;;  %v2938_v34 = vrot.slane %v7784_v39, 4  ;;  %v2937_v38 = vrot.slane %v7786_v9, 4  ;;  %vm3376_vm1 = vcmask 1041408   ;;  %v2988_v36 = vrot.slane %v7790_v44, 4 }
 0x423   : > { %5517 = vrot.lane.b32.xlu1 %v5516_v13, %s5792_s4  ;;  %5512 = vrot.lane.b32.xlu0 %v5511_v11, %s5791_s25 }
 0x424   : > { %5502 = vrot.lane.b32.xlu2 %v5501_v48, %s5793_s8  ;;  %3795 = vmatpush.msrb.mxu3 %v3436_v32  ;;  %v2939_v60 = vsel %vm9427_vm3, %v2937_v38, %v2938_v34 }
 0x425   : > { %v8108_v23 = vpop.permute.xlu2 %5422  ;;  %3608 = vmatpush.msra.mxu2 %v3433_v4 }
 0x426   : > { %v5424_v62 = vunpack.i.l.bf16 %v8108_v23  ;;  %3796 = vmatpush.msrb.mxu3 %v3434_v51  ;;  %v5425_v59 = vunpack.i.h.bf16 %v8108_v23  ;;  %v3034_v23 = vrot.slane %v7819_v22, 4 }
 0x428   : > { %v2947_v54 = vsel %vm2946_vm11, %v7786_v9, %v5424_v62  ;;  %v2997_v46 = vsel %vm2946_vm11, %v7784_v39, %v5425_v59  ;;  %v2989_v9 = vrot.slane %v7806_v37, 4 }
 0x429   : > { %3562 = vmatmul.f32.vlgmr.msra.gmra.mxu0 %v2947_v54  ;;  %3750 = vmatmul.f32.vlgmr.msrb.gmra.mxu1 %v2947_v54  ;;  %v3280_v52 = vrot.slane %v2997_v46, 4 }
 0x42a   : > { %v2990_v32 = vsel %vm9427_vm3, %v2988_v36, %v2989_v9 }
 0x42b   : > { %3210 = vrot.lane.b32.xlu1 %v3207_v31, %s5792_s4  ;;  %3199 = vrot.lane.b32.xlu0 %v3195_v40, %s5791_s25 }
 0x42c   : > { %5507 = vrot.lane.b32.xlu2 %v5506_v42, %s5793_s8  ;;  %s5794_s8 = smov 80   ;;  %v3033_v42 = vrot.slane %v7817_v27, 4 }
 0x42d   : > { %v8121_v58 = vpop.permute.xlu2 %5427 }
 0x42e   : > { %v5429_v8 = vunpack.i.l.bf16 %v8121_v58  ;;  %v5430_v13 = vunpack.i.h.bf16 %v8121_v58  ;;  %v3035_v58 = vsel %vm9427_vm3, %v3033_v42, %v3034_v23 }
 0x430   : > { %v2998_v29 = vsel %vm2946_vm11, %v7790_v44, %v5429_v8  ;;  %v2948_v11 = vsel %vm2946_vm11, %v7784_v39, %v5430_v13  ;;  %v3077_v44 = vrot.slane %v7823_v21, 4 }
 0x431   : > { %v3281_v40 = vrot.slane %v2998_v29, 4 }
 0x432   : > { %v3078_v46 = vsel %vm9427_vm3, %v3034_v23, %v3077_v44 }
 0x433   : > { %2940 = vrot.lane.b32.xlu1 %v2939_v60, %s5794_s8  ;;  %3254 = vrot.lane.b32.xlu0 %v3250_v33, %s5792_s4  ;;  %v3282_v48 = vsel %vm9427_vm3, %v3280_v52, %v3281_v40 }
 0x434   : > { %3246 = vrot.lane.b32.xlu2 %v3242_v53, %s5791_s25  ;;  %v3377_v28 = vsel %vm3376_vm1, %v2948_v11, %v3282_v48 }
 0x435   : > { %3565 = vmatmul.f32.gmra.mxu0 %v3377_v28  ;;  %3753 = vmatmul.f32.gmra.mxu1 %v3377_v28  ;;  %v3123_v28 = vrot.slane %v7887_v1, 4 }
 0x43b   : > { %2942 = vrot.lane.b32.xlu1 %v2938_v34, %s5794_s8  ;;  %2993 = vrot.lane.b32.xlu0 %v2990_v32, %s5794_s8 }
 0x43c   : > { %2991 = vrot.lane.b32.xlu2 %v2988_v36, %s5794_s8  ;;  %v5413_v39 = vpop.permute.xlu0 %5412  ;;  %v8145_v33 = vpop.permute.xlu1 %5417 }
 0x43d   : > { %v5414_v53 = vunpack.i.l.bf16 %v5413_v39  ;;  %v5419_v4 = vunpack.i.l.bf16 %v8145_v33  ;;  %v5415_v54 = vunpack.i.h.bf16 %v5413_v39  ;;  %v5420_v34 = vunpack.i.h.bf16 %v8145_v33 }
 0x43f   : > { %v2950_v51 = vsel %vm2949_vm10, %v5424_v62, %v5414_v53  ;;  %v2999_v62 = vsel %vm2949_vm10, %v5425_v59, %v5415_v54  ;;  %v3122_v59 = vrot.slane %v7895_v63, 4 }
 0x440   : > { %v2953_v31 = vsel %vm2952_vm5, %v2950_v51, %v5419_v4  ;;  %v3001_v9 = vsel %vm2952_vm5, %v2999_v62, %v5420_v34 }
 0x441   : > { %3609 = vmatmul.f32.vlgmr.msra.gmra.mxu2 %v2953_v31  ;;  %3797 = vmatmul.f32.vlgmr.msrb.gmra.mxu3 %v2953_v31  ;;  %v3169_v31 = vrot.slane %v7908_v20, 4 }
 0x443   : > { %3038 = vrot.lane.b32.xlu1 %v3035_v58, %s5794_s8  ;;  %3079 = vrot.lane.b32.xlu0 %v3078_v46, %s5794_s8  ;;  %v3124_v46 = vsel %vm9427_vm3, %v3122_v59, %v3123_v28  ;;  %v3170_v59 = vrot.slane %v7955_v16, 4 }
 0x444   : > { %3036 = vrot.lane.b32.xlu2 %v3033_v42, %s5794_s8 }
 0x445   : > { %v5433_v29 = vpop.permute.xlu0 %5432  ;;  %v8162_v38 = vpop.permute.xlu2 %5442 }
 0x446   : > { %v5435_v52 = vunpack.i.h.bf16 %v5433_v29  ;;  %v5434_v60 = vunpack.i.l.bf16 %v5433_v29  ;;  %v5444_v11 = vunpack.i.l.bf16 %v8162_v38  ;;  %v8165_v48 = vpop.permute.xlu1 %5437  ;;  %v5445_v39 = vunpack.i.h.bf16 %v8162_v38 }
 0x447   : > { %v5439_v36 = vunpack.i.l.bf16 %v8165_v48  ;;  %v5440_v53 = vunpack.i.h.bf16 %v8165_v48 }
 0x448   : > { %v3000_v32 = vsel %vm2949_vm10, %v5429_v8, %v5434_v60  ;;  %v3042_v23 = vsel %vm2946_vm11, %v7806_v37, %v5444_v11  ;;  %v2951_v42 = vsel %vm2949_vm10, %v5430_v13, %v5435_v52  ;;  %v3283_v8 = vrot.slane %v3001_v9, 4 }
 0x449   : > { %v3002_v51 = vsel %vm2952_vm5, %v3000_v32, %v5439_v36  ;;  %v3381_v54 = vsel %vm9427_vm3, %v3281_v40, %v3042_v23  ;;  %v3085_v37 = vsel %vm2946_vm11, %v7819_v22, %v5445_v39  ;;  %v2954_v40 = vsel %vm2952_vm5, %v2951_v42, %v5440_v53 }
 0x44a   : > { %v3284_v58 = vrot.slane %v3002_v51, 4  ;;  %3568 = vmatmul.f32.gmra.mxu0 %v3381_v54  ;;  %3756 = vmatmul.f32.gmra.mxu1 %v3381_v54  ;;  %v3306_v9 = vrot.slane %v3085_v37, 4  ;;  %v3214_v32 = vrot.slane %v8039_v47, 4  ;;  %v3171_v51 = vsel %vm9427_vm3, %v3169_v31, %v3170_v59 }
 0x44b   : > { %3172 = vrot.lane.b32.xlu1 %v3169_v31, %s5794_s8  ;;  %3125 = vrot.lane.b32.xlu0 %v3124_v46, %s5794_s8  ;;  %v3258_v42 = vrot.slane %v8060_v7, 4 }
 0x44c   : > { %3081 = vrot.lane.b32.xlu2 %v3077_v44, %s5794_s8  ;;  %v3285_v13 = vsel %vm9427_vm3, %v3283_v8, %v3284_v58 }
 0x44d   : > { %v5448_v62 = vpop.permute.xlu2 %5447  ;;  %v3378_v29 = vsel %vm3376_vm1, %v2954_v40, %v3285_v13 }
 0x44e   : > { %v5450_v52 = vunpack.i.h.bf16 %v5448_v62  ;;  %v5449_v60 = vunpack.i.l.bf16 %v5448_v62  ;;  %3612 = vmatmul.f32.gmra.mxu2 %v3378_v29  ;;  %3800 = vmatmul.f32.gmra.mxu3 %v3378_v29 }
 0x450   : > { %v3043_v22 = vsel %vm2946_vm11, %v7817_v27, %v5449_v60  ;;  %v3086_v23 = vsel %vm2946_vm11, %v7823_v21, %v5450_v52  ;;  %v3215_v27 = vrot.slane %v8047_v15, 4 }
 0x451   : > { %v3385_v44 = vsel %vm9426_vm2, %v3043_v22, %v3306_v9  ;;  %v3310_v54 = vrot.slane %v3086_v23, 4 }
 0x452   : > { %3571 = vmatmul.f32.gmra.mxu0 %v3385_v44  ;;  %3759 = vmatmul.f32.gmra.mxu1 %v3385_v44  ;;  %v3216_v21 = vsel %vm9427_vm3, %v3214_v32, %v3215_v27 }
 0x453   : > { %3217 = vrot.lane.b32.xlu1 %v3214_v32, %s5794_s8  ;;  %3127 = vrot.lane.b32.xlu0 %v3123_v28, %s5794_s8  ;;  %v3311_v8 = vsel %vm9427_vm3, %v3306_v9, %v3310_v54  ;;  %v3259_v28 = vsel %vm9427_vm3, %v3215_v27, %v3258_v42 }
 0x454   : > { %3174 = vrot.lane.b32.xlu2 %v3171_v51, %s5794_s8 }
 0x45a   : > { %3574 = vmatmul.f32.gmra.mxu0 %v3311_v8  ;;  %3762 = vmatmul.f32.gmra.mxu1 %v3311_v8 }
 0x45b   : > { %3262 = vrot.lane.b32.xlu1 %v3258_v42, %s5794_s8  ;;  %3219 = vrot.lane.b32.xlu0 %v3216_v21, %s5794_s8 }
 0x45c   : > { %3260 = vrot.lane.b32.xlu2 %v3259_v28, %s5794_s8 }
 0x45d   : > { %v5453_v31 = vpop.permute.xlu0 %5452  ;;  %v8216_v46 = vpop.permute.xlu2 %5482 }
 0x45e   : > { %v5455_v37 = vunpack.i.h.bf16 %v5453_v31  ;;  %v5454_v40 = vunpack.i.l.bf16 %v5453_v31  ;;  %v5484_v13 = vunpack.i.l.bf16 %v8216_v46  ;;  %v8219_v62 = vpop.permute.xlu1 %5462  ;;  %v5485_v23 = vunpack.i.h.bf16 %v8216_v46 }
 0x45f   : > { %v5464_v29 = vunpack.i.l.bf16 %v8219_v62  ;;  %v5465_v22 = vunpack.i.h.bf16 %v8219_v62 }
 0x460   : > { %v3131_v9 = vsel %vm2946_vm11, %v7895_v63, %v5484_v13  ;;  %v3044_v59 = vsel %vm2949_vm10, %v5444_v11, %v5454_v40  ;;  %v3087_v32 = vsel %vm2949_vm10, %v5445_v39, %v5455_v37  ;;  %v3178_v39 = vsel %vm2946_vm11, %v7887_v1, %v5485_v23 }
 0x461   : > { %v3046_v44 = vsel %vm2952_vm5, %v3044_v59, %v5464_v29  ;;  %v3089_v63 = vsel %vm2952_vm5, %v3087_v32, %v5465_v22  ;;  %v3331_v59 = vrot.slane %v3178_v39, 4  ;;  %v3491_v39 = vld [vmem:[%s9371_s3 + $0x2d0] sm:$0xff] }
 0x462   : > { %3577 = vmatmul.f32.gmra.mxu0 %v3131_v9  ;;  %3765 = vmatmul.f32.gmra.mxu1 %v3131_v9  ;;  %v3382_v51 = vsel %vm9427_vm3, %v3284_v58, %v3046_v44  ;;  %v3307_v9 = vrot.slane %v3089_v63, 4 }
 0x463   : > { %3615 = vmatmul.f32.gmra.mxu2 %v3382_v51  ;;  %3803 = vmatmul.f32.gmra.mxu3 %v3382_v51 }
 0x465   : > { %v5458_v38 = vpop.permute.xlu0 %5457  ;;  %v8239_v11 = vpop.permute.xlu2 %5487 }
 0x466   : > { %v5460_v54 = vunpack.i.h.bf16 %v5458_v38  ;;  %v5459_v27 = vunpack.i.l.bf16 %v5458_v38  ;;  %v5489_v42 = vunpack.i.l.bf16 %v8239_v11  ;;  %v8246_v8 = vpop.permute.xlu1 %5467  ;;  %v5490_v58 = vunpack.i.h.bf16 %v8239_v11  ;;  %v3493_v38 = vld [vmem:[%s9371_s3 + $0x2e0] sm:$0xff] }
 0x467   : > { %v5470_v21 = vunpack.i.h.bf16 %v8246_v8  ;;  %v5469_v28 = vunpack.i.l.bf16 %v8246_v8 }
 0x468   : > { %v3088_v31 = vsel %vm2949_vm10, %v5450_v52, %v5460_v54  ;;  %v8256_v37 = vsel %vm2946_vm11, %v7908_v20, %v5489_v42  ;;  %v3045_v40 = vsel %vm2949_vm10, %v5449_v60, %v5459_v27  ;;  %v3495_v52 = vld [vmem:[%s9371_s3 + $0x2f0] sm:$0xff]  ;;  %v3132_v60 = vsel %vm2946_vm11, %v7887_v1, %v5490_v58  ;;  %v3489_v1 = vld [vmem:[%s9371_s3 + $0x2c0] sm:$0xff] }
 0x469   : > { %v3332_v44 = vrot.slane %v8256_v37, 4  ;;  %v3047_v32 = vsel %vm2952_vm5, %v3045_v40, %v5469_v28  ;;  %3640 = vmatpush.msrb.mxu0 %v3495_v52  ;;  %v3090_v20 = vsel %vm2952_vm5, %v3088_v31, %v5470_v21  ;;  %v3487_v31 = vld [vmem:[%s9371_s3 + $0x2b0] sm:$0xff] }
 0x46a   : > { %v3386_v51 = vsel %vm9426_vm2, %v3047_v32, %v3307_v9  ;;  %v3312_v27 = vrot.slane %v3090_v20, 4  ;;  %v3483_v32 = vld [vmem:[%s9371_s3 + $0x290] sm:$0xff] }
 0x46b   : > { %3618 = vmatmul.f32.gmra.mxu2 %v3386_v51  ;;  %3806 = vmatmul.f32.gmra.mxu3 %v3386_v51  ;;  %v3333_v63 = vsel %vm9427_vm3, %v3331_v59, %v3332_v44  ;;  %v3485_v59 = vld [vmem:[%s9371_s3 + $0x2a0] sm:$0xff] }
 0x46c   : > { %v3389_v54 = vsel %vm3376_vm1, %v3132_v60, %v3333_v63  ;;  %3641 = vmatpush.msrb.mxu0 %v3493_v38  ;;  %v3313_v40 = vsel %vm9427_vm3, %v3307_v9, %v3312_v27  ;;  %v3481_v38 = vld [vmem:[%s9371_s3 + $0x280] sm:$0xff] }
 0x46d   : > { %3580 = vmatmul.f32.gmra.mxu0 %v3389_v54  ;;  %3768 = vmatmul.f32.gmra.mxu1 %v3389_v54 }
 0x46e   : > { %3642 = vmatpush.msrb.mxu0 %v3491_v39  ;;  %v3479_v39 = vld [vmem:[%s9371_s3 + $0x270] sm:$0xff] }
 0x470   : > { %3643 = vmatpush.msrb.mxu0 %v3489_v1 }
 0x472   : > { %3644 = vmatpush.msrb.mxu0 %v3487_v31 }
 0x473   : > { %3621 = vmatmul.f32.gmra.mxu2 %v3313_v40  ;;  %3809 = vmatmul.f32.gmra.mxu3 %v3313_v40  ;;  %v3475_v40 = vld [vmem:[%s9371_s3 + $0x250] sm:$0xff] }
 0x474   : > { %v5473_v52 = vpop.permute.xlu0 %5472  ;;  %v8297_v51 = vpop.permute.xlu1 %5477  ;;  %3645 = vmatpush.msrb.mxu0 %v3485_v59 }
 0x475   : > { %v5474_v20 = vunpack.i.l.bf16 %v5473_v52  ;;  %v9415_v60 = vunpack.i.l.bf16 %v8297_v51  ;;  %v5475_v63 = vunpack.i.h.bf16 %v5473_v52  ;;  %v9417_v27 = vunpack.i.h.bf16 %v8297_v51 }
 0x476   : > { %3646 = vmatpush.msrb.mxu0 %v3483_v32 }
 0x477   : > { %v3133_v9 = vsel %vm2949_vm10, %v5484_v13, %v5474_v20  ;;  %v3477_v13 = vld [vmem:[%s9371_s3 + $0x260] sm:$0xff]  ;;  %v3180_v1 = vsel %vm2949_vm10, %v5485_v23, %v5475_v63 }
 0x478   : > { %v3135_v54 = vsel %vm2952_vm5, %v3133_v9, %v9415_v60  ;;  %3647 = vmatpush.msrb.mxu0 %v3481_v38  ;;  %v3182_v9 = vsel %vm2952_vm5, %v3180_v1, %v9417_v27  ;;  %v3473_v63 = vld [vmem:[%s9371_s3 + $0x240] sm:$0xff] }
 0x47a   : > { %3648 = vmatpush.msrb.mxu0 %v3479_v39 }
 0x47b   : > { %3624 = vmatmul.f32.gmra.mxu2 %v3135_v54  ;;  %3812 = vmatmul.f32.gmra.mxu3 %v3135_v54 }
 0x47c   : > { %3649 = vmatpush.msrb.mxu0 %v3477_v13 }
 0x47d   : > { %v5493_v31 = vpop.permute.xlu0 %5492 }
 0x47e   : > { %v5495_v59 = vunpack.i.h.bf16 %v5493_v31  ;;  %v5494_v32 = vunpack.i.l.bf16 %v5493_v31  ;;  %v8322_v52 = vpop.permute.xlu2 %5502  ;;  %v8324_v20 = vpop.permute.xlu1 %5497  ;;  %3650 = vmatpush.msrb.mxu0 %v3475_v40 }
 0x47f   : > { %v5504_v46 = vunpack.i.l.bf16 %v8322_v52  ;;  %v5499_v23 = vunpack.i.l.bf16 %v8324_v20  ;;  %v9416_v39 = vunpack.i.h.bf16 %v8324_v20  ;;  %v5505_v54 = vunpack.i.h.bf16 %v8322_v52  ;;  %v3467_v52 = vld [vmem:[%s9371_s3 + $0x210] sm:$0xff] }
 0x480   : > { %v3181_v38 = vsel %vm2949_vm10, %v5489_v42, %v5494_v32  ;;  %v3134_v31 = vsel %vm2949_vm10, %v5490_v58, %v5495_v59  ;;  %v3471_v42 = vld [vmem:[%s9371_s3 + $0x230] sm:$0xff]  ;;  %v3334_v32 = vrot.slane %v3182_v9, 4  ;;  %3651 = vmatpush.msrb.mxu0 %v3473_v63  ;;  %v3469_v58 = vld [vmem:[%s9371_s3 + $0x220] sm:$0xff] }
 0x481   : > { %v3183_v13 = vsel %vm2952_vm5, %v3181_v38, %v5499_v23  ;;  %v3223_v1 = vsel %vm2946_vm11, %v7955_v16, %v5504_v46  ;;  %v3136_v16 = vsel %vm2952_vm5, %v3134_v31, %v9416_v39  ;;  %v3266_v59 = vsel %vm2946_vm11, %v8047_v15, %v5505_v54 }
 0x482   : > { %v3335_v60 = vrot.slane %v3183_v13, 4  ;;  %v3393_v40 = vsel %vm9427_vm3, %v3332_v44, %v3223_v1  ;;  %3652 = vmatpush.msrb.mxu0 %v3471_v42  ;;  %v3357_v38 = vrot.slane %v3266_v59, 4  ;;  %v3505_v13 = vld [vmem:[%s9371_s3 + $0x340] sm:$0xf] }
 0x483   : > { %3583 = vmatmul.f32.gmra.mxu0 %v3393_v40  ;;  %3771 = vmatmul.f32.gmra.mxu1 %v3393_v40  ;;  %v3465_v1 = vld [vmem:[%s9371_s3 + $0x200] sm:$0xff] }
 0x484   : > { %v3336_v11 = vsel %vm9427_vm3, %v3334_v32, %v3335_v60  ;;  %3653 = vmatpush.msrb.mxu0 %v3469_v58  ;;  %5025 = vmatpush.msk.msrb.mxu2 %vm9427_vm3, %v3505_v13  ;;  %v3503_v32 = vld [vmem:[%s9371_s3 + $0x330] sm:$0xff]  ;;  %v3501_v40 = vld [vmem:[%s9371_s3 + $0x320] sm:$0xff] }
 0x485   : > { %v3390_v37 = vsel %vm3376_vm1, %v3136_v16, %v3336_v11  ;;  %v3499_v16 = vld [vmem:[%s9371_s3 + $0x310] sm:$0xff] }
 0x486   : > { %v5508_v44 = vpop.permute.xlu2 %5507  ;;  %3627 = vmatmul.f32.gmra.mxu2 %v3390_v37  ;;  %3815 = vmatmul.f32.gmra.mxu3 %v3390_v37 }
 0x487   : > { %v5510_v9 = vunpack.i.h.bf16 %v5508_v44  ;;  %v5509_v63 = vunpack.i.l.bf16 %v5508_v44  ;;  %3654 = vmatpush.msrb.mxu0 %v3467_v52  ;;  %3699 = vmatpush.msrb.mxu2 %v3503_v32 }
 0x489   : > { %v3224_v15 = vsel %vm2946_vm11, %v8039_v47, %v5509_v63  ;;  %v3267_v42 = vsel %vm2946_vm11, %v8060_v7, %v5510_v9  ;;  %3655 = vmatpush.msrb.mxu0 %v3465_v1  ;;  %3700 = vmatpush.msrb.mxu2 %v3501_v40  ;;  %v3497_v7 = vld [vmem:[%s9371_s3 + $0x300] sm:$0xff]  ;;  %vm2955_vm11 = vcmask 654336  }
 0x48a   : > { %v3397_v31 = vsel %vm9426_vm2, %v3224_v15, %v3357_v38  ;;  %v3361_v47 = vrot.slane %v3267_v42, 4 }
 0x48b   : > { %3586 = vmatmul.f32.gmra.mxu0 %v3397_v31  ;;  %3774 = vmatmul.f32.gmra.mxu1 %v3397_v31 }
 0x48c   : > { %v3362_v11 = vsel %vm9427_vm3, %v3357_v38, %v3361_v47  ;;  %3701 = vmatpush.msrb.mxu2 %v3499_v16 }
 0x48e   : > { %v3247_v58 = vpop.permute.xlu2 %3246  ;;  %3702 = vmatpush.msrb.mxu2 %v3497_v7 }
 0x493   : > { %3589 = vmatmul.f32.gmra.mxu0 %v3362_v11  ;;  %3777 = vmatmul.f32.gmra.mxu1 %v3362_v11 }
 0x495   : > { %v5513_v59 = vpop.permute.xlu0 %5512  ;;  %v8391_v37 = vpop.permute.xlu1 %5517 }
 0x496   : > { %v5515_v44 = vunpack.i.h.bf16 %v5513_v59  ;;  %v5514_v52 = vunpack.i.l.bf16 %v5513_v59  ;;  %v5519_v13 = vunpack.i.l.bf16 %v8391_v37  ;;  %v5520_v38 = vunpack.i.h.bf16 %v8391_v37  ;;  %v8409_v59 = vld [vmem:[#allocation5] sm:$0x3]  ;;  %v3480_v37 = vld [vmem:[%s9371_s3 + $0x278] sm:$0xff] }
 0x498   : > { %v3225_v15 = vsel %vm2949_vm10, %v5504_v46, %v5514_v52  ;;  %v3268_v31 = vsel %vm2949_vm10, %v5505_v54, %v5515_v44  ;;  %v2992_v46 = vpop.permute.xlu2 %2991  ;;  %v8413_v54 = vperm.slane %v8409_v59, 1  ;;  %v3269_v44 = vsel %vm2949_vm10, %v5510_v9, %v3247_v58 }
 0x499   : > { %v3227_v1 = vsel %vm2952_vm5, %v3225_v15, %v5519_v13  ;;  %v3270_v32 = vsel %vm2952_vm5, %v3268_v31, %v5520_v38  ;;  %v3289_v48 = vrot.slane %v2992_v46, 4 }
 0x49a   : > { %v3394_v42 = vsel %vm9427_vm3, %v3335_v60, %v3227_v1  ;;  %v3358_v7 = vrot.slane %v3270_v32, 4 }
 0x49b   : > { %3630 = vmatmul.f32.gmra.mxu2 %v3394_v42  ;;  %3818 = vmatmul.f32.gmra.mxu3 %v3394_v42 }
 0x49d   : > { %v3200_v47 = vpop.permute.xlu0 %3199  ;;  %v8404_v40 = vpop.permute.xlu1 %3210 }
 0x49e   : > { %v3226_v16 = vsel %vm2949_vm10, %v5509_v63, %v3200_v47  ;;  %v3003_v47 = vsel %vm2955_vm11, %v5420_v34, %v2992_v46  ;;  %vm9486_vm10 = vcmp.eq.s32.totalorder %v7514_v41, %v7507_v55 }
 0x49f   : > { %v3228_v11 = vsel %vm2952_vm5, %v3226_v16, %v8404_v40 }
 0x4a0   : > { %v3398_v60 = vsel %vm9426_vm2, %v3228_v11, %v3358_v7  ;;  %v3037_v32 = vpop.permute.xlu2 %3036 }
 0x4a3   : > { %3633 = vmatmul.f32.gmra.mxu2 %v3398_v60  ;;  %3821 = vmatmul.f32.gmra.mxu3 %v3398_v60  ;;  %v3286_v60 = vrot.slane %v3003_v47, 4 }
 0x4a5   : > { %v8416_v52 = vpop.permute.xlu0 %3254  ;;  %v8418_v15 = vpop.permute.xlu1 %2940 }
 0x4a6   : > { %v3271_v63 = vsel %vm2952_vm5, %v3269_v44, %v8416_v52  ;;  %v8426_v1 = vsel %vm2955_vm11, %v5419_v4, %v8418_v15  ;;  %v3751_v42 = vpop.f32.mrf.mxu1  ;;  %vm3513_vm5 = vcmask 293888  }
 0x4a7   : > { %v3363_v31 = vrot.slane %v3271_v63, 4  ;;  %3656 = vmatmul.f32.vlgmr.msrb.gmra.mxu0 %v8426_v1  ;;  %v3752_v9 = vadd.f32 %v3751_v42, %v8413_v54 }
 0x4a9   : > { %v3364_v58 = vsel %vm9427_vm3, %v3358_v7, %v3363_v31  ;;  %v8441_v31 = vpop.permute.xlu2 %3081 }
 0x4aa   : > { %v3316_v19 = vrot.slane %v8441_v31, 4 }
 0x4ab   : > { %3636 = vmatmul.f32.gmra.mxu2 %v3364_v58  ;;  %3824 = vmatmul.f32.gmra.mxu3 %v3364_v58 }
 0x4ad   : > { %v2994_v16 = vpop.permute.xlu0 %2993  ;;  %v2943_v11 = vpop.permute.xlu1 %2942 }
 0x4ae   : > { %v3004_v4 = vsel %vm2955_vm11, %v5439_v36, %v2994_v16  ;;  %v2957_v63 = vsel %vm2955_vm11, %v5440_v53, %v2943_v11  ;;  %v3290_v42 = vrot.slane %v2994_v16, 4 }
 0x4af   : > { %v3287_v44 = vrot.slane %v3004_v4, 4  ;;  %v3048_v4 = vsel %vm2955_vm11, %v5464_v29, %v3037_v32  ;;  %v3496_v29 = vld [vmem:[%s9371_s3 + $0x2f8] sm:$0xff] }
 0x4b0   : > { %v3291_v47 = vsel %vm9427_vm3, %v3289_v48, %v3290_v42  ;;  %3828 = vmatpush.msra.mxu0 %v3496_v29  ;;  %v3490_v48 = vld [vmem:[%s9371_s3 + $0x2c8] sm:$0xff] }
 0x4b1   : > { %v3288_v7 = vsel %vm9427_vm3, %v3286_v60, %v3287_v44  ;;  %v8459_v16 = vsel %vm3376_vm1, %v2943_v11, %v3291_v47  ;;  %v8462_v60 = vsel %vm9427_vm3, %v3287_v44, %v3048_v4  ;;  %v3494_v11 = vld [vmem:[%s9371_s3 + $0x2e8] sm:$0xff]  ;;  %v8477_v44 = vpop.permute.xlu2 %3174 }
 0x4b2   : > { %v3754_v33 = vpop.f32.mrf.mxu1  ;;  %v8444_v34 = vsel %vm3376_vm1, %v2957_v63, %v3288_v7  ;;  %3829 = vmatpush.msra.mxu0 %v3494_v11  ;;  %v3492_v7 = vld [vmem:[%s9371_s3 + $0x2d8] sm:$0xff]  ;;  %v8496_v47 = vsel %vm2955_vm11, %v5499_v23, %v8477_v44  ;;  %v3092_v23 = vsel %vm2955_vm11, %v5470_v21, %v8441_v31  ;;  %v9482_v31 = vunpack.i.l.bf16 %v8297_v51 }
 0x4b3   : > { %v8447_v58 = vadd.f32 %v3754_v33, %v8413_v54  ;;  %3659 = vmatmul.f32.gmra.mxu0 %v8444_v34  ;;  %5026 = vmatmul.msk.f32.vlgmr.msrb.gmra.mxu2 %vm3513_vm5, %v8418_v15  ;;  %v3338_v11 = vrot.slane %v8496_v47, 4  ;;  %v3314_v47 = vrot.slane %v3092_v23, 4  ;;  %v3482_v23 = vld [vmem:[%s9371_s3 + $0x288] sm:$0xff] }
 0x4b4   : > { %3830 = vmatpush.msra.mxu0 %v3492_v7 }
 0x4b5   : > { %v8452_v36 = vpop.permute.xlu0 %3079  ;;  %v3039_v53 = vpop.permute.xlu1 %3038 }
 0x4b6   : > { %v3091_v46 = vsel %vm2955_vm11, %v5465_v22, %v8452_v36  ;;  %v3049_v33 = vsel %vm2955_vm11, %v5469_v28, %v3039_v53  ;;  %v3488_v28 = vld [vmem:[%s9371_s3 + $0x2b8] sm:$0xff]  ;;  %3831 = vmatpush.msra.mxu0 %v3490_v48 }
 0x4b7   : > { %v3308_v22 = vrot.slane %v3091_v46, 4  ;;  %v8502_v46 = vsel %vm9427_vm3, %v3290_v42, %v3037_v32 }
 0x4b8   : > { %3832 = vmatpush.msra.mxu0 %v3488_v28 }
 0x4b9   : > { %v8499_v4 = vsel %vm9426_vm2, %v3049_v33, %v3308_v22  ;;  %v3309_v33 = vrot.slane %v8452_v36, 4  ;;  %v8526_v39 = vpop.permute.xlu2 %3260  ;;  %v3484_v36 = vld [vmem:[%s9371_s3 + $0x298] sm:$0xff] }
 0x4bb   : > { %3662 = vmatmul.f32.gmra.mxu0 %v8462_v60  ;;  %5027 = vmatmul.msk.f32.gmra.mxu2 %vm3513_vm5, %v8459_v16  ;;  %v8545_v28 = vsel %vm9426_vm2, %v3039_v53, %v3309_v33  ;;  %v8601_v18 = vsel %vm9427_vm3, %v3309_v33, %v3316_v19  ;;  %v3470_v33 = vld [vmem:[%s9371_s3 + $0x228] sm:$0xff] }
 0x4bd   : > { %v8479_v63 = vpop.permute.xlu0 %3125  ;;  %v8481_v62 = vpop.permute.xlu1 %3172 }
 0x4c3   : > { %3665 = vmatmul.f32.gmra.mxu0 %v8499_v4  ;;  %5028 = vmatmul.msk.f32.gmra.mxu2 %vm3513_vm5, %v8502_v46 }
 0x4c4   : > { %v3798_v29 = vpop.f32.mrf.mxu3 }
 0x4c5   : > { %v8515_v32 = vadd.f32 %v3798_v29, %v3752_v9  ;;  %v8517_v42 = vpop.permute.xlu0 %3127  ;;  %v8519_v7 = vpop.permute.xlu1 %3217  ;;  %v3486_v9 = vld [vmem:[%s9371_s3 + $0x2a8] sm:$0xff] }
 0x4c6   : > { %v3229_v48 = vsel %vm2955_vm11, %v5519_v13, %v8519_v7  ;;  %3833 = vmatpush.msra.mxu0 %v3486_v9  ;;  %v3272_v13 = vsel %vm2955_vm11, %v5520_v38, %v8526_v39 }
 0x4c7   : > { %v3757_v8 = vpop.f32.mrf.mxu1  ;;  %v8529_v21 = vsel %vm9427_vm3, %v3338_v11, %v3229_v48  ;;  %v8548_v48 = vsel %vm9427_vm3, %v3308_v22, %v3314_v47  ;;  %v3359_v38 = vrot.slane %v3272_v13, 4  ;;  %v3478_v13 = vld [vmem:[%s9371_s3 + $0x268] sm:$0xff] }
 0x4c8   : > { %v8538_v29 = vadd.f32 %v3757_v8, %v8413_v54  ;;  %3834 = vmatpush.msra.mxu0 %v3484_v36  ;;  %v8563_v8 = vpop.f32.mrf.mxu0 }
 0x4ca   : > { %3835 = vmatpush.msra.mxu0 %v3482_v23  ;;  %v3476_v23 = vld [vmem:[%s9371_s3 + $0x258] sm:$0xff] }
 0x4cb   : > { %3668 = vmatmul.f32.gmra.mxu0 %v8548_v48  ;;  %5029 = vmatmul.msk.f32.gmra.mxu2 %vm3513_vm5, %v8545_v28 }
 0x4cc   : > { %3836 = vmatpush.msra.mxu0 %v3480_v37 }
 0x4cd   : > { %v8559_v53 = vpop.permute.xlu0 %3219  ;;  %v8561_v22 = vpop.permute.xlu1 %3262 }
 0x4ce   : > { %v3230_v9 = vsel %vm2955_vm11, %v8404_v40, %v8559_v53  ;;  %v3273_v36 = vsel %vm2955_vm11, %v8416_v52, %v8561_v22  ;;  %3837 = vmatpush.msra.mxu0 %v3478_v13  ;;  %v3474_v52 = vld [vmem:[%s9371_s3 + $0x248] sm:$0xff]  ;;  %v8598_v13 = vsel %vm2955_vm11, %v9482_v31, %v8479_v63 }
 0x4cf   : > { %v3365_v47 = vrot.slane %v3273_v36, 4  ;;  %v8572_v27 = vsel %vm9426_vm2, %v3230_v9, %v3359_v38  ;;  %v9481_v9 = vunpack.i.h.bf16 %v8297_v51  ;;  %v9483_v51 = vunpack.i.h.bf16 %v8324_v20  ;;  %v3466_v20 = vld [vmem:[%s9371_s3 + $0x208] sm:$0xff] }
 0x4d0   : > { %3838 = vmatpush.msra.mxu0 %v3476_v23  ;;  %v3468_v23 = vld [vmem:[%s9371_s3 + $0x218] sm:$0xff] }
 0x4d1   : > { %v3801_v40 = vpop.f32.mrf.mxu3  ;;  %v8585_v37 = vsel %vm9427_vm3, %v3359_v38, %v3365_v47  ;;  %v3184_v36 = vsel %vm2955_vm11, %v9481_v9, %v8481_v62  ;;  %v8609_v47 = vpop.f32.mrf.mxu0  ;;  %v3138_v19 = vsel %vm2955_vm11, %v9483_v51, %v8517_v42 }
 0x4d2   : > { %v8592_v45 = vadd.f32 %v3801_v40, %v8447_v58  ;;  %v3472_v58 = vld [vmem:[%s9371_s3 + $0x238] sm:$0xff]  ;;  %3839 = vmatpush.msra.mxu0 %v3474_v52  ;;  %v3337_v38 = vrot.slane %v3184_v36, 4  ;;  %v3506_v40 = vld [vmem:[%s9371_s3 + $0x348] sm:$0xf]  ;;  %v3610_v51 = vpop.f32.mrf.mxu2 }
 0x4d3   : > { %3671 = vmatmul.f32.gmra.mxu0 %v8598_v13  ;;  %5030 = vmatmul.msk.f32.gmra.mxu2 %vm3513_vm5, %v8601_v18  ;;  %v3504_v36 = vld [vmem:[%s9371_s3 + $0x338] sm:$0xff] }
 0x4d4   : > { %3840 = vmatpush.msra.mxu0 %v3472_v58  ;;  %v3339_v52 = vsel %vm9427_vm3, %v3337_v38, %v3338_v11  ;;  %5036 = vmatpush.msk.msra.mxu2 %vm9427_vm3, %v3506_v40  ;;  %v3340_v11 = vrot.slane %v8481_v62, 4  ;;  %v3341_v58 = vrot.slane %v8477_v44, 4  ;;  %v3502_v38 = vld [vmem:[%s9371_s3 + $0x328] sm:$0xff] }
 0x4d5   : > { %v3391_v9 = vsel %vm3376_vm1, %v3138_v19, %v3339_v52  ;;  %v3498_v62 = vld [vmem:[%s9371_s3 + $0x308] sm:$0xff] }
 0x4d6   : > { %3841 = vmatpush.msra.mxu0 %v3470_v33  ;;  %3887 = vmatpush.msra.mxu2 %v3504_v36  ;;  %v3342_v19 = vsel %vm9427_vm3, %v3340_v11, %v3341_v58  ;;  %v3500_v33 = vld [vmem:[%s9371_s3 + $0x318] sm:$0xff]  ;;  %v3396_v36 = vsel %vm9427_vm3, %v3341_v58, %v8519_v7 }
 0x4d8   : > { %3842 = vmatpush.msra.mxu0 %v3468_v23  ;;  %3888 = vmatpush.msra.mxu2 %v3502_v38  ;;  %v3392_v23 = vsel %vm3376_vm1, %v8517_v42, %v3342_v19  ;;  %v3360_v42 = vrot.slane %v8526_v39, 4 }
 0x4d9   : > { %v8636_v31 = vpop.f32.mrf.mxu0 }
 0x4da   : > { %3843 = vmatpush.msra.mxu0 %v3466_v20  ;;  %3889 = vmatpush.msra.mxu2 %v3500_v33  ;;  %v3613_v20 = vpop.f32.mrf.mxu2  ;;  %v3400_v38 = vsel %vm9426_vm2, %v8559_v53, %v3360_v42  ;;  %vm9488_vm2 = vcmp.eq.s32.totalorder %v7425_v17, %v7507_v55 }
 0x4db   : > { %3674 = vmatmul.f32.gmra.mxu0 %v3391_v9  ;;  %5031 = vmatmul.msk.f32.gmra.mxu2 %vm3513_vm5, %v8479_v63 }
 0x4dc   : > { %3890 = vmatpush.msra.mxu2 %v3498_v62 }
 0x4e1   : > { %v8656_v52 = vpop.f32.mrf.mxu0 }
 0x4e3   : > { %3677 = vmatmul.f32.gmra.mxu0 %v8529_v21  ;;  %5032 = vmatmul.msk.f32.gmra.mxu2 %vm3513_vm5, %v3392_v23 }
 0x4e6   : > { %v3804_v44 = vpop.f32.mrf.mxu3  ;;  %v3616_v11 = vpop.f32.mrf.mxu2 }
 0x4e7   : > { %v8654_v40 = vadd.f32 %v3804_v44, %v8538_v29  ;;  %v3367_v29 = vrot.slane %v8561_v22, 4 }
 0x4e9   : > { %v8665_v19 = vpop.f32.mrf.mxu0  ;;  %v8673_v7 = vsel %vm9427_vm3, %v3360_v42, %v3367_v29  ;;  %vm9495_vm3 = vcmp.eq.s32.totalorder %v7348_v0, %v7507_v55 }
 0x4eb   : > { %3680 = vmatmul.f32.gmra.mxu0 %v8572_v27  ;;  %5033 = vmatmul.msk.f32.gmra.mxu2 %vm3513_vm5, %v3396_v36 }
 0x4ee   : > { %v8670_v33 = vpop.f32.mrf.mxu2 }
 0x4f1   : > { %v8678_v39 = vpop.f32.mrf.mxu0 }
 0x4f3   : > { %3683 = vmatmul.f32.gmra.mxu0 %v8585_v37  ;;  %5034 = vmatmul.msk.f32.gmra.mxu2 %vm3513_vm5, %v3400_v38 }
 0x4f6   : > { %v8685_v22 = vpop.f32.mrf.mxu2 }
 0x4f9   : > { %v8683_v53 = vpop.f32.mrf.mxu0 }
 0x4fb   : > { %5035 = vmatmul.msk.f32.gmra.mxu2 %vm3513_vm5, %v8673_v7  ;;  %3844 = vmatmul.f32.vlgmr.msra.gmra.mxu0 %v8426_v1 }
 0x4fe   : > { %v8692_v62 = vpop.f32.mrf.mxu2 }
 0x501   : > { %v8690_v58 = vpop.f32.mrf.mxu0 }
 0x503   : > { %3847 = vmatmul.f32.gmra.mxu0 %v8444_v34  ;;  %5037 = vmatmul.msk.f32.vlgmr.msra.gmra.mxu2 %vm3513_vm5, %v8418_v15 }
 0x509   : > { %v3587_v1 = vpop.f32.mrf.mxu0  ;;  %v8697_v15 = vpop.f32.mrf.mxu2 }
 0x50b   : > { %3850 = vmatmul.f32.gmra.mxu0 %v8462_v60  ;;  %5038 = vmatmul.msk.f32.gmra.mxu2 %vm3513_vm5, %v8459_v16  ;;  %v8705_v60 = vperm.slane %v8409_v59, 0 }
 0x511   : > { %v3590_v16 = vpop.f32.mrf.mxu0 }
 0x513   : > { %3853 = vmatmul.f32.gmra.mxu0 %v8499_v4  ;;  %5039 = vmatmul.msk.f32.gmra.mxu2 %vm3513_vm5, %v8502_v46  ;;  %v3588_v4 = vadd.f32 %v3587_v1, %v8705_v60 }
 0x51b   : > { %3856 = vmatmul.f32.gmra.mxu0 %v8548_v48  ;;  %5040 = vmatmul.msk.f32.gmra.mxu2 %vm3513_vm5, %v8545_v28  ;;  %v3591_v28 = vadd.f32 %v3590_v16, %v8705_v60 }
 0x51e   : > { %v8702_v34 = vpop.f32.mrf.mxu2 }
 0x523   : > { %3859 = vmatmul.f32.gmra.mxu0 %v8598_v13  ;;  %5041 = vmatmul.msk.f32.gmra.mxu2 %vm3513_vm5, %v8601_v18  ;;  %v3564_v13 = vadd.f32 %v8563_v8, %v8705_v60 }
 0x524   : > { %v3657_v42 = vpop.f32.mrf.mxu0 }
 0x525   : > { %v3611_v43 = vadd.f32 %v3610_v51, %v3564_v13 }
 0x526   : > { %v3634_v46 = vpop.f32.mrf.mxu2 }
 0x527   : > { %v3635_v44 = vadd.f32 %v3634_v46, %v3588_v4  ;;  %v3658_v18 = vadd.f32 %v3657_v42, %v3611_v43 }
 0x52b   : > { %3862 = vmatmul.f32.gmra.mxu0 %v3391_v9  ;;  %5042 = vmatmul.msk.f32.gmra.mxu2 %vm3513_vm5, %v8479_v63  ;;  %v3567_v63 = vadd.f32 %v8609_v47, %v8705_v60 }
 0x52d   : > { %v3614_v16 = vadd.f32 %v3613_v20, %v3567_v63 }
 0x52e   : > { %v3637_v48 = vpop.f32.mrf.mxu2 }
 0x52f   : > { %v8714_v29 = vadd.f32 %v3637_v48, %v3591_v28 }
 0x530   : > { %v3660_v59 = vpop.f32.mrf.mxu0 }
 0x531   : > { %v3661_v46 = vadd.f32 %v3660_v59, %v3614_v16 }
 0x533   : > { %3865 = vmatmul.f32.gmra.mxu0 %v8529_v21  ;;  %5043 = vmatmul.msk.f32.gmra.mxu2 %vm3513_vm5, %v3392_v23  ;;  %v3570_v21 = vadd.f32 %v8636_v31, %v8705_v60 }
 0x535   : > { %v3617_v23 = vadd.f32 %v3616_v11, %v3570_v21 }
 0x536   : > { %v3704_v1 = vpop.f32.mrf.mxu2 }
 0x537   : > { %v3705_v9 = vadd.f32 %v3704_v1, %v3658_v18 }
 0x538   : > { %v3663_v4 = vpop.f32.mrf.mxu0 }
 0x539   : > { %v3922_v8 = vmax.f32 %v3705_v9, 0.0  ;;  %v3664_v47 = vadd.f32 %v3663_v4, %v3617_v23  ;;  %v3585_v23 = vadd.f32 %v8690_v58, %v8705_v60  ;;  %v3576_v58 = vadd.f32 %v8665_v19, %v8705_v60 }
 0x53b   : > { %3868 = vmatmul.f32.gmra.mxu0 %v8572_v27  ;;  %5044 = vmatmul.msk.f32.gmra.mxu2 %vm3513_vm5, %v3396_v36  ;;  %v3962_v42 = vrot.slane %v3922_v8, 1 }
 0x53e   : > { %v3707_v28 = vpop.f32.mrf.mxu2 }
 0x53f   : > { %v3708_v51 = vadd.f32 %v3707_v28, %v3661_v46 }
 0x540   : > { %v3666_v48 = vpop.f32.mrf.mxu0 }
 0x541   : > { %v3924_v43 = vmax.f32 %v3708_v51, 0.0 }
 0x543   : > { %v3963_v13 = vrot.slane %v3924_v43, 1  ;;  %3871 = vmatmul.f32.gmra.mxu0 %v8585_v37  ;;  %5045 = vmatmul.msk.f32.gmra.mxu2 %vm3513_vm5, %v3400_v38 }
 0x545   : > { %v3964_v27 = vsel %vm499_vm0, %v3962_v42, %v3963_v13 }
 0x546   : > { %v3710_v20 = vpop.f32.mrf.mxu2  ;;  %v8729_v36 = vmax.f32 %v3922_v8, %v3964_v27 }
 0x547   : > { %v8731_v59 = vadd.f32 %v3710_v20, %v3664_v47  ;;  %v3579_v20 = vadd.f32 %v8678_v39, %v8705_v60 }
 0x548   : > { %v3669_v18 = vpop.f32.mrf.mxu0 }
 0x549   : > { %v9422_v1 = vmax.f32 %v8731_v59, 0.0  ;;  %v3626_v26 = vadd.f32 %v8692_v62, %v3579_v20 }
 0x54b   : > { %v8736_v31 = vrot.slane %v9422_v1, 1  ;;  %5046 = vmatmul.msk.f32.gmra.mxu2 %vm3513_vm5, %v8673_v7  ;;  %v3582_v7 = vadd.f32 %v8683_v53, %v8705_v60  ;;  %vm9487_vm5 = vcmp.eq.s32.totalorder %v7527_v30, %v7507_v55 }
 0x54d   : > { %v3969_v37 = vsel %vm499_vm0, %v3963_v13, %v8736_v31  ;;  %v3632_v13 = vadd.f32 %v8702_v34, %v3585_v23  ;;  %v3573_v34 = vadd.f32 %v8656_v52, %v8705_v60 }
 0x54e   : > { %v3713_v11 = vpop.f32.mrf.mxu2  ;;  %v8742_v38 = vmax.f32 %v3924_v43, %v3969_v37  ;;  %v3629_v37 = vadd.f32 %v8697_v15, %v3582_v7 }
 0x550   : > { %v3672_v9 = vpop.f32.mrf.mxu0 }
 0x556   : > { %v3716_v4 = vpop.f32.mrf.mxu2 }
 0x558   : > { %v3675_v63 = vpop.f32.mrf.mxu0 }
 0x559   : > { %v3676_v10 = vadd.f32 %v3675_v63, %v3629_v37 }
 0x55e   : > { %v3719_v16 = vpop.f32.mrf.mxu2 }
 0x560   : > { %v3678_v46 = vpop.f32.mrf.mxu0 }
 0x561   : > { %v3679_v1 = vadd.f32 %v3678_v46, %v3632_v13 }
 0x566   : > { %v3722_v28 = vpop.f32.mrf.mxu2 }
 0x567   : > { %v3723_v39 = vadd.f32 %v3722_v28, %v3676_v10 }
 0x568   : > { %v3681_v8 = vpop.f32.mrf.mxu0 }
 0x569   : > { %v3682_v43 = vadd.f32 %v3681_v8, %v3635_v44  ;;  %v3673_v8 = vadd.f32 %v3672_v9, %v3626_v26  ;;  %v3934_v60 = vmax.f32 %v3723_v39, 0.0 }
 0x56b   : > { %v3720_v19 = vadd.f32 %v3719_v16, %v3673_v8  ;;  %v3760_v8 = vpop.f32.mrf.mxu1 }
 0x56d   : > { %v3932_v26 = vmax.f32 %v3720_v19, 0.0 }
 0x56e   : > { %v3725_v51 = vpop.f32.mrf.mxu2 }
 0x56f   : > { %v3726_v53 = vadd.f32 %v3725_v51, %v3679_v1 }
 0x570   : > { %v3684_v21 = vpop.f32.mrf.mxu0 }
 0x571   : > { %v3685_v44 = vadd.f32 %v3684_v21, %v8714_v29  ;;  %v3936_v13 = vmax.f32 %v3726_v53, 0.0 }
 0x573   : > { %v3988_v10 = vrot.slane %v3936_v13, 1 }
 0x576   : > { %v3728_v42 = vpop.f32.mrf.mxu2 }
 0x577   : > { %v3729_v56 = vadd.f32 %v3728_v42, %v3682_v43  ;;  %v3620_v42 = vadd.f32 %v8670_v33, %v3573_v34  ;;  %v3984_v33 = vrot.slane %v3934_v60, 1 }
 0x578   : > { %v3845_v47 = vpop.f32.mrf.mxu0 }
 0x579   : > { %v3846_v27 = vadd.f32 %v3845_v47, %v8515_v32  ;;  %v3623_v32 = vadd.f32 %v8685_v22, %v3576_v58  ;;  %v3938_v23 = vmax.f32 %v3729_v56, 0.0  ;;  %v3667_v51 = vadd.f32 %v3666_v48, %v3620_v42  ;;  %v3807_v42 = vpop.f32.mrf.mxu3 }
 0x57a   : > { %v3980_v48 = vrot.slane %v3932_v26, 1  ;;  %v3989_v20 = vsel %vm499_vm0, %v3984_v33, %v3988_v10 }
 0x57b   : > { %v3670_v7 = vadd.f32 %v3669_v18, %v3623_v32  ;;  %v3992_v29 = vrot.slane %v3938_v23, 1  ;;  %v3714_v22 = vadd.f32 %v3713_v11, %v3667_v51  ;;  %v4032_v34 = vmax.f32 %v3934_v60, %v3989_v20 }
 0x57c   : > { %v3985_v53 = vsel %vm499_vm0, %v3980_v48, %v3984_v33 }
 0x57d   : > { %v3717_v52 = vadd.f32 %v3716_v4, %v3670_v7  ;;  %v3993_v43 = vsel %vm499_vm0, %v3988_v10, %v3992_v29  ;;  %v3761_v10 = vadd.f32 %v3760_v8, %v8413_v54 }
 0x57e   : > { %v3731_v15 = vpop.f32.mrf.mxu2  ;;  %v4034_v37 = vmax.f32 %v3936_v13, %v3993_v43 }
 0x57f   : > { %v3732_v46 = vadd.f32 %v3731_v15, %v3685_v44  ;;  %v3930_v28 = vmax.f32 %v3717_v52, 0.0  ;;  %v9484_v52 = vmax.f32 %v8731_v59, 0.0 }
 0x580   : > { %v3848_v62 = vpop.f32.mrf.mxu0 }
 0x581   : > { %v3940_v63 = vmax.f32 %v3732_v46, 0.0  ;;  %v3849_v1 = vadd.f32 %v3848_v62, %v8592_v45  ;;  %v3928_v45 = vmax.f32 %v3714_v22, 0.0  ;;  %v3976_v58 = vrot.slane %v3930_v28, 1  ;;  %v8784_v59 = vpop.f32.mrf.mxu3 }
 0x583   : > { %v3996_v21 = vrot.slane %v3940_v63, 1  ;;  %v3972_v44 = vrot.slane %v3928_v45, 1  ;;  %v3981_v32 = vsel %vm499_vm0, %v3976_v58, %v3980_v48 }
 0x585   : > { %v4038_v56 = vmax.f32 %v3940_v63, %v3996_v21  ;;  %v3997_v9 = vsel %vm499_vm0, %v3992_v29, %v3996_v21  ;;  %v3973_v19 = vsel %vm499_vm0, %v8736_v31, %v3972_v44 }
 0x586   : > { %v3892_v18 = vpop.f32.mrf.mxu2  ;;  %v4036_v16 = vmax.f32 %v3938_v23, %v3997_v9  ;;  %v3977_v23 = vsel %vm499_vm0, %v3972_v44, %v3976_v58  ;;  %v4024_v60 = vmax.f32 %v9484_v52, %v3973_v19  ;;  %v9485_v9 = vmov 1.0  }
 0x587   : > { %v3893_v47 = vadd.f32 %v3892_v18, %v3846_v27  ;;  %5047 = vmatpush.msk.msra.mxu1 %vm499_vm0, %v4038_v56  ;;  %v4030_v27 = vmax.f32 %v3932_v26, %v3985_v53  ;;  %v4026_v62 = vmax.f32 %v3928_v45, %v3977_v23  ;;  %v8778_v26 = vpop.f32.mrf.mxu1  ;;  %v8879_v19 = vsel %vm7230_vm8, 1.0, %v9498_v2 }
 0x588   : > { %v3851_v4 = vpop.f32.mrf.mxu0 }
 0x589   : > { %v3852_v11 = vadd.f32 %v3851_v4, %v8654_v40  ;;  %4069 = vmatpush.msra.mxu1 %v4036_v16  ;;  %v3923_v15 = vmax.f32 %v3893_v47, 0.0  ;;  %v4028_v40 = vmax.f32 %v3930_v28, %v3981_v32  ;;  %v3808_v28 = vadd.f32 %v3807_v42, %v3761_v10  ;;  %v3813_v45 = vpop.f32.mrf.mxu3 }
 0x58b   : > { %4070 = vmatpush.msra.mxu1 %v4034_v37  ;;  %v3965_v63 = vrot.slane %v3923_v15, 1 }
 0x58d   : > { %4071 = vmatpush.msra.mxu1 %v4032_v34 }
 0x58e   : > { %v3895_v39 = vpop.f32.mrf.mxu2 }
 0x58f   : > { %v3896_v46 = vadd.f32 %v3895_v39, %v3849_v1  ;;  %4072 = vmatpush.msra.mxu1 %v4030_v27 }
 0x590   : > { %v3854_v7 = vpop.f32.mrf.mxu0 }
 0x591   : > { %v3925_v13 = vmax.f32 %v3896_v46, 0.0  ;;  %4073 = vmatpush.msra.mxu1 %v4028_v40 }
 0x593   : > { %v3966_v51 = vrot.slane %v3925_v13, 1  ;;  %4074 = vmatpush.msra.mxu1 %v4026_v62  ;;  %v3764_v62 = vadd.f32 %v8778_v26, %v8413_v54  ;;  %v4873_v26 = vsel %vm7272_vm9, 1.0, %v9498_v2 }
 0x595   : > { %4075 = vmatpush.msra.mxu1 %v4024_v60  ;;  %v3967_v29 = vsel %vm499_vm0, %v3965_v63, %v3966_v51 }
 0x596   : > { %v3898_v1 = vpop.f32.mrf.mxu2  ;;  %v8775_v21 = vmax.f32 %v3923_v15, %v3967_v29  ;;  %v3811_v29 = vadd.f32 %v8784_v59, %v3764_v62 }
 0x597   : > { %v3899_v22 = vadd.f32 %v3898_v1, %v3852_v11  ;;  %4076 = vmatpush.msra.mxu1 %v8742_v38  ;;  %v3855_v38 = vadd.f32 %v3854_v7, %v3808_v28 }
 0x598   : > { %v8780_v31 = vpop.f32.mrf.mxu0 }
 0x599   : > { %v3927_v56 = vmax.f32 %v3899_v22, 0.0  ;;  %4077 = vmatpush.msra.mxu1 %v8729_v36  ;;  %v3766_v36 = vpop.f32.mrf.mxu1 }
 0x59a   : > { %v3767_v39 = vadd.f32 %v3766_v36, %v8413_v54 }
 0x59b   : > { %5059 = vmatpush.msk.msrb.mxu1 %vm9486_vm10, %v9485_v9  ;;  %v3970_v33 = vrot.slane %v3927_v56, 1  ;;  %vm9489_vm10 = vcmp.eq.s32.totalorder %v7414_v6, %v7507_v55 }
 0x59c   : > { %v3814_v63 = vadd.f32 %v3813_v45, %v3767_v39 }
 0x59d   : > { %5060 = vmatpush.msk.msrb.mxu1 %vm9487_vm5, %v9485_v9  ;;  %v3971_v18 = vsel %vm499_vm0, %v3966_v51, %v3970_v33  ;;  %vm9490_vm5 = vcmp.eq.s32.totalorder %v7403_v57, %v7507_v55 }
 0x59e   : > { %v3901_v16 = vpop.f32.mrf.mxu2  ;;  %v8795_v43 = vmax.f32 %v3925_v13, %v3971_v18 }
 0x59f   : > { %5061 = vmatpush.msk.msrb.mxu1 %vm9488_vm2, %v9485_v9  ;;  %v8801_v41 = vadd.f32 %v3901_v16, %v3855_v38  ;;  %vm9491_vm2 = vcmp.eq.s32.totalorder %v7392_v61, %v7507_v55  ;;  %v3816_v61 = vpop.f32.mrf.mxu3 }
 0x5a0   : > { %v3860_v47 = vpop.f32.mrf.mxu0 }
 0x5a1   : > { %5062 = vmatpush.msk.msrb.mxu1 %vm9489_vm10, %v9485_v9  ;;  %v3929_v30 = vmax.f32 %v8801_v41, 0.0  ;;  %vm9492_vm10 = vcmp.eq.s32.totalorder %v7381_v25, %v7507_v55  ;;  %v3769_v57 = vpop.f32.mrf.mxu1  ;;  %v3861_v1 = vadd.f32 %v3860_v47, %v3814_v63  ;;  %v9505_v41 = vld [vmem:[#allocation24_spill] sm:$0xff] }
 0x5a2   : > { %v3770_v32 = vadd.f32 %v3769_v57, %v8413_v54  ;;  %vm9506_vm8 = vcmp.eq.s32.totalorder %v9505_v41, %v7507_v55 }
 0x5a3   : > { %5063 = vmatpush.msk.msrb.mxu1 %vm9490_vm5, %v9485_v9  ;;  %v8814_v17 = vrot.slane %v3929_v30, 1  ;;  %vm9493_vm5 = vcmp.eq.s32.totalorder %v7370_v5, %v7507_v55 }
 0x5a4   : > { %v3817_v15 = vadd.f32 %v3816_v61, %v3770_v32 }
 0x5a5   : > { %5064 = vmatpush.msk.msrb.mxu1 %vm9491_vm2, %v9485_v9  ;;  %v3975_v6 = vsel %vm499_vm0, %v3970_v33, %v8814_v17  ;;  %vm9494_vm2 = vcmp.eq.s32.totalorder %v7359_v3, %v7507_v55  ;;  %v3858_v33 = vadd.f32 %v8780_v31, %v3811_v29 }
 0x5a6   : > { %v3904_v48 = vpop.f32.mrf.mxu2  ;;  %v8822_v4 = vmax.f32 %v3927_v56, %v3975_v6 }
 0x5a7   : > { %5065 = vmatpush.msk.msrb.mxu1 %vm9492_vm10, %v9485_v9  ;;  %vm9496_vm10 = vcmp.eq.s32.totalorder %v7333_v12, %v7507_v55  ;;  %v3819_v5 = vpop.f32.mrf.mxu3  ;;  %v3905_v36 = vadd.f32 %v3904_v48, %v3858_v33 }
 0x5a8   : > { %v3863_v20 = vpop.f32.mrf.mxu0 }
 0x5a9   : > { %5066 = vmatpush.msk.msrb.mxu1 %vm9493_vm5, %v9485_v9  ;;  %vm9497_vm5 = vcmp.eq.s32.totalorder %v7311_v35, %v7507_v55  ;;  %v3772_v3 = vpop.f32.mrf.mxu1  ;;  %v8867_v35 = vsel %vm7193_vm7, 1.0, %v9498_v2  ;;  %v3864_v51 = vadd.f32 %v3863_v20, %v3817_v15 }
 0x5aa   : > { %v3773_v53 = vadd.f32 %v3772_v3, %v8413_v54  ;;  %v3931_v3 = vmax.f32 %v3905_v36, 0.0 }
 0x5ab   : > { %5067 = vmatpush.msk.msrb.mxu1 %vm9494_vm2, %v9485_v9 }
 0x5ac   : > { %v3820_v24 = vadd.f32 %v3819_v5, %v3773_v53 }
 0x5ad   : > { %5068 = vmatpush.msk.msrb.mxu1 %vm9495_vm3, %v9485_v9  ;;  %vm4040_vm3 = vcmask 646144  }
 0x5ae   : > { %v3907_v25 = vpop.f32.mrf.mxu2  ;;  %5048 = vmatmul.msk.f32.vlgmr.msra.gmra.mxu1 %vm4040_vm3, %v8867_v35 }
 0x5af   : > { %5069 = vmatpush.msk.msrb.mxu1 %vm9496_vm10, %v9485_v9  ;;  %v3822_v49 = vpop.f32.mrf.mxu3  ;;  %v3908_v38 = vadd.f32 %v3907_v25, %v3861_v1  ;;  %vm4283_vm10 = vcmask 916480  }
 0x5b0   : > { %v3866_v0 = vpop.f32.mrf.mxu0 }
 0x5b1   : > { %5070 = vmatpush.msk.msrb.mxu1 %vm9497_vm5, %v9485_v9  ;;  %v3775_v11 = vpop.f32.mrf.mxu1  ;;  %v3867_v46 = vadd.f32 %v3866_v0, %v3820_v24  ;;  %v3933_v59 = vmax.f32 %v3908_v38, 0.0  ;;  %vm9516_vm5 = vcmask 261120  }
 0x5b2   : > { %v3776_v14 = vadd.f32 %v3775_v11, %v8413_v54  ;;  %v3978_v11 = vrot.slane %v3931_v3, 1 }
 0x5b3   : > { %5071 = vmatpush.msk.msrb.mxu1 %vm2664_vm15, %v9485_v9  ;;  %v3982_v48 = vrot.slane %v3933_v59, 1 }
 0x5b4   : > { %v3823_v50 = vadd.f32 %v3822_v49, %v3776_v14 }
 0x5b5   : > { %5072 = vmatpush.msk.msrb.mxu1 %vm2663_vm13, %v9485_v9  ;;  %v3983_v53 = vsel %vm499_vm0, %v3978_v11, %v3982_v48 }
 0x5b6   : > { %v3910_v12 = vpop.f32.mrf.mxu2  ;;  %5049 = vmatmul.msk.f32.gmra.mxu1 %vm4040_vm3, %v8879_v19 }
 0x5b7   : > { %5073 = vmatpush.msk.msrb.mxu1 %vm2662_vm6, %v9485_v9  ;;  %v3825_v27 = vpop.f32.mrf.mxu3  ;;  %v3911_v22 = vadd.f32 %v3910_v12, %v3864_v51  ;;  %vm9511_vm6 = vcmask 1039360  }
 0x5b8   : > { %v3869_v58 = vpop.f32.mrf.mxu0  ;;  %vm9512_vm13 = vmmov %vm9511_vm6 }
 0x5b9   : > { %5074 = vmatpush.msk.msrb.mxu1 %vm2661_vm4, %v9485_v9  ;;  %v3778_v34 = vpop.f32.mrf.mxu1  ;;  %v3870_v8 = vadd.f32 %v3869_v58, %v3823_v50  ;;  %v3935_v6 = vmax.f32 %v3911_v22, 0.0  ;;  %v4875_v58 = vsel %vm7303_vm12, 1.0, %v9498_v2  ;;  %v3979_v50 = vsel %vm499_vm0, %v8814_v17, %v3978_v11  ;;  %vm9513_vm4 = vmmov %vm9511_vm6 }
 0x5ba   : > { %v3779_v23 = vadd.f32 %v3778_v34, %v8413_v54  ;;  %v4027_v32 = vmax.f32 %v3929_v30, %v3979_v50  ;;  %v9507_v30 = vld [vmem:[#allocation25_spill] sm:$0xff]  ;;  %vm9514_vm15 = vmmov %vm9513_vm4 }
 0x5bb   : > { %v3986_v31 = vrot.slane %v3935_v6, 1  ;;  %vm9508_vm9 = vcmp.eq.s32.totalorder %v9507_v30, %v7507_v55  ;;  %vm9515_vm2 = vmmov %vm9513_vm4 }
 0x5bc   : > { %v3826_v13 = vadd.f32 %v3825_v27, %v3779_v23  ;;  %v4877_v27 = vsel %vm7327_vm14, 1.0, %v9498_v2  ;;  %vm4181_vm14 = vcmask 252928  }
 0x5bd   : > { %v3987_v49 = vsel %vm499_vm0, %v3982_v48, %v3986_v31 }
 0x5be   : > { %v3913_v37 = vpop.f32.mrf.mxu2  ;;  %5050 = vmatmul.msk.f32.gmra.mxu1 %vm4040_vm3, %v4873_v26  ;;  %v4031_v34 = vmax.f32 %v3933_v59, %v3987_v49 }
 0x5bf   : > { %v3914_v52 = vadd.f32 %v3913_v37, %v3867_v46 }
 0x5c0   : > { %v3872_v40 = vpop.f32.mrf.mxu0 }
 0x5c1   : > { %v3873_v60 = vadd.f32 %v3872_v40, %v3826_v13  ;;  %v3937_v18 = vmax.f32 %v3914_v52, 0.0 }
 0x5c3   : > { %v3990_v47 = vrot.slane %v3937_v18, 1 }
 0x5c5   : > { %v3991_v0 = vsel %vm499_vm0, %v3986_v31, %v3990_v47 }
 0x5c6   : > { %v3916_v44 = vpop.f32.mrf.mxu2  ;;  %v4033_v14 = vmax.f32 %v3935_v6, %v3991_v0  ;;  %5051 = vmatmul.msk.f32.gmra.mxu1 %vm4040_vm3, %v4875_v58 }
 0x5c7   : > { %v3917_v42 = vadd.f32 %v3916_v44, %v3870_v8  ;;  %v4029_v44 = vmax.f32 %v3931_v3, %v3983_v53  ;;  %v9503_v8 = vld [vmem:[#allocation20_spill] sm:$0xff] }
 0x5c8   : > { %vm9504_vm7 = vcmp.eq.s32.totalorder %v9503_v8, %v7507_v55 }
 0x5c9   : > { %v3939_v10 = vmax.f32 %v3917_v42, 0.0  ;;  %v4974_v17 = vsel %vm9504_vm7, 1.0, %v9498_v2  ;;  %vm4419_vm7 = vcmask 1040384  }
 0x5cb   : > { %v3994_v57 = vrot.slane %v3939_v10, 1 }
 0x5cd   : > { %v3995_v5 = vsel %vm499_vm0, %v3990_v47, %v3994_v57 }
 0x5ce   : > { %v3919_v56 = vpop.f32.mrf.mxu2  ;;  %v4035_v12 = vmax.f32 %v3937_v18, %v3995_v5  ;;  %5052 = vmatmul.msk.f32.gmra.mxu1 %vm4040_vm3, %v4877_v27 }
 0x5cf   : > { %v3920_v28 = vadd.f32 %v3919_v56, %v3873_v60 }
 0x5d1   : > { %v3941_v16 = vmax.f32 %v3920_v28, 0.0 }
 0x5d3   : > { %v3998_v45 = vrot.slane %v3941_v16, 1 }
 0x5d5   : > { %v4039_v61 = vmax.f32 %v3941_v16, %v3998_v45  ;;  %v3999_v20 = vsel %vm499_vm0, %v3994_v57, %v3998_v45 }
 0x5d6   : > { %v4037_v25 = vmax.f32 %v3939_v10, %v3999_v20 }
 0x5d7   : > { %5053 = vmatpush.msk.msra.mxu3 %vm499_vm0, %v4039_v61 }
 0x5d9   : > { %4101 = vmatpush.msra.mxu3 %v4037_v25 }
 0x5db   : > { %4102 = vmatpush.msra.mxu3 %v4035_v12 }
 0x5dd   : > { %4103 = vmatpush.msra.mxu3 %v4033_v14 }
 0x5df   : > { %4104 = vmatpush.msra.mxu3 %v4031_v34 }
 0x5e1   : > { %4105 = vmatpush.msra.mxu3 %v4029_v44  ;;  %v4464_v44 = vld [vmem:[%s9373_s5 + $0x78] sm:$0xff] }
 0x5e2   : > { %4507 = vmatpush.msrb.mxu0 %v4464_v44  ;;  %v4465_v44 = vld [vmem:[%s9373_s5 + $0x80] sm:$0xff] }
 0x5e3   : > { %4106 = vmatpush.msra.mxu3 %v4027_v32  ;;  %v4480_v32 = vld [vmem:[%s9373_s5 + $0xf8] sm:$0xff] }
 0x5e4   : > { %4527 = vmatpush.msrb.mxu2 %v4480_v32 }
 0x5e5   : > { %4107 = vmatpush.msra.mxu3 %v8822_v4 }
 0x5e7   : > { %4108 = vmatpush.msra.mxu3 %v8795_v43  ;;  %v9509_v43 = vld [vmem:[#allocation26_spill] sm:$0xff] }
 0x5e8   : > { %vm9510_vm12 = vcmp.eq.s32.totalorder %v9509_v43, %v7507_v55 }
 0x5e9   : > { %4109 = vmatpush.msra.mxu3 %v8775_v21 }
 0x5ea   : > { %5054 = vmatmul.msk.f32.vlgmr.msra.gmra.mxu3 %vm4040_vm3, %v8867_v35 }
 0x5eb   : > { %5075 = vmatpush.msk.msrb.mxu3 %vm499_vm0, %v4974_v17 }
 0x5ed   : > { %5076 = vmatpush.msk.msrb.mxu3 %vm9506_vm8, %v9485_v9  ;;  %vm4428_vm8 = vcmask 1042432  }
 0x5ef   : > { %5077 = vmatpush.msk.msrb.mxu3 %vm9508_vm9, %v9485_v9 }
 0x5f1   : > { %5078 = vmatpush.msk.msrb.mxu3 %vm9510_vm12, %v9485_v9 }
 0x5f2   : > { %5055 = vmatmul.msk.f32.gmra.mxu3 %vm4040_vm3, %v8879_v19 }
 0x5fa   : > { %5056 = vmatmul.msk.f32.gmra.mxu3 %vm4040_vm3, %v4873_v26 }
 0x602   : > { %5057 = vmatmul.msk.f32.gmra.mxu3 %vm4040_vm3, %v4875_v58 }
 0x60a   : > { %5058 = vmatmul.msk.f32.gmra.mxu3 %vm4040_vm3, %v4877_v27  ;;  %v4463_v27 = vld [vmem:[%s9373_s5 + $0x70] sm:$0xff]  ;;  %vm9517_vm3 = vmmov %vm9516_vm5 }
 0x60b   : > { %4508 = vmatpush.msrb.mxu0 %v4463_v27  ;;  %v4487_v27 = vld [vmem:[%s9373_s5 + $0x130] sm:$0xff]  ;;  %vm9518_vm9 = vmmov %vm9517_vm3 }
 0x60c   : > { %vm9519_vm12 = vmmov %vm9517_vm3 }
 0x62b   : > { %v4079_v21 = vpop.f32.mrf.mxu1 }
 0x62c   : > { %4136 = vrot.lane.b32.xlu0 %v4079_v21, %s5790_s29 }
 0x633   : > { %v4082_v2 = vpop.f32.mrf.mxu1 }
 0x63b   : > { %v4085_v55 = vpop.f32.mrf.mxu1 }
 0x643   : > { %v4088_v39 = vpop.f32.mrf.mxu1 }
 0x64b   : > { %v4091_v15 = vpop.f32.mrf.mxu1 }
 0x66d   : > { %v4111_v4 = vpop.f32.mrf.mxu3 }
 0x66e   : > { %4138 = vrot.lane.b32.xlu2 %v4111_v4, %s5790_s29 }
 0x675   : > { %v4114_v35 = vpop.f32.mrf.mxu3 }
 0x676   : > { %4142 = vrot.lane.b32.xlu1 %v4114_v35, %s5790_s29  ;;  %4140 = vrot.lane.b32.xlu2 %v4082_v2, %s5790_s29 }
 0x67d   : > { %v4117_v9 = vpop.f32.mrf.mxu3 }
 0x67e   : > { %4146 = vrot.lane.b32.xlu0 %v4117_v9, %s5790_s29  ;;  %4144 = vrot.lane.b32.xlu1 %v4085_v55, %s5790_s29 }
 0x685   : > { %v4120_v23 = vpop.f32.mrf.mxu3 }
 0x686   : > { %4148 = vrot.lane.b32.xlu0 %v4088_v39, %s5790_s29  ;;  %4150 = vrot.lane.b32.xlu2 %v4120_v23, %s5790_s29 }
 0x68d   : > { %v4123_v46 = vpop.f32.mrf.mxu3 }
 0x68e   : > { %4154 = vrot.lane.b32.xlu1 %v4123_v46, %s5790_s29  ;;  %4152 = vrot.lane.b32.xlu2 %v4091_v15, %s5790_s29  ;;  %s5795_s29 = smov 112  }
 0x69e   : > { %v4137_v40 = vpop.permute.xlu0 %4136 }
 0x6c8   : > { %v4139_v42 = vpop.permute.xlu2 %4138 }
 0x6c9   : > { %v4172_v7 = vmax.f32 %v4111_v4, %v4139_v42  ;;  %v4156_v19 = vsel %vm9511_vm6, %v4137_v40, %v4139_v42 }
 0x6ca   : > { %v4171_v13 = vmax.f32 %v4079_v21, %v4156_v19 }
 0x6cb   : > { %5079 = vmatmul.msk.f32.vlgmr.msrb.gmra.mxu3 %vm4181_vm14, %v4172_v7 }
 0x6cc   : > { %4216 = vmatmul.f32.vlgmr.msrb.gmra.mxu1 %v4171_v13 }
 0x6d0   : > { %v4141_v63 = vpop.permute.xlu2 %4140 }
 0x6e0   : > { %v4151_v28 = vpop.permute.xlu2 %4150 }
 0x6e1   : > { %v4178_v38 = vmax.f32 %v4120_v23, %v4151_v28 }
 0x6e8   : > { %v4143_v62 = vpop.permute.xlu1 %4142  ;;  %v4153_v36 = vpop.permute.xlu2 %4152 }
 0x6e9   : > { %v4174_v51 = vmax.f32 %v4114_v35, %v4143_v62  ;;  %v4157_v52 = vsel %vm9512_vm13, %v4141_v63, %v4143_v62  ;;  %v4479_v62 = vld [vmem:[%s9373_s5 + $0xf0] sm:$0xff]  ;;  %v4462_v63 = vld [vmem:[%s9373_s5 + $0x68] sm:$0xff]  ;;  %vm9522_vm13 = vcmask 1044480  }
 0x6ea   : > { %v4173_v60 = vmax.f32 %v4082_v2, %v4157_v52  ;;  %4528 = vmatpush.msrb.mxu2 %v4479_v62  ;;  %4509 = vmatpush.msrb.mxu0 %v4462_v63  ;;  %v4461_v52 = vld [vmem:[%s9373_s5 + $0x60] sm:$0xff]  ;;  %v4603_v63 = vld [vmem:[%s9375_s7 + $0x78] sm:$0xff] }
 0x6eb   : > { %5080 = vmatmul.msk.f32.gmra.mxu3 %vm4181_vm14, %v4174_v51  ;;  %v4478_v51 = vld [vmem:[%s9373_s5 + $0xe8] sm:$0xff]  ;;  %v4497_v62 = vld [vmem:[%s9373_s5 + $0x180] sm:$0xff] }
 0x6ec   : > { %4219 = vmatmul.f32.gmra.mxu1 %v4173_v60  ;;  %v4477_v60 = vld [vmem:[%s9373_s5 + $0xe0] sm:$0xff]  ;;  %4529 = vmatpush.msrb.mxu2 %v4478_v51  ;;  %v4602_v51 = vld [vmem:[%s9375_s7 + $0x70] sm:$0xff] }
 0x6ed   : > { %4510 = vmatpush.msrb.mxu0 %v4461_v52  ;;  %4608 = vmatpush.msra.mxu3 %v4603_v63 }
 0x6ee   : > { %4530 = vmatpush.msrb.mxu2 %v4477_v60 }
 0x6ef   : > { %4609 = vmatpush.msra.mxu3 %v4602_v51 }
 0x6f0   : > { %v4147_v29 = vpop.permute.xlu0 %4146  ;;  %v4145_v1 = vpop.permute.xlu1 %4144 }
 0x6f1   : > { %v4176_v22 = vmax.f32 %v4117_v9, %v4147_v29  ;;  %v4158_v10 = vsel %vm9513_vm4, %v4145_v1, %v4147_v29  ;;  %v4460_v29 = vld [vmem:[%s9373_s5 + $0x58] sm:$0xff]  ;;  %vm9523_vm4 = vmmov %vm9517_vm3 }
 0x6f2   : > { %v4175_v56 = vmax.f32 %v4085_v55, %v4158_v10  ;;  %v4476_v1 = vld [vmem:[%s9373_s5 + $0xd8] sm:$0xff]  ;;  %4511 = vmatpush.msrb.mxu0 %v4460_v29  ;;  %v4475_v10 = vld [vmem:[%s9373_s5 + $0xd0] sm:$0xff] }
 0x6f3   : > { %5081 = vmatmul.msk.f32.gmra.mxu3 %vm4181_vm14, %v4176_v22  ;;  %v4459_v22 = vld [vmem:[%s9373_s5 + $0x50] sm:$0xff]  ;;  %4531 = vmatpush.msrb.mxu2 %v4476_v1  ;;  %v4481_v1 = vld [vmem:[%s9373_s5 + $0x100] sm:$0xff] }
 0x6f4   : > { %4222 = vmatmul.f32.gmra.mxu1 %v4175_v56  ;;  %4512 = vmatpush.msrb.mxu0 %v4459_v22  ;;  %v4458_v56 = vld [vmem:[%s9373_s5 + $0x48] sm:$0xff] }
 0x6f5   : > { %4532 = vmatpush.msrb.mxu2 %v4475_v10 }
 0x6f6   : > { %4513 = vmatpush.msrb.mxu0 %v4458_v56  ;;  %v4601_v56 = vld [vmem:[%s9375_s7 + $0x68] sm:$0xff] }
 0x6f7   : > { %4610 = vmatpush.msra.mxu3 %v4601_v56 }
 0x6f8   : > { %v4149_v33 = vpop.permute.xlu0 %4148 }
 0x6f9   : > { %v4159_v18 = vsel %vm9514_vm15, %v4149_v33, %v4151_v28  ;;  %v4474_v28 = vld [vmem:[%s9373_s5 + $0xc8] sm:$0xff]  ;;  %v4457_v33 = vld [vmem:[%s9373_s5 + $0x40] sm:$0xff]  ;;  %vm9524_vm15 = vmmov %vm9517_vm3 }
 0x6fa   : > { %v4177_v16 = vmax.f32 %v4088_v39, %v4159_v18  ;;  %4533 = vmatpush.msrb.mxu2 %v4474_v28  ;;  %v4456_v18 = vld [vmem:[%s9373_s5 + $0x38] sm:$0xff]  ;;  %4514 = vmatpush.msrb.mxu0 %v4457_v33 }
 0x6fb   : > { %5082 = vmatmul.msk.f32.gmra.mxu3 %vm4181_vm14, %v4178_v38  ;;  %v4473_v38 = vld [vmem:[%s9373_s5 + $0xc0] sm:$0xff] }
 0x6fc   : > { %4225 = vmatmul.f32.gmra.mxu1 %v4177_v16  ;;  %v4496_v16 = vld [vmem:[%s9373_s5 + $0x178] sm:$0xff]  ;;  %4534 = vmatpush.msrb.mxu2 %v4473_v38 }
 0x6fd   : > { %4547 = vmatpush.msra.mxu1 %v4496_v16  ;;  %4515 = vmatpush.msrb.mxu0 %v4456_v18 }
 0x700   : > { %v4155_v6 = vpop.permute.xlu1 %4154 }
 0x701   : > { %v4180_v57 = vmax.f32 %v4123_v46, %v4155_v6  ;;  %v4160_v54 = vsel %vm9515_vm2, %v4153_v36, %v4155_v6  ;;  %v4472_v36 = vld [vmem:[%s9373_s5 + $0xb8] sm:$0xff]  ;;  %v4455_v6 = vld [vmem:[%s9373_s5 + $0x30] sm:$0xff]  ;;  %vm9525_vm2 = vmmov %vm9522_vm13 }
 0x702   : > { %v4179_v26 = vmax.f32 %v4091_v15, %v4160_v54  ;;  %4535 = vmatpush.msrb.mxu2 %v4472_v36  ;;  %4516 = vmatpush.msrb.mxu0 %v4455_v6  ;;  %v4471_v54 = vld [vmem:[%s9373_s5 + $0xb0] sm:$0xff] }
 0x703   : > { %5083 = vmatmul.msk.f32.gmra.mxu3 %vm4181_vm14, %v4180_v57  ;;  %v4495_v57 = vld [vmem:[%s9373_s5 + $0x170] sm:$0xff]  ;;  %vm9520_vm14 = vcmask 1043456  }
 0x704   : > { %4228 = vmatmul.f32.gmra.mxu1 %v4179_v26  ;;  %4536 = vmatpush.msrb.mxu2 %v4471_v54  ;;  %v4454_v26 = vld [vmem:[%s9373_s5 + $0x28] sm:$0xff]  ;;  %v4600_v54 = vld [vmem:[%s9375_s7 + $0x60] sm:$0xff]  ;;  %vm9521_vm6 = vmmov %vm9520_vm14 }
 0x705   : > { %4548 = vmatpush.msra.mxu1 %v4495_v57  ;;  %4517 = vmatpush.msrb.mxu0 %v4454_v26 }
 0x706   : > { %4611 = vmatpush.msra.mxu3 %v4600_v54 }
 0x749   : > { %v4217_v45 = vpop.f32.mrf.mxu1 }
 0x74e   : > { %v4249_v59 = vpop.f32.mrf.mxu3 }
 0x74f   : > { %v8956_v61 = vadd.f32 %v4249_v59, %v4217_v45  ;;  %v4494_v45 = vld [vmem:[%s9373_s5 + $0x168] sm:$0xff] }
 0x750   : > { %4549 = vmatpush.msra.mxu1 %v4494_v45  ;;  %v4470_v59 = vld [vmem:[%s9373_s5 + $0xa8] sm:$0xff] }
 0x751   : > { %v4273_v25 = vrot.slane %v8956_v61, 3  ;;  %v4269_v49 = vrot.slane %v8956_v61, 2  ;;  %v4265_v58 = vrot.slane %v8956_v61, 1  ;;  %v4277_v42 = vrot.slane %v8956_v61, 4  ;;  %4537 = vmatpush.msrb.mxu2 %v4470_v59 }
 0x769   : > { %v4220_v47 = vpop.f32.mrf.mxu1 }
 0x76e   : > { %v4252_v20 = vpop.f32.mrf.mxu3 }
 0x76f   : > { %v8958_v3 = vadd.f32 %v4252_v20, %v4220_v47  ;;  %v4453_v47 = vld [vmem:[%s9373_s5 + $0x20] sm:$0xff] }
 0x770   : > { %v4493_v20 = vld [vmem:[%s9373_s5 + $0x160] sm:$0xff]  ;;  %4518 = vmatpush.msrb.mxu0 %v4453_v47 }
 0x771   : > { %v4291_v31 = vrot.slane %v8958_v3, 4  ;;  %v4287_v5 = vrot.slane %v8958_v3, 3  ;;  %v4223_v48 = vpop.f32.mrf.mxu1  ;;  %v4301_v17 = vrot.slane %v8958_v3, 2  ;;  %v4297_v41 = vrot.slane %v8958_v3, 1  ;;  %4550 = vmatpush.msra.mxu1 %v4493_v20 }
 0x773   : > { %4292 = vrot.lane.b32.xlu0 %v4291_v31, %s5787_s14  ;;  %v5521_v0 = vpack.i.bf16 %v4273_v25, %v4287_v5  ;;  %v4469_v31 = vld [vmem:[%s9373_s5 + $0xa0] sm:$0xff]  ;;  %v4452_v25 = vld [vmem:[%s9373_s5 + $0x18] sm:$0xff] }
 0x774   : > { %v4492_v5 = vld [vmem:[%s9373_s5 + $0x158] sm:$0xff]  ;;  %4538 = vmatpush.msrb.mxu2 %v4469_v31  ;;  %4519 = vmatpush.msrb.mxu0 %v4452_v25 }
 0x775   : > { %5522 = vrot.lane.b32.xlu2 %v5521_v0, %s5795_s29  ;;  %v4451_v0 = vld [vmem:[%s9373_s5 + $0x10] sm:$0xff]  ;;  %4551 = vmatpush.msra.mxu1 %v4492_v5 }
 0x776   : > { %v4255_v12 = vpop.f32.mrf.mxu3  ;;  %4520 = vmatpush.msrb.mxu0 %v4451_v0 }
 0x777   : > { %v8965_v11 = vadd.f32 %v4255_v12, %v4223_v48  ;;  %v4468_v48 = vld [vmem:[%s9373_s5 + $0x98] sm:$0xff]  ;;  %v4491_v12 = vld [vmem:[%s9373_s5 + $0x150] sm:$0xff] }
 0x778   : > { %4539 = vmatpush.msrb.mxu2 %v4468_v48  ;;  %4552 = vmatpush.msra.mxu1 %v4491_v12 }
 0x779   : > { %v4313_v37 = vrot.slane %v8965_v11, 2  ;;  %v4309_v14 = vrot.slane %v8965_v11, 1  ;;  %v4226_v50 = vpop.f32.mrf.mxu1  ;;  %v4317_v21 = vrot.slane %v8965_v11, 3  ;;  %v4321_v19 = vrot.slane %v8965_v11, 4 }
 0x77b   : > { %v5531_v53 = vpack.i.bf16 %v4313_v37, %v4269_v49  ;;  %v5526_v34 = vpack.i.bf16 %v4309_v14, %v4265_v58  ;;  %v4467_v49 = vld [vmem:[%s9373_s5 + $0x90] sm:$0xff]  ;;  %v4450_v37 = vld [vmem:[%s9373_s5 + $0x8] sm:$0xff] }
 0x77c   : > { %v4490_v58 = vld [vmem:[%s9373_s5 + $0x148] sm:$0xff]  ;;  %4540 = vmatpush.msrb.mxu2 %v4467_v49  ;;  %4521 = vmatpush.msrb.mxu0 %v4450_v37 }
 0x77d   : > { %5532 = vrot.lane.b32.xlu1 %v5531_v53, %s5785_s21  ;;  %5527 = vrot.lane.b32.xlu0 %v5526_v34, %s5794_s8  ;;  %v4466_v14 = vld [vmem:[%s9373_s5 + $0x88] sm:$0xff]  ;;  %v4449_v53 = vld [vmem:[%s9373_s5] sm:$0xff] }
 0x77e   : > { %v4258_v24 = vpop.f32.mrf.mxu3  ;;  %v4489_v34 = vld [vmem:[%s9373_s5 + $0x140] sm:$0xff]  ;;  %4553 = vmatpush.msra.mxu1 %v4490_v58  ;;  %4541 = vmatpush.msrb.mxu2 %v4466_v14 }
 0x77f   : > { %v8982_v8 = vadd.f32 %v4258_v24, %v4226_v50  ;;  %v4488_v24 = vld [vmem:[%s9373_s5 + $0x138] sm:$0xff]  ;;  %4522 = vmatpush.msrb.mxu0 %v4449_v53 }
 0x780   : > { %4554 = vmatpush.msra.mxu1 %v4489_v34  ;;  %4542 = vmatpush.msrb.mxu2 %v4465_v44 }
 0x781   : > { %v4340_v30 = vrot.slane %v8982_v8, 2  ;;  %v4336_v43 = vrot.slane %v8982_v8, 1  ;;  %v4344_v4 = vrot.slane %v8982_v8, 3  ;;  %v4229_v9 = vpop.f32.mrf.mxu1  ;;  %v4330_v7 = vrot.slane %v8982_v8, 4 }
 0x782   : > { %4555 = vmatpush.msra.mxu1 %v4488_v24 }
 0x783   : > { %v5541_v2 = vpack.i.bf16 %v4340_v30, %v4301_v17  ;;  %v5536_v35 = vpack.i.bf16 %v4336_v43, %v4297_v41  ;;  %v5546_v55 = vpack.i.bf16 %v4344_v4, %v4317_v21  ;;  %v4486_v17 = vld [vmem:[%s9373_s5 + $0x128] sm:$0xff]  ;;  %v4485_v41 = vld [vmem:[%s9373_s5 + $0x120] sm:$0xff]  ;;  %v4484_v4 = vld [vmem:[%s9373_s5 + $0x118] sm:$0xff] }
 0x784   : > { %4556 = vmatpush.msra.mxu1 %v4487_v27 }
 0x785   : > { %5542 = vrot.lane.b32.xlu1 %v5541_v2, %s5785_s21  ;;  %5537 = vrot.lane.b32.xlu0 %v5536_v35, %s5794_s8 }
 0x786   : > { %v4261_v39 = vpop.f32.mrf.mxu3  ;;  %5547 = vrot.lane.b32.xlu2 %v5546_v55, %s5795_s29  ;;  %4557 = vmatpush.msra.mxu1 %v4486_v17 }
 0x787   : > { %v8993_v23 = vadd.f32 %v4261_v39, %v4229_v9  ;;  %v4483_v39 = vld [vmem:[%s9373_s5 + $0x110] sm:$0xff] }
 0x788   : > { %4558 = vmatpush.msra.mxu1 %v4485_v41 }
 0x789   : > { %v4368_v15 = vrot.slane %v8993_v23, 1  ;;  %v4353_v46 = vrot.slane %v8993_v23, 2  ;;  %v4357_v40 = vrot.slane %v8993_v23, 3  ;;  %v4361_v13 = vrot.slane %v8993_v23, 4 }
 0x78a   : > { %4559 = vmatpush.msra.mxu1 %v4484_v4 }
 0x78c   : > { %4560 = vmatpush.msra.mxu1 %v4483_v39 }
 0x78d   : > { %4369 = vrot.lane.b32.xlu1 %v4368_v15, %s5794_s8  ;;  %4354 = vrot.lane.b32.xlu0 %v4353_v46, %s5785_s21 }
 0x78e   : > { %4358 = vrot.lane.b32.xlu2 %v4357_v40, %s5795_s29  ;;  %v4498_v40 = vld [vmem:[%s9373_s5 + $0x188] sm:$0xff]  ;;  %s5720_s29 = scalar_lea.hbm %s5719_s13, 8 }
 0x78f   : > { %4581 = vmatpush.msra.mxu0 %v4498_v40  ;;  %p5721_p0 = scmp.ne.s32.totalorder %s5719_s13, %s5720_s29  ;;  %p5726_p4 = scmp.lt.s32.totalorder %s5724_s2, %s5720_s29 }
 0x791   : > { %4582 = vmatpush.msra.mxu0 %v4497_v62  ;;  %p5722_p1 = pnand %p5721_p0, %p5894_p5  ;;  %p5727_p7 = por %p5726_p4, %p5725_p3 }
 0x793   : > { %p5723_p2 = pneg %p5722_p1 }
 0x795   : > { %4278 = vrot.lane.b32.xlu1 %v4277_v42, %s5787_s14  ;;  %4331 = vrot.lane.b32.xlu0 %v4330_v7, %s5787_s14  ;;  %p5728_p8 = pnand %p5727_p7, %p5723_p2 }
 0x796   : > { %4322 = vrot.lane.b32.xlu2 %v4321_v19, %s5787_s14  ;;  %v4482_v19 = vld [vmem:[%s9373_s5 + $0x108] sm:$0xff] }
 0x797   : > { %4561 = vmatpush.msra.mxu1 %v4482_v19 }
 0x799   : > { %4562 = vmatpush.msra.mxu1 %v4481_v1 }
 0x79d   : > { %4362 = vrot.lane.b32.xlu1 %v4361_v13, %s5787_s14 }
 0x7cf   : > { %v9117_v50 = vpop.permute.xlu2 %5522 }
 0x7d0   : > { %v9147_v46 = vunpack.i.l.bf16 %v9117_v50  ;;  %v5525_v60 = vunpack.i.h.bf16 %v9117_v50 }
 0x7e0   : > { %v9136_v30 = vpop.permute.xlu2 %5547 }
 0x7e1   : > { %v9160_v13 = vunpack.i.l.bf16 %v9136_v30  ;;  %v5550_v18 = vunpack.i.h.bf16 %v9136_v30 }
 0x7e5   : > { %v9122_v32 = vpop.permute.xlu0 %4292 }
 0x7e8   : > { %v4359_v20 = vpop.permute.xlu2 %4358 }
 0x7ef   : > { %v5533_v43 = vpop.permute.xlu1 %5532  ;;  %v5528_v21 = vpop.permute.xlu0 %5527 }
 0x7f0   : > { %v5535_v2 = vunpack.i.h.bf16 %v5533_v43  ;;  %v5534_v35 = vunpack.i.l.bf16 %v5533_v43  ;;  %v5530_v55 = vunpack.i.h.bf16 %v5528_v21  ;;  %v5529_v9 = vunpack.i.l.bf16 %v5528_v21  ;;  %v4323_v40 = vpop.permute.xlu2 %4322 }
 0x7f2   : > { %v4281_v15 = vsel %vm2955_vm11, %v8956_v61, %v5529_v9  ;;  %v4326_v42 = vsel %vm9516_vm5, %v5530_v55, %v5535_v2  ;;  %v4282_v7 = vsel %vm9517_vm3, %v5529_v9, %v5534_v35  ;;  %v4325_v22 = vsel %vm2955_vm11, %v8958_v3, %v5530_v55 }
 0x7f3   : > { %v4295_v61 = vsel %vm4283_vm10, %v4282_v7, %v9147_v46  ;;  %v4378_v52 = vrot.slane %v4281_v15, 4  ;;  %v4327_v10 = vsel %vm4283_vm10, %v4326_v42, %v9160_v13  ;;  %v4284_v28 = vsel %vm4283_vm10, %v4282_v7, %v5525_v60 }
 0x7f4   : > { %v4379_v29 = vrot.slane %v4295_v61, 4  ;;  %v4389_v26 = vrot.slane %v4325_v22, 4  ;;  %v4390_v47 = vrot.slane %v4327_v10, 4  ;;  %vm9526_vm5 = vcmask 1045504  }
 0x7f5   : > { %v4420_v45 = vsel %vm4419_vm7, %v4281_v15, %v4378_v52  ;;  %vm9527_vm3 = vmmov %vm9526_vm5  ;;  %v4381_v7 = vrot.slane %v9122_v32, 4  ;;  %v4392_v52 = vrot.slane %v4323_v40, 4 }
 0x7f6   : > { %v4421_v59 = vsel %vm4419_vm7, %v4284_v28, %v4379_v29 }
 0x7f7   : > { %v5543_v33 = vpop.permute.xlu1 %5542  ;;  %v5538_v38 = vpop.permute.xlu0 %5537 }
 0x7f8   : > { %v5545_v16 = vunpack.i.h.bf16 %v5543_v33  ;;  %v5544_v36 = vunpack.i.l.bf16 %v5543_v33  ;;  %v5540_v6 = vunpack.i.h.bf16 %v5538_v38  ;;  %v5539_v57 = vunpack.i.l.bf16 %v5538_v38 }
 0x7fa   : > { %v4348_v31 = vsel %vm2955_vm11, %v8982_v8, %v5540_v6  ;;  %v4349_v25 = vsel %vm9518_vm9, %v5540_v6, %v5545_v16  ;;  %v4305_v5 = vsel %vm2955_vm11, %v8958_v3, %v5539_v57  ;;  %v4306_v48 = vsel %vm9519_vm12, %v5539_v57, %v5544_v36 }
 0x7fb   : > { %v4400_v0 = vrot.slane %v4348_v31, 4  ;;  %v4307_v12 = vsel %vm4283_vm10, %v4306_v48, %v9147_v46  ;;  %v4424_v49 = vsel %vm3376_vm1, %v4420_v45, %v4305_v5  ;;  %v4350_v37 = vsel %vm4283_vm10, %v4349_v25, %v5550_v18  ;;  %v4596_v25 = vld [vmem:[%s9375_s7 + $0x40] sm:$0xff]  ;;  %v4595_v5 = vld [vmem:[%s9375_s7 + $0x38] sm:$0xff]  ;;  %v4594_v48 = vld [vmem:[%s9375_s7 + $0x30] sm:$0xff] }
 0x7fc   : > { %v4334_v8 = vsel %vm2955_vm11, %v8965_v11, %v5530_v55  ;;  %v4425_v58 = vsel %vm3376_vm1, %v4421_v59, %v4307_v12  ;;  %v4429_v3 = vsel %vm4428_vm8, %v4424_v49, %v4389_v26  ;;  %v4401_v14 = vrot.slane %v4350_v37, 4  ;;  %v4592_v12 = vld [vmem:[%s9375_s7 + $0x20] sm:$0xff]  ;;  %v4591_v49 = vld [vmem:[%s9375_s7 + $0x18] sm:$0xff]  ;;  %v4590_v37 = vld [vmem:[%s9375_s7 + $0x10] sm:$0xff] }
 0x7fd   : > { %v4430_v53 = vsel %vm4428_vm8, %v4425_v58, %v4390_v47  ;;  %v4433_v34 = vsel %vm9520_vm14, %v4429_v3, %v4334_v8  ;;  %v4599_v47 = vld [vmem:[%s9375_s7 + $0x58] sm:$0xff]  ;;  %v4589_v8 = vld [vmem:[%s9375_s7 + $0x8] sm:$0xff]  ;;  %v4588_v58 = vld [vmem:[%s9375_s7] sm:$0xff] }
 0x7fe   : > { %v4434_v44 = vsel %vm9521_vm6, %v4430_v53, %v4327_v10  ;;  %v4437_v17 = vsel %vm9522_vm13, %v4433_v34, %v4400_v0  ;;  %vm9534_vm13 = vmmov %vm9525_vm2  ;;  %4612 = vmatpush.msra.mxu3 %v4599_v47  ;;  %v4593_v0 = vld [vmem:[%s9375_s7 + $0x28] sm:$0xff]  ;;  %v4644_v3 = vld [vmem:[%s9377_s9 + $0x78] sm:$0xff] }
 0x7ff   : > { %v4370_v24 = vpop.permute.xlu1 %4369  ;;  %v4355_v27 = vpop.permute.xlu0 %4354  ;;  %v4438_v4 = vsel %vm9525_vm2, %v4434_v44, %v4401_v14  ;;  %v4441_v39 = vsel %vm9527_vm3, %v4437_v17, %v4348_v31  ;;  %v4597_v31 = vld [vmem:[%s9375_s7 + $0x48] sm:$0xff]  ;;  %v4643_v14 = vld [vmem:[%s9377_s9 + $0x70] sm:$0xff]  ;;  %4649 = vmatpush.msra.mxu2 %v4644_v3  ;;  %v4641_v34 = vld [vmem:[%s9377_s9 + $0x60] sm:$0xff] }
 0x800   : > { %v4372_v41 = vsel %vm2955_vm11, %v8993_v23, %v4370_v24  ;;  %v4365_v11 = vsel %vm9523_vm4, %v5540_v6, %v4355_v27  ;;  %v4373_v43 = vsel %vm9524_vm15, %v4370_v24, %v4355_v27  ;;  %vm9528_vm11 = vcmask 523264   ;;  %vm9537_vm15 = vmmov %vm9527_vm3  ;;  %v4642_v53 = vld [vmem:[%s9377_s9 + $0x68] sm:$0xff]  ;;  %v4640_v44 = vld [vmem:[%s9377_s9 + $0x58] sm:$0xff] }
 0x801   : > { %v4411_v21 = vrot.slane %v4372_v41, 4  ;;  %v4366_v2 = vsel %vm4283_vm10, %v4365_v11, %v4359_v20  ;;  %v4374_v35 = vsel %vm4283_vm10, %v4373_v43, %v4359_v20  ;;  %v4296_v23 = vsel %vm9528_vm11, %v9147_v46, %v9122_v32  ;;  %vm9529_vm10 = vmmov %vm9528_vm11  ;;  %4650 = vmatpush.msra.mxu2 %v4643_v14  ;;  %v4639_v24 = vld [vmem:[%s9377_s9 + $0x50] sm:$0xff]  ;;  %v4638_v27 = vld [vmem:[%s9377_s9 + $0x48] sm:$0xff] }
 0x802   : > { %v4412_v55 = vrot.slane %v4374_v35, 4  ;;  %v4442_v9 = vsel %vm9526_vm5, %v4438_v4, %v4366_v2  ;;  %v4328_v19 = vsel %vm9529_vm10, %v9160_v13, %v4323_v40  ;;  %v4380_v61 = vrot.slane %v4296_v23, 4  ;;  %vm9530_vm9 = vmmov %vm9529_vm10  ;;  %v4637_v17 = vld [vmem:[%s9377_s9 + $0x40] sm:$0xff]  ;;  %v4636_v41 = vld [vmem:[%s9377_s9 + $0x38] sm:$0xff] }
 0x803   : > { %v4445_v15 = vsel %vm499_vm0, %v4441_v39, %v4411_v21  ;;  %v4391_v22 = vrot.slane %v4328_v19, 4  ;;  %vm9531_vm12 = vmmov %vm9530_vm9  ;;  %4651 = vmatpush.msra.mxu2 %v4642_v53  ;;  %v4635_v11 = vld [vmem:[%s9377_s9 + $0x30] sm:$0xff]  ;;  %v5551_v43 = vld [vmem:[#allocation7] ss:$0 sm:$0xff] }
 0x804   : > { %4523 = vmatmul.f32.vlgmr.msrb.gmra.mxu0 %v4445_v15  ;;  %v4446_v42 = vsel %vm499_vm0, %v4442_v9, %v4412_v55  ;;  %vm9532_vm14 = vmmov %vm9530_vm9  ;;  %v4634_v21 = vld [vmem:[%s9377_s9 + $0x28] sm:$0xff]  ;;  %v4633_v2 = vld [vmem:[%s9377_s9 + $0x20] sm:$0xff] }
 0x805   : > { %4543 = vmatmul.f32.vlgmr.msrb.gmra.mxu2 %v4446_v42  ;;  %vm9535_vm4 = vmmov %vm9530_vm9  ;;  %v4632_v9 = vld [vmem:[%s9377_s9 + $0x18] sm:$0xff]  ;;  %v4631_v19 = vld [vmem:[%s9377_s9 + $0x10] sm:$0xff] }
 0x806   : > { %4652 = vmatpush.msra.mxu2 %v4641_v34 }
 0x807   : > { %v4279_v62 = vpop.permute.xlu1 %4278  ;;  %v4332_v29 = vpop.permute.xlu0 %4331 }
 0x808   : > { %v4285_v63 = vsel %vm9530_vm9, %v5525_v60, %v4279_v62  ;;  %v4423_v51 = vsel %vm4419_vm7, %v4279_v62, %v4381_v7  ;;  %v4351_v50 = vsel %vm9531_vm12, %v5550_v18, %v4332_v29  ;;  %v4335_v60 = vsel %vm9532_vm14, %v9160_v13, %v4332_v29  ;;  %4653 = vmatpush.msra.mxu2 %v4640_v44  ;;  %v4629_v62 = vld [vmem:[%s9377_s9] sm:$0xff] }
 0x809   : > { %v4422_v46 = vsel %vm4419_vm7, %v4285_v63, %v4380_v61  ;;  %v4427_v1 = vsel %vm3376_vm1, %v4423_v51, %v9122_v32  ;;  %v4403_v38 = vrot.slane %v4332_v29, 4  ;;  %vm9533_vm7 = vmmov %vm9521_vm6  ;;  %v4402_v32 = vrot.slane %v4351_v50, 4  ;;  %v4630_v61 = vld [vmem:[%s9377_s9 + $0x8] sm:$0xff]  ;;  %v5552_v63 = vld [vmem:[#allocation8] ss:$0 sm:$0xff] }
 0x80a   : > { %v4426_v10 = vsel %vm3376_vm1, %v4422_v46, %v4296_v23  ;;  %v4432_v56 = vsel %vm4428_vm8, %v4427_v1, %v4392_v52  ;;  %vm4503_vm1 = vcmask 130048   ;;  %4654 = vmatpush.msra.mxu2 %v4639_v24  ;;  %v5553_v46 = vld [vmem:[#allocation10] ss:$0 sm:$0xff] }
 0x80b   : > { %v4431_v28 = vsel %vm4428_vm8, %v4426_v10, %v4391_v22  ;;  %v4436_v33 = vsel %vm9521_vm6, %v4432_v56, %v4332_v29  ;;  %vm9536_vm8 = vmmov %vm9525_vm2 }
 0x80c   : > { %v4435_v16 = vsel %vm9533_vm7, %v4431_v28, %v4335_v60  ;;  %v4440_v6 = vsel %vm9534_vm13, %v4436_v33, %v4403_v38  ;;  %vm9538_vm2 = vmmov %vm9527_vm3  ;;  %4655 = vmatpush.msra.mxu2 %v4638_v27 }
 0x80d   : > { %v4439_v30 = vsel %vm9536_vm8, %v4435_v16, %v4402_v32 }
 0x80e   : > { %4656 = vmatpush.msra.mxu2 %v4637_v17 }
 0x80f   : > { %v4363_v36 = vpop.permute.xlu1 %4362 }
 0x810   : > { %v4367_v57 = vsel %vm9535_vm4, %v4359_v20, %v4363_v36  ;;  %v4414_v54 = vrot.slane %v4363_v36, 4  ;;  %v4444_v18 = vsel %vm9537_vm15, %v4440_v6, %v4363_v36  ;;  %v4598_v20 = vld [vmem:[%s9375_s7 + $0x50] sm:$0xff]  ;;  %4657 = vmatpush.msra.mxu2 %v4636_v41 }
 0x811   : > { %v4413_v26 = vrot.slane %v4367_v57, 4  ;;  %v4443_v13 = vsel %vm9538_vm2, %v4439_v30, %v4367_v57  ;;  %4613 = vmatpush.msra.mxu3 %v4598_v20 }
 0x812   : > { %v4448_v45 = vsel %vm499_vm0, %v4444_v18, %v4414_v54  ;;  %4658 = vmatpush.msra.mxu2 %v4635_v11 }
 0x813   : > { %v4447_v59 = vsel %vm499_vm0, %v4443_v13, %v4413_v26  ;;  %5084 = vmatmul.msk.f32.vlgmr.msra.gmra.mxu0 %vm4503_vm1, %v4448_v45  ;;  %4614 = vmatpush.msra.mxu3 %v4597_v31 }
 0x814   : > { %4563 = vmatmul.f32.vlgmr.msra.gmra.mxu1 %v4447_v59  ;;  %4659 = vmatpush.msra.mxu2 %v4634_v21 }
 0x815   : > { %4615 = vmatpush.msra.mxu3 %v4596_v25 }
 0x816   : > { %4660 = vmatpush.msra.mxu2 %v4633_v2 }
 0x817   : > { %4616 = vmatpush.msra.mxu3 %v4595_v5 }
 0x818   : > { %4661 = vmatpush.msra.mxu2 %v4632_v9 }
 0x819   : > { %4617 = vmatpush.msra.mxu3 %v4594_v48 }
 0x81a   : > { %4662 = vmatpush.msra.mxu2 %v4631_v19 }
 0x81b   : > { %4618 = vmatpush.msra.mxu3 %v4593_v0 }
 0x81c   : > { %4663 = vmatpush.msra.mxu2 %v4630_v61 }
 0x81d   : > { %4619 = vmatpush.msra.mxu3 %v4592_v12 }
 0x81e   : > { %4664 = vmatpush.msra.mxu2 %v4629_v62 }
 0x81f   : > { %4620 = vmatpush.msra.mxu3 %v4591_v49 }
 0x821   : > { %4621 = vmatpush.msra.mxu3 %v4590_v37 }
 0x823   : > { %4622 = vmatpush.msra.mxu3 %v4589_v8 }
 0x825   : > { %4623 = vmatpush.msra.mxu3 %v4588_v58 }
 0x881   : > { %v4524_v4 = vpop.f32.mrf.mxu0 }
 0x882   : > { %v4525_v55 = vadd.f32 %v5551_v43, %v4524_v4 }
 0x888   : > { %v4544_v35 = vpop.f32.mrf.mxu2 }
 0x889   : > { %v4545_v39 = vadd.f32 %v4544_v35, %v4525_v55 }
 0x890   : > { %v4584_v23 = vpop.f32.mrf.mxu0 }
 0x891   : > { %v4564_v15 = vpop.f32.mrf.mxu1 }
 0x892   : > { %v4565_v40 = vadd.f32 %v4564_v15, %v4545_v39 }
 0x894   : > { %v4585_v42 = vadd.f32 %v4584_v23, %v4565_v40 }
 0x896   : > { %v4587_v7 = vmax.f32 %v4585_v42, 0.0 }
 0x898   : > { %4624 = vmatmul.f32.vlgmr.msra.gmra.mxu3 %v4587_v7 }
 0x91b   : > { %v4625_v51 = vpop.f32.mrf.mxu3 }
 0x91c   : > { %v4626_v52 = vadd.f32 %v5552_v63, %v4625_v51 }
 0x91e   : > { %v4628_v29 = vmax.f32 %v4626_v52, 0.0 }
 0x920   : > { %4665 = vmatmul.f32.vlgmr.msra.gmra.mxu2 %v4628_v29 }
 0x9a3   : > { %v4666_v1 = vpop.f32.mrf.mxu2 }
 0x9a4   : > { %v4667_v22 = vadd.f32 %v5553_v46, %v4666_v1 }
 0x9a6   : > { %4669 = vst [vmem:[%s455_s22] sm:$0xff] %v4667_v22 }
 0x9a7   : > { %5731 = shalt.err (!%p5728_p8)
}
 0x9a8   : > { %5110 = dma.vmem_to_hbm [thread:$0]  (%p5894_p5), %s4684_s30, 128, %s4686_s12, %s4671_s26  }
 0x9a9 PF: > { %p5142_p9 = scmp.ge.s32.totalorder %s5778_s20, 2  ;;  %s4697_s24 = sand.u32 1, %s5766_s17  }
 0x9aa   : > { %s4698_s19 = scalar_lea.sflag [#allocation4], %s4697_s24 }
 0x9ab   : > { %p5129_p10 = pnand %p5142_p9, %p5898_p6 }
 0x9ad   : > { %p5130_p11 = pneg %p5129_p10 }
 0x9af   : > { %5761 = dma.done.wait (%p5130_p11), %s4698_s19, 128  }
 0x9b0   : > { %5763 = vsyncadd (%p5130_p11), %s4698_s19, 4294967168  ;;  %s9539_s20 = sld [smem:[#allocation17_spill]]  ;;  %s9542_s17 = smov %s5770_s18 }
 0x9b1   : > { %s9540_s23 = sld [smem:[#allocation16_spill]] }
 0x9b2   : > { %s9541_s19 = sld [smem:[#allocation18_spill]] }
 0x9b6   : > { %p24_p12 = scmp.ge.s32.totalorder %s9539_s20, 4  }
 0x9b7   : > { %s9543_s18 = smov %s9540_s23 }
 0x9b8   :  { %26 = sbr.rel (!%p24_p12) target bundleno = 10 (0xa), region = 120 }
 0x9bd   :  { %4704 = vsyncpa [#allocation3], 1 }
 0x9be   :  { %4706 = vsyncpa [#allocation3 + $0x1], 1 }
 0x9bf   :  { %4707 = vsyncpa [#allocation6], 1 }
 0x9c0   :  { %4708 = vsyncpa [#allocation9], 1 }
 0x9c1   :  { %4709 = vsyncpa [#allocation4], 1 }
 0x9c2   :  { %4711 = vsyncpa [#allocation4 + $0x1], 1 }

</bundles_post_ra>
